<compile_context>
chip_gen: v7x
topology: tpu7x:2x2x1
jax: 0.10.0
libtpu: 0.0.40
codegen_flags: <defaults>
</compile_context>

<pallas_src>
import functools

import numpy as np
import jax
import jax.numpy as jnp
from jax.experimental import pallas as pl
from jax.experimental.pallas import tpu as pltpu

# DeriveLayer default hyper-parameters
SHIFT = 3
SHIFT2 = 1
POOL_K = 9
NC = SHIFT + SHIFT2          # derivative channels (4)
N_OUT = 4 * NC               # MultiScale output channels (16)
WEIGHT_INIT = 0.5            # deterministic init for the (uninitialized) nn.Parameter(1)


def _sliding_sum(a, k, n_out):
    """Sliding-window sum of width k along the last axis via log-doubling.

    a: (C, N) -> (C, n_out) with out[:, p] = sum_{t<k} a[:, p+t]; requires n_out <= N-k+1."""
    pows = {1: a}
    w = 1
    while 2 * w <= k:
        prev = pows[w]
        n = prev.shape[-1]
        pows[2 * w] = prev[:, :n - w] + prev[:, w:]
        w *= 2
    out = None
    off = 0
    bit = w
    rest = k
    while rest > 0:
        if rest >= bit:
            piece = pows[bit][:, off:off + n_out]
            out = piece if out is None else out + piece
            off += bit
            rest -= bit
        bit //= 2
    return out


def _sliding_max(a, k, n_out):
    """Sliding-window max of width k along the last axis (log-doubling, overlapping windows)."""
    acc = a
    w = 1
    while 2 * w <= k:
        n = acc.shape[-1]
        acc = jnp.maximum(acc[:, :n - w], acc[:, w:])
        w *= 2
    if w < k:
        n = acc.shape[-1]
        acc = jnp.maximum(acc[:, :n - (k - w)], acc[:, k - w:])
    return acc[:, :n_out]


def _shift_right(arr, s):
    """out[..., i] = arr[..., i-s] for i >= s (first s lanes are zero filler, never selected)."""
    if s == 0:
        return arr
    n = arr.shape[-1]
    pad = jnp.zeros(arr.shape[:-1] + (s,), arr.dtype)
    return jnp.concatenate([pad, arr[..., :n - s]], axis=-1)


def _derive_kernel(w_ref, dlt_ref, x_ref, o_ref, *, tb, wl, cut, s_max):
    """One batch tile.

    w_ref  : VMEM f32[1, 1]        module scalar `weight` (Hardtanh applied in-kernel)
    dlt_ref: VMEM i32[2*NC, wl]    rows 0..NC-1: stride-1 nearest-upsample shift table,
                                   rows NC..2*NC-1: stride-POOL_K table (-1 on padded lanes)
    x_ref  : VMEM f32[tb, L_pad]   zero-padded input rows
    o_ref  : VMEM f32[tb, 4*NC, wl]
    """
    wv = jnp.clip(w_ref[...], -1.0, 1.0)          # nn.Hardtanh on the scalar weight
    dlt = dlt_ref[...]
    inv_k = 1.0 / POOL_K
    nd = wl + 2 * (POOL_K - 1)                    # diff-row length

    for b in range(tb):
        xb = x_ref[pl.ds(b, 1), :]                # (1, L_pad) -- single read, sliced as values
        xa = xb[:, cut:cut + nd]

        # derivative channels (conv2d([-1,1], stride (2,1)) stage; wrap-free after the cut)
        rows = []
        for d1 in range(SHIFT):
            s = 1 << d1
            rows.append(xa - xb[:, cut - s:cut - s + nd])
        for d2 in range(SHIFT2):
            s2 = 1 << d2
            rows.append((xa - xb[:, cut - 1:cut - 1 + nd]
                         - xb[:, cut - s2:cut - s2 + nd]
                         + xb[:, cut - s2 - 1:cut - s2 - 1 + nd]) * wv)
        d = jnp.concatenate(rows, axis=0)         # (NC, wl + 16), channels on sublanes

        # DeriveLayer.AvgPool (k=9, stride=1); kept 8 columns long so the MultiScale
        # stride-1 pools below come out at full lane width wl.
        r = _sliding_sum(d, POOL_K, wl + POOL_K - 1) * inv_k     # (NC, wl + 8)
        a1 = _sliding_sum(r, POOL_K, wl) * inv_k                 # (NC, wl)  avgPool1 (stride 1)
        m1 = _sliding_max(r, POOL_K, wl)                         # (NC, wl)  maxPool1 (stride 1)
        rw = r[:, :wl]                                           # (NC, wl)  "x" inside MultiScale

        # stride-POOL_K pools are lane-subsamples of the stride-1 pools; both nearest-neighbour
        # upsamples become "read the stride-1 pool at lane i - delta(i)", delta in [0, s_max].
        a1d = jnp.concatenate([a1, a1], axis=0)   # rows 0..3: avgPool1 map, rows 4..7: avgPool2 map
        m1d = jnp.concatenate([m1, m1], axis=0)
        rr = jnp.concatenate([rw, rw], axis=0)

        acc_a = jnp.zeros_like(a1d)
        acc_m = jnp.zeros_like(m1d)
        for s in range(s_max + 1):
            mask = dlt == s
            acc_a = jnp.where(mask, _shift_right(a1d, s), acc_a)
            acc_m = jnp.where(mask, _shift_right(m1d, s), acc_m)

        # channel-contiguous, lane-dense (8, wl) slab stores (sublane-aligned)
        o_ref[b, :2 * NC, :] = acc_a + rr         # channels [up(avgPool1), up(avgPool2)] + res
        o_ref[b, 2 * NC:, :] = acc_m + rr         # channels [up(maxPool1), up(maxPool2)] + res


def derive_layer(x, weight, *, batch_tile=8):
    """DeriveLayer forward.  x: f32[B, max_len], weight: f32[1] -> f32[B, 16, width]."""
    x = jnp.asarray(x, jnp.float32)
    B, L = x.shape
    tb = batch_tile
    assert tb % 8 == 0, "batch tile must be a multiple of 8 sublanes"

    cut = max(1 << (SHIFT - 1), 1 << (SHIFT2 - 1))
    assert cut >= (1 << (SHIFT2 - 1)) + 1, "wrap-free slicing requires shift > shift2"
    W = L - cut - (POOL_K - 1)                    # == DeriveLayer.width
    assert W >= POOL_K, f"max_len={L} too short for poolKernel={POOL_K}"
    Wp = W - (POOL_K - 1)                         # stride-1 pool length inside MultiScale
    W2 = W // POOL_K                              # stride-POOL_K pool length
    rem = W - POOL_K * W2
    s_max = (POOL_K - 1) + rem                    # largest nearest-upsample lane shift

    WL = ((W + 127) // 128) * 128                 # lane-padded output width
    L_pad = cut + WL + 2 * (POOL_K - 1)           # lane-padded input width (>= L)
    B_pad = ((B + tb - 1) // tb) * tb

    xp = jnp.pad(x, ((0, B_pad - B), (0, L_pad - L)))

    # exact integer nearest-upsample shift tables (PyTorch 'nearest': src = (i * Lin) // Lout)
    idx = np.arange(WL)
    d1 = np.where(idx < W, idx - (idx * Wp) // W, -1)
    d2 = np.where(idx < W, idx - POOL_K * ((idx * W2) // W), -1)
    dlt = np.concatenate([np.tile(d1, (NC, 1)), np.tile(d2, (NC, 1))], axis=0)
    dlt = jnp.asarray(dlt.astype(np.int32))       # (2*NC, WL)

    w_arr = jnp.asarray(weight, jnp.float32).reshape(1, 1)

    kernel = functools.partial(_derive_kernel, tb=tb, wl=WL, cut=cut, s_max=s_max)
    grid = (B_pad // tb,)

    flops = int(B_pad) * WL * NC * (24 + 4 * (s_max + 1))
    bytes_accessed = 4 * (B_pad * L_pad + B_pad * N_OUT * WL + int(dlt.size) + 1)

    out = pl.pallas_call(
        kernel,
        out_shape=jax.ShapeDtypeStruct((B_pad, N_OUT, WL), jnp.float32),
        grid=grid,
        in_specs=[
            pl.BlockSpec((1, 1), lambda i: (0, 0)),              # scalar weight
            pl.BlockSpec((2 * NC, WL), lambda i: (0, 0)),        # shift tables (VMEM-resident)
            pl.BlockSpec((tb, L_pad), lambda i: (i, 0)),         # x batch tile
        ],
        out_specs=pl.BlockSpec((tb, N_OUT, WL), lambda i: (i, 0, 0)),
        compiler_params=pltpu.CompilerParams(
            dimension_semantics=("parallel",),
            vmem_limit_bytes=48 * 1024 * 1024,
        ),
        cost_estimate=pl.CostEstimate(flops=flops, transcendentals=0,
                                      bytes_accessed=bytes_accessed),
    )(w_arr, dlt, xp)

    return out[:B, :, :W]


def _reference(x, weight):
    """Pure-JAX transcription of the PyTorch forward (correctness check)."""
    B, L = x.shape
    cut = max(1 << (SHIFT - 1), 1 << (SHIFT2 - 1))
    rows = [x - jnp.roll(x, 1 << d1, axis=-1) for d1 in range(SHIFT)]
    d1row0 = rows[0]
    w = jnp.clip(jnp.asarray(weight, jnp.float32).reshape(-1)[0], -1.0, 1.0)
    for d2 in range(SHIFT2):
        rows.append((d1row0 - jnp.roll(d1row0, 1 << d2, axis=-1)) * w)
    res = jnp.stack(rows, axis=1)[:, :, cut:]

    def avgpool(a, k, s):
        n = (a.shape[-1] - k) // s + 1
        return jnp.stack([a[..., i * s:i * s + k].mean(-1) for i in range(n)], axis=-1)

    def maxpool(a, k, s):
        n = (a.shape[-1] - k) // s + 1
        return jnp.stack([a[..., i * s:i * s + k].max(-1) for i in range(n)], axis=-1)

    res = avgpool(res, POOL_K, 1)
    W = res.shape[-1]

    def up(a):
        idx = (np.arange(W) * a.shape[-1]) // W
        return a[..., idx]

    ms = [up(avgpool(res, POOL_K, 1)) + res,
          up(avgpool(res, POOL_K, POOL_K)) + res,
          up(maxpool(res, POOL_K, 1)) + res,
          up(maxpool(res, POOL_K, POOL_K)) + res]
    return jnp.concatenate(ms, axis=1)


if __name__ == "__main__":
    key = jax.random.PRNGKey(0)
    k1, k2 = jax.random.split(key)
    weight = jnp.array([WEIGHT_INIT], dtype=jnp.float32)

    # shape 1: small default test shape (width = 36, a multiple of poolKernel)
    B, max_len = 2, 48
    x = jax.random.normal(k1, (B, max_len), dtype=jnp.float32)
    out = jax.block_until_ready(derive_layer(x, weight))
    width = max_len - max(1 << (SHIFT - 1), 1 << (SHIFT2 - 1)) - POOL_K + 1
    assert out.shape == (B, N_OUT, width), out.shape
    ref = jax.block_until_ready(_reference(x, weight))
    np.testing.assert_allclose(np.asarray(out), np.asarray(ref), rtol=1e-4, atol=1e-5)

    # shape 2: width not a multiple of poolKernel (exercises the larger upsample shifts)
    B2, max_len2 = 3, 53
    x2 = jax.random.normal(k2, (B2, max_len2), dtype=jnp.float32)
    out2 = jax.block_until_ready(derive_layer(x2, weight))
    ref2 = jax.block_until_ready(_reference(x2, weight))
    np.testing.assert_allclose(np.asarray(out2), np.asarray(ref2), rtol=1e-4, atol=1e-5)

    print("KERNEL_OK")
</pallas_src>

<mosaic_0001>
module attributes {stable_mosaic.version = 11 : i64} {
  func.func @_derive_kernel(%arg0: i32, %arg1: memref<1x1xf32, #tpu.memory_space<vmem>>, %arg2: memref<8x128xi32, #tpu.memory_space<vmem>>, %arg3: memref<8x148xf32, #tpu.memory_space<vmem>>, %arg4: memref<8x16x128xf32, #tpu.memory_space<vmem>>) attributes {dimension_semantics = [#tpu.dimension_semantics<parallel>], iteration_bounds = array<i64: 1>, scalar_prefetch = 0 : i64, scratch_operands = 0 : i64, tpu.core_type = #tpu.core_type<tc>, window_params = [{pipeline_mode = #tpu.pipeline_mode<synchronous>, transform_indices = @transform_0, window_bounds = array<i64: 1, 1>}, {pipeline_mode = #tpu.pipeline_mode<synchronous>, transform_indices = @transform_1, window_bounds = array<i64: 8, 128>}, {transform_indices = @transform_2, window_bounds = array<i64: 8, 148>}, {transform_indices = @transform_3, window_bounds = array<i64: 8, 16, 128>}]} {
    %c0 = arith.constant 0 : index
    %c0_0 = arith.constant 0 : index
    %0 = vector.load %arg1[%c0, %c0_0] : memref<1x1xf32, #tpu.memory_space<vmem>>, vector<1x1xf32>
    %cst = arith.constant -1.000000e+00 : f32
    %cst_1 = arith.constant 1.000000e+00 : f32
    %1 = vector.broadcast %cst : f32 to vector<1x1xf32>
    %2 = arith.maximumf %1, %0 : vector<1x1xf32>
    %3 = vector.broadcast %cst_1 : f32 to vector<1x1xf32>
    %4 = arith.minimumf %3, %2 : vector<1x1xf32>
    %c0_2 = arith.constant 0 : index
    %c0_3 = arith.constant 0 : index
    %5 = vector.load %arg2[%c0_2, %c0_3] : memref<8x128xi32, #tpu.memory_space<vmem>>, vector<8x128xi32>
    %c0_4 = arith.constant 0 : index
    %c0_5 = arith.constant 0 : index
    %6 = vector.load %arg3[%c0_4, %c0_5] : memref<8x148xf32, #tpu.memory_space<vmem>>, vector<1x148xf32>
    %7 = vector.extract_strided_slice %6 {offsets = [0, 4], sizes = [1, 144], strides = [1, 1]} : vector<1x148xf32> to vector<1x144xf32>
    %8 = vector.extract_strided_slice %6 {offsets = [0, 3], sizes = [1, 144], strides = [1, 1]} : vector<1x148xf32> to vector<1x144xf32>
    %9 = arith.subf %7, %8 : vector<1x144xf32>
    %10 = vector.extract_strided_slice %6 {offsets = [0, 2], sizes = [1, 144], strides = [1, 1]} : vector<1x148xf32> to vector<1x144xf32>
    %11 = arith.subf %7, %10 : vector<1x144xf32>
    %12 = vector.extract_strided_slice %6 {offsets = [0, 0], sizes = [1, 144], strides = [1, 1]} : vector<1x148xf32> to vector<1x144xf32>
    %13 = arith.subf %7, %12 : vector<1x144xf32>
    %14 = vector.extract_strided_slice %6 {offsets = [0, 3], sizes = [1, 144], strides = [1, 1]} : vector<1x148xf32> to vector<1x144xf32>
    %15 = arith.subf %7, %14 : vector<1x144xf32>
    %16 = vector.extract_strided_slice %6 {offsets = [0, 3], sizes = [1, 144], strides = [1, 1]} : vector<1x148xf32> to vector<1x144xf32>
    %17 = arith.subf %15, %16 : vector<1x144xf32>
    %18 = vector.extract_strided_slice %6 {offsets = [0, 2], sizes = [1, 144], strides = [1, 1]} : vector<1x148xf32> to vector<1x144xf32>
    %19 = arith.addf %17, %18 : vector<1x144xf32>
    %20 = vector.broadcast %4 : vector<1x1xf32> to vector<1x144xf32>
    %21 = arith.mulf %19, %20 : vector<1x144xf32>
    %22 = tpu.concatenate %9, %11, %13, %21 in 0 : vector<1x144xf32>, vector<1x144xf32>, vector<1x144xf32>, vector<1x144xf32> -> vector<4x144xf32>
    %23 = vector.extract_strided_slice %22 {offsets = [0, 0], sizes = [4, 143], strides = [1, 1]} : vector<4x144xf32> to vector<4x143xf32>
    %24 = vector.extract_strided_slice %22 {offsets = [0, 1], sizes = [4, 143], strides = [1, 1]} : vector<4x144xf32> to vector<4x143xf32>
    %25 = arith.addf %23, %24 : vector<4x143xf32>
    %26 = vector.extract_strided_slice %25 {offsets = [0, 0], sizes = [4, 141], strides = [1, 1]} : vector<4x143xf32> to vector<4x141xf32>
    %27 = vector.extract_strided_slice %25 {offsets = [0, 2], sizes = [4, 141], strides = [1, 1]} : vector<4x143xf32> to vector<4x141xf32>
    %28 = arith.addf %26, %27 : vector<4x141xf32>
    %29 = vector.extract_strided_slice %28 {offsets = [0, 0], sizes = [4, 137], strides = [1, 1]} : vector<4x141xf32> to vector<4x137xf32>
    %30 = vector.extract_strided_slice %28 {offsets = [0, 4], sizes = [4, 137], strides = [1, 1]} : vector<4x141xf32> to vector<4x137xf32>
    %31 = arith.addf %29, %30 : vector<4x137xf32>
    %32 = vector.extract_strided_slice %31 {offsets = [0, 0], sizes = [4, 136], strides = [1, 1]} : vector<4x137xf32> to vector<4x136xf32>
    %33 = vector.extract_strided_slice %22 {offsets = [0, 8], sizes = [4, 136], strides = [1, 1]} : vector<4x144xf32> to vector<4x136xf32>
    %34 = arith.addf %32, %33 : vector<4x136xf32>
    %cst_6 = arith.constant 0.111111112 : f32
    %35 = vector.broadcast %cst_6 : f32 to vector<4x136xf32>
    %36 = arith.mulf %34, %35 : vector<4x136xf32>
    %37 = vector.extract_strided_slice %36 {offsets = [0, 0], sizes = [4, 135], strides = [1, 1]} : vector<4x136xf32> to vector<4x135xf32>
    %38 = vector.extract_strided_slice %36 {offsets = [0, 1], sizes = [4, 135], strides = [1, 1]} : vector<4x136xf32> to vector<4x135xf32>
    %39 = arith.addf %37, %38 : vector<4x135xf32>
    %40 = vector.extract_strided_slice %39 {offsets = [0, 0], sizes = [4, 133], strides = [1, 1]} : vector<4x135xf32> to vector<4x133xf32>
    %41 = vector.extract_strided_slice %39 {offsets = [0, 2], sizes = [4, 133], strides = [1, 1]} : vector<4x135xf32> to vector<4x133xf32>
    %42 = arith.addf %40, %41 : vector<4x133xf32>
    %43 = vector.extract_strided_slice %42 {offsets = [0, 0], sizes = [4, 129], strides = [1, 1]} : vector<4x133xf32> to vector<4x129xf32>
    %44 = vector.extract_strided_slice %42 {offsets = [0, 4], sizes = [4, 129], strides = [1, 1]} : vector<4x133xf32> to vector<4x129xf32>
    %45 = arith.addf %43, %44 : vector<4x129xf32>
    %46 = vector.extract_strided_slice %45 {offsets = [0, 0], sizes = [4, 128], strides = [1, 1]} : vector<4x129xf32> to vector<4x128xf32>
    %47 = vector.extract_strided_slice %36 {offsets = [0, 8], sizes = [4, 128], strides = [1, 1]} : vector<4x136xf32> to vector<4x128xf32>
    %48 = arith.addf %46, %47 : vector<4x128xf32>
    %cst_7 = arith.constant 0.111111112 : f32
    %49 = vector.broadcast %cst_7 : f32 to vector<4x128xf32>
    %50 = arith.mulf %48, %49 : vector<4x128xf32>
    %51 = vector.extract_strided_slice %36 {offsets = [0, 0], sizes = [4, 135], strides = [1, 1]} : vector<4x136xf32> to vector<4x135xf32>
    %52 = vector.extract_strided_slice %36 {offsets = [0, 1], sizes = [4, 135], strides = [1, 1]} : vector<4x136xf32> to vector<4x135xf32>
    %53 = arith.maximumf %51, %52 : vector<4x135xf32>
    %54 = vector.extract_strided_slice %53 {offsets = [0, 0], sizes = [4, 133], strides = [1, 1]} : vector<4x135xf32> to vector<4x133xf32>
    %55 = vector.extract_strided_slice %53 {offsets = [0, 2], sizes = [4, 133], strides = [1, 1]} : vector<4x135xf32> to vector<4x133xf32>
    %56 = arith.maximumf %54, %55 : vector<4x133xf32>
    %57 = vector.extract_strided_slice %56 {offsets = [0, 0], sizes = [4, 129], strides = [1, 1]} : vector<4x133xf32> to vector<4x129xf32>
    %58 = vector.extract_strided_slice %56 {offsets = [0, 4], sizes = [4, 129], strides = [1, 1]} : vector<4x133xf32> to vector<4x129xf32>
    %59 = arith.maximumf %57, %58 : vector<4x129xf32>
    %60 = vector.extract_strided_slice %59 {offsets = [0, 0], sizes = [4, 128], strides = [1, 1]} : vector<4x129xf32> to vector<4x128xf32>
    %61 = vector.extract_strided_slice %59 {offsets = [0, 1], sizes = [4, 128], strides = [1, 1]} : vector<4x129xf32> to vector<4x128xf32>
    %62 = arith.maximumf %60, %61 : vector<4x128xf32>
    %63 = vector.extract_strided_slice %36 {offsets = [0, 0], sizes = [4, 128], strides = [1, 1]} : vector<4x136xf32> to vector<4x128xf32>
    %64 = tpu.concatenate %50, %50 in 0 : vector<4x128xf32>, vector<4x128xf32> -> vector<8x128xf32>
    %65 = tpu.concatenate %62, %62 in 0 : vector<4x128xf32>, vector<4x128xf32> -> vector<8x128xf32>
    %66 = tpu.concatenate %63, %63 in 0 : vector<4x128xf32>, vector<4x128xf32> -> vector<8x128xf32>
    %cst_8 = arith.constant 0.000000e+00 : f32
    %67 = vector.broadcast %cst_8 : f32 to vector<8x128xf32>
    %cst_9 = arith.constant 0.000000e+00 : f32
    %68 = vector.broadcast %cst_9 : f32 to vector<8x128xf32>
    %c0_i32 = arith.constant 0 : i32
    %69 = vector.broadcast %c0_i32 : i32 to vector<8x128xi32>
    %70 = arith.cmpi eq, %5, %69 : vector<8x128xi32>
    %71 = arith.select %70, %64, %67 : vector<8x128xi1>, vector<8x128xf32>
    %72 = arith.select %70, %65, %68 : vector<8x128xi1>, vector<8x128xf32>
    %c1_i32 = arith.constant 1 : i32
    %73 = vector.broadcast %c1_i32 : i32 to vector<8x128xi32>
    %74 = arith.cmpi eq, %5, %73 : vector<8x128xi32>
    %cst_10 = arith.constant 0.000000e+00 : f32
    %75 = vector.broadcast %cst_10 : f32 to vector<8x1xf32>
    %76 = vector.extract_strided_slice %64 {offsets = [0, 0], sizes = [8, 127], strides = [1, 1]} : vector<8x128xf32> to vector<8x127xf32>
    %77 = tpu.concatenate %75, %76 in 1 : vector<8x1xf32>, vector<8x127xf32> -> vector<8x128xf32>
    %78 = arith.select %74, %77, %71 : vector<8x128xi1>, vector<8x128xf32>
    %cst_11 = arith.constant 0.000000e+00 : f32
    %79 = vector.broadcast %cst_11 : f32 to vector<8x1xf32>
    %80 = vector.extract_strided_slice %65 {offsets = [0, 0], sizes = [8, 127], strides = [1, 1]} : vector<8x128xf32> to vector<8x127xf32>
    %81 = tpu.concatenate %79, %80 in 1 : vector<8x1xf32>, vector<8x127xf32> -> vector<8x128xf32>
    %82 = arith.select %74, %81, %72 : vector<8x128xi1>, vector<8x128xf32>
    %c2_i32 = arith.constant 2 : i32
    %83 = vector.broadcast %c2_i32 : i32 to vector<8x128xi32>
    %84 = arith.cmpi eq, %5, %83 : vector<8x128xi32>
    %cst_12 = arith.constant 0.000000e+00 : f32
    %85 = vector.broadcast %cst_12 : f32 to vector<8x2xf32>
    %86 = vector.extract_strided_slice %64 {offsets = [0, 0], sizes = [8, 126], strides = [1, 1]} : vector<8x128xf32> to vector<8x126xf32>
    %87 = tpu.concatenate %85, %86 in 1 : vector<8x2xf32>, vector<8x126xf32> -> vector<8x128xf32>
    %88 = arith.select %84, %87, %78 : vector<8x128xi1>, vector<8x128xf32>
    %cst_13 = arith.constant 0.000000e+00 : f32
    %89 = vector.broadcast %cst_13 : f32 to vector<8x2xf32>
    %90 = vector.extract_strided_slice %65 {offsets = [0, 0], sizes = [8, 126], strides = [1, 1]} : vector<8x128xf32> to vector<8x126xf32>
    %91 = tpu.concatenate %89, %90 in 1 : vector<8x2xf32>, vector<8x126xf32> -> vector<8x128xf32>
    %92 = arith.select %84, %91, %82 : vector<8x128xi1>, vector<8x128xf32>
    %c3_i32 = arith.constant 3 : i32
    %93 = vector.broadcast %c3_i32 : i32 to vector<8x128xi32>
    %94 = arith.cmpi eq, %5, %93 : vector<8x128xi32>
    %cst_14 = arith.constant 0.000000e+00 : f32
    %95 = vector.broadcast %cst_14 : f32 to vector<8x3xf32>
    %96 = vector.extract_strided_slice %64 {offsets = [0, 0], sizes = [8, 125], strides = [1, 1]} : vector<8x128xf32> to vector<8x125xf32>
    %97 = tpu.concatenate %95, %96 in 1 : vector<8x3xf32>, vector<8x125xf32> -> vector<8x128xf32>
    %98 = arith.select %94, %97, %88 : vector<8x128xi1>, vector<8x128xf32>
    %cst_15 = arith.constant 0.000000e+00 : f32
    %99 = vector.broadcast %cst_15 : f32 to vector<8x3xf32>
    %100 = vector.extract_strided_slice %65 {offsets = [0, 0], sizes = [8, 125], strides = [1, 1]} : vector<8x128xf32> to vector<8x125xf32>
    %101 = tpu.concatenate %99, %100 in 1 : vector<8x3xf32>, vector<8x125xf32> -> vector<8x128xf32>
    %102 = arith.select %94, %101, %92 : vector<8x128xi1>, vector<8x128xf32>
    %c4_i32 = arith.constant 4 : i32
    %103 = vector.broadcast %c4_i32 : i32 to vector<8x128xi32>
    %104 = arith.cmpi eq, %5, %103 : vector<8x128xi32>
    %cst_16 = arith.constant 0.000000e+00 : f32
    %105 = vector.broadcast %cst_16 : f32 to vector<8x4xf32>
    %106 = vector.extract_strided_slice %64 {offsets = [0, 0], sizes = [8, 124], strides = [1, 1]} : vector<8x128xf32> to vector<8x124xf32>
    %107 = tpu.concatenate %105, %106 in 1 : vector<8x4xf32>, vector<8x124xf32> -> vector<8x128xf32>
    %108 = arith.select %104, %107, %98 : vector<8x128xi1>, vector<8x128xf32>
    %cst_17 = arith.constant 0.000000e+00 : f32
    %109 = vector.broadcast %cst_17 : f32 to vector<8x4xf32>
    %110 = vector.extract_strided_slice %65 {offsets = [0, 0], sizes = [8, 124], strides = [1, 1]} : vector<8x128xf32> to vector<8x124xf32>
    %111 = tpu.concatenate %109, %110 in 1 : vector<8x4xf32>, vector<8x124xf32> -> vector<8x128xf32>
    %112 = arith.select %104, %111, %102 : vector<8x128xi1>, vector<8x128xf32>
    %c5_i32 = arith.constant 5 : i32
    %113 = vector.broadcast %c5_i32 : i32 to vector<8x128xi32>
    %114 = arith.cmpi eq, %5, %113 : vector<8x128xi32>
    %cst_18 = arith.constant 0.000000e+00 : f32
    %115 = vector.broadcast %cst_18 : f32 to vector<8x5xf32>
    %116 = vector.extract_strided_slice %64 {offsets = [0, 0], sizes = [8, 123], strides = [1, 1]} : vector<8x128xf32> to vector<8x123xf32>
    %117 = tpu.concatenate %115, %116 in 1 : vector<8x5xf32>, vector<8x123xf32> -> vector<8x128xf32>
    %118 = arith.select %114, %117, %108 : vector<8x128xi1>, vector<8x128xf32>
    %cst_19 = arith.constant 0.000000e+00 : f32
    %119 = vector.broadcast %cst_19 : f32 to vector<8x5xf32>
    %120 = vector.extract_strided_slice %65 {offsets = [0, 0], sizes = [8, 123], strides = [1, 1]} : vector<8x128xf32> to vector<8x123xf32>
    %121 = tpu.concatenate %119, %120 in 1 : vector<8x5xf32>, vector<8x123xf32> -> vector<8x128xf32>
    %122 = arith.select %114, %121, %112 : vector<8x128xi1>, vector<8x128xf32>
    %c6_i32 = arith.constant 6 : i32
    %123 = vector.broadcast %c6_i32 : i32 to vector<8x128xi32>
    %124 = arith.cmpi eq, %5, %123 : vector<8x128xi32>
    %cst_20 = arith.constant 0.000000e+00 : f32
    %125 = vector.broadcast %cst_20 : f32 to vector<8x6xf32>
    %126 = vector.extract_strided_slice %64 {offsets = [0, 0], sizes = [8, 122], strides = [1, 1]} : vector<8x128xf32> to vector<8x122xf32>
    %127 = tpu.concatenate %125, %126 in 1 : vector<8x6xf32>, vector<8x122xf32> -> vector<8x128xf32>
    %128 = arith.select %124, %127, %118 : vector<8x128xi1>, vector<8x128xf32>
    %cst_21 = arith.constant 0.000000e+00 : f32
    %129 = vector.broadcast %cst_21 : f32 to vector<8x6xf32>
    %130 = vector.extract_strided_slice %65 {offsets = [0, 0], sizes = [8, 122], strides = [1, 1]} : vector<8x128xf32> to vector<8x122xf32>
    %131 = tpu.concatenate %129, %130 in 1 : vector<8x6xf32>, vector<8x122xf32> -> vector<8x128xf32>
    %132 = arith.select %124, %131, %122 : vector<8x128xi1>, vector<8x128xf32>
    %c7_i32 = arith.constant 7 : i32
    %133 = vector.broadcast %c7_i32 : i32 to vector<8x128xi32>
    %134 = arith.cmpi eq, %5, %133 : vector<8x128xi32>
    %cst_22 = arith.constant 0.000000e+00 : f32
    %135 = vector.broadcast %cst_22 : f32 to vector<8x7xf32>
    %136 = vector.extract_strided_slice %64 {offsets = [0, 0], sizes = [8, 121], strides = [1, 1]} : vector<8x128xf32> to vector<8x121xf32>
    %137 = tpu.concatenate %135, %136 in 1 : vector<8x7xf32>, vector<8x121xf32> -> vector<8x128xf32>
    %138 = arith.select %134, %137, %128 : vector<8x128xi1>, vector<8x128xf32>
    %cst_23 = arith.constant 0.000000e+00 : f32
    %139 = vector.broadcast %cst_23 : f32 to vector<8x7xf32>
    %140 = vector.extract_strided_slice %65 {offsets = [0, 0], sizes = [8, 121], strides = [1, 1]} : vector<8x128xf32> to vector<8x121xf32>
    %141 = tpu.concatenate %139, %140 in 1 : vector<8x7xf32>, vector<8x121xf32> -> vector<8x128xf32>
    %142 = arith.select %134, %141, %132 : vector<8x128xi1>, vector<8x128xf32>
    %c8_i32 = arith.constant 8 : i32
    %143 = vector.broadcast %c8_i32 : i32 to vector<8x128xi32>
    %144 = arith.cmpi eq, %5, %143 : vector<8x128xi32>
    %cst_24 = arith.constant 0.000000e+00 : f32
    %145 = vector.broadcast %cst_24 : f32 to vector<8x8xf32>
    %146 = vector.extract_strided_slice %64 {offsets = [0, 0], sizes = [8, 120], strides = [1, 1]} : vector<8x128xf32> to vector<8x120xf32>
    %147 = tpu.concatenate %145, %146 in 1 : vector<8x8xf32>, vector<8x120xf32> -> vector<8x128xf32>
    %148 = arith.select %144, %147, %138 : vector<8x128xi1>, vector<8x128xf32>
    %cst_25 = arith.constant 0.000000e+00 : f32
    %149 = vector.broadcast %cst_25 : f32 to vector<8x8xf32>
    %150 = vector.extract_strided_slice %65 {offsets = [0, 0], sizes = [8, 120], strides = [1, 1]} : vector<8x128xf32> to vector<8x120xf32>
    %151 = tpu.concatenate %149, %150 in 1 : vector<8x8xf32>, vector<8x120xf32> -> vector<8x128xf32>
    %152 = arith.select %144, %151, %142 : vector<8x128xi1>, vector<8x128xf32>
    %153 = arith.addf %148, %66 : vector<8x128xf32>
    %c0_26 = arith.constant 0 : index
    %c0_27 = arith.constant 0 : index
    %c0_28 = arith.constant 0 : index
    %154 = vector.load %arg4[%c0_26, %c0_27, %c0_28] : memref<8x16x128xf32, #tpu.memory_space<vmem>>, vector<1x8x128xf32>
    %155 = vector.shape_cast %154 : vector<1x8x128xf32> to vector<8x128xf32>
    %156 = vector.shape_cast %153 : vector<8x128xf32> to vector<1x8x128xf32>
    tpu.vector_store %arg4[%c0_26, %c0_27, %c0_28], %156 {strides = array<i32>} : memref<8x16x128xf32, #tpu.memory_space<vmem>>, vector<1x8x128xf32>,
    %157 = arith.addf %152, %66 : vector<8x128xf32>
    %c0_29 = arith.constant 0 : index
    %c8 = arith.constant 8 : index
    %c0_30 = arith.constant 0 : index
    %158 = vector.load %arg4[%c0_29, %c8, %c0_30] : memref<8x16x128xf32, #tpu.memory_space<vmem>>, vector<1x8x128xf32>
    %159 = vector.shape_cast %158 : vector<1x8x128xf32> to vector<8x128xf32>
    %160 = vector.shape_cast %157 : vector<8x128xf32> to vector<1x8x128xf32>
    tpu.vector_store %arg4[%c0_29, %c8, %c0_30], %160 {strides = array<i32>} : memref<8x16x128xf32, #tpu.memory_space<vmem>>, vector<1x8x128xf32>,
    %c1 = arith.constant 1 : index
    %c0_31 = arith.constant 0 : index
    %161 = vector.load %arg3[%c1, %c0_31] : memref<8x148xf32, #tpu.memory_space<vmem>>, vector<1x148xf32>
    %162 = vector.extract_strided_slice %161 {offsets = [0, 4], sizes = [1, 144], strides = [1, 1]} : vector<1x148xf32> to vector<1x144xf32>
    %163 = vector.extract_strided_slice %161 {offsets = [0, 3], sizes = [1, 144], strides = [1, 1]} : vector<1x148xf32> to vector<1x144xf32>
    %164 = arith.subf %162, %163 : vector<1x144xf32>
    %165 = vector.extract_strided_slice %161 {offsets = [0, 2], sizes = [1, 144], strides = [1, 1]} : vector<1x148xf32> to vector<1x144xf32>
    %166 = arith.subf %162, %165 : vector<1x144xf32>
    %167 = vector.extract_strided_slice %161 {offsets = [0, 0], sizes = [1, 144], strides = [1, 1]} : vector<1x148xf32> to vector<1x144xf32>
    %168 = arith.subf %162, %167 : vector<1x144xf32>
    %169 = vector.extract_strided_slice %161 {offsets = [0, 3], sizes = [1, 144], strides = [1, 1]} : vector<1x148xf32> to vector<1x144xf32>
    %170 = arith.subf %162, %169 : vector<1x144xf32>
    %171 = vector.extract_strided_slice %161 {offsets = [0, 3], sizes = [1, 144], strides = [1, 1]} : vector<1x148xf32> to vector<1x144xf32>
    %172 = arith.subf %170, %171 : vector<1x144xf32>
    %173 = vector.extract_strided_slice %161 {offsets = [0, 2], sizes = [1, 144], strides = [1, 1]} : vector<1x148xf32> to vector<1x144xf32>
    %174 = arith.addf %172, %173 : vector<1x144xf32>
    %175 = vector.broadcast %4 : vector<1x1xf32> to vector<1x144xf32>
    %176 = arith.mulf %174, %175 : vector<1x144xf32>
    %177 = tpu.concatenate %164, %166, %168, %176 in 0 : vector<1x144xf32>, vector<1x144xf32>, vector<1x144xf32>, vector<1x144xf32> -> vector<4x144xf32>
    %178 = vector.extract_strided_slice %177 {offsets = [0, 0], sizes = [4, 143], strides = [1, 1]} : vector<4x144xf32> to vector<4x143xf32>
    %179 = vector.extract_strided_slice %177 {offsets = [0, 1], sizes = [4, 143], strides = [1, 1]} : vector<4x144xf32> to vector<4x143xf32>
    %180 = arith.addf %178, %179 : vector<4x143xf32>
    %181 = vector.extract_strided_slice %180 {offsets = [0, 0], sizes = [4, 141], strides = [1, 1]} : vector<4x143xf32> to vector<4x141xf32>
    %182 = vector.extract_strided_slice %180 {offsets = [0, 2], sizes = [4, 141], strides = [1, 1]} : vector<4x143xf32> to vector<4x141xf32>
    %183 = arith.addf %181, %182 : vector<4x141xf32>
    %184 = vector.extract_strided_slice %183 {offsets = [0, 0], sizes = [4, 137], strides = [1, 1]} : vector<4x141xf32> to vector<4x137xf32>
    %185 = vector.extract_strided_slice %183 {offsets = [0, 4], sizes = [4, 137], strides = [1, 1]} : vector<4x141xf32> to vector<4x137xf32>
    %186 = arith.addf %184, %185 : vector<4x137xf32>
    %187 = vector.extract_strided_slice %186 {offsets = [0, 0], sizes = [4, 136], strides = [1, 1]} : vector<4x137xf32> to vector<4x136xf32>
    %188 = vector.extract_strided_slice %177 {offsets = [0, 8], sizes = [4, 136], strides = [1, 1]} : vector<4x144xf32> to vector<4x136xf32>
    %189 = arith.addf %187, %188 : vector<4x136xf32>
    %cst_32 = arith.constant 0.111111112 : f32
    %190 = vector.broadcast %cst_32 : f32 to vector<4x136xf32>
    %191 = arith.mulf %189, %190 : vector<4x136xf32>
    %192 = vector.extract_strided_slice %191 {offsets = [0, 0], sizes = [4, 135], strides = [1, 1]} : vector<4x136xf32> to vector<4x135xf32>
    %193 = vector.extract_strided_slice %191 {offsets = [0, 1], sizes = [4, 135], strides = [1, 1]} : vector<4x136xf32> to vector<4x135xf32>
    %194 = arith.addf %192, %193 : vector<4x135xf32>
    %195 = vector.extract_strided_slice %194 {offsets = [0, 0], sizes = [4, 133], strides = [1, 1]} : vector<4x135xf32> to vector<4x133xf32>
    %196 = vector.extract_strided_slice %194 {offsets = [0, 2], sizes = [4, 133], strides = [1, 1]} : vector<4x135xf32> to vector<4x133xf32>
    %197 = arith.addf %195, %196 : vector<4x133xf32>
    %198 = vector.extract_strided_slice %197 {offsets = [0, 0], sizes = [4, 129], strides = [1, 1]} : vector<4x133xf32> to vector<4x129xf32>
    %199 = vector.extract_strided_slice %197 {offsets = [0, 4], sizes = [4, 129], strides = [1, 1]} : vector<4x133xf32> to vector<4x129xf32>
    %200 = arith.addf %198, %199 : vector<4x129xf32>
    %201 = vector.extract_strided_slice %200 {offsets = [0, 0], sizes = [4, 128], strides = [1, 1]} : vector<4x129xf32> to vector<4x128xf32>
    %202 = vector.extract_strided_slice %191 {offsets = [0, 8], sizes = [4, 128], strides = [1, 1]} : vector<4x136xf32> to vector<4x128xf32>
    %203 = arith.addf %201, %202 : vector<4x128xf32>
    %cst_33 = arith.constant 0.111111112 : f32
    %204 = vector.broadcast %cst_33 : f32 to vector<4x128xf32>
    %205 = arith.mulf %203, %204 : vector<4x128xf32>
    %206 = vector.extract_strided_slice %191 {offsets = [0, 0], sizes = [4, 135], strides = [1, 1]} : vector<4x136xf32> to vector<4x135xf32>
    %207 = vector.extract_strided_slice %191 {offsets = [0, 1], sizes = [4, 135], strides = [1, 1]} : vector<4x136xf32> to vector<4x135xf32>
    %208 = arith.maximumf %206, %207 : vector<4x135xf32>
    %209 = vector.extract_strided_slice %208 {offsets = [0, 0], sizes = [4, 133], strides = [1, 1]} : vector<4x135xf32> to vector<4x133xf32>
    %210 = vector.extract_strided_slice %208 {offsets = [0, 2], sizes = [4, 133], strides = [1, 1]} : vector<4x135xf32> to vector<4x133xf32>
    %211 = arith.maximumf %209, %210 : vector<4x133xf32>
    %212 = vector.extract_strided_slice %211 {offsets = [0, 0], sizes = [4, 129], strides = [1, 1]} : vector<4x133xf32> to vector<4x129xf32>
    %213 = vector.extract_strided_slice %211 {offsets = [0, 4], sizes = [4, 129], strides = [1, 1]} : vector<4x133xf32> to vector<4x129xf32>
    %214 = arith.maximumf %212, %213 : vector<4x129xf32>
    %215 = vector.extract_strided_slice %214 {offsets = [0, 0], sizes = [4, 128], strides = [1, 1]} : vector<4x129xf32> to vector<4x128xf32>
    %216 = vector.extract_strided_slice %214 {offsets = [0, 1], sizes = [4, 128], strides = [1, 1]} : vector<4x129xf32> to vector<4x128xf32>
    %217 = arith.maximumf %215, %216 : vector<4x128xf32>
    %218 = vector.extract_strided_slice %191 {offsets = [0, 0], sizes = [4, 128], strides = [1, 1]} : vector<4x136xf32> to vector<4x128xf32>
    %219 = tpu.concatenate %205, %205 in 0 : vector<4x128xf32>, vector<4x128xf32> -> vector<8x128xf32>
    %220 = tpu.concatenate %217, %217 in 0 : vector<4x128xf32>, vector<4x128xf32> -> vector<8x128xf32>
    %221 = tpu.concatenate %218, %218 in 0 : vector<4x128xf32>, vector<4x128xf32> -> vector<8x128xf32>
    %cst_34 = arith.constant 0.000000e+00 : f32
    %222 = vector.broadcast %cst_34 : f32 to vector<8x128xf32>
    %cst_35 = arith.constant 0.000000e+00 : f32
    %223 = vector.broadcast %cst_35 : f32 to vector<8x128xf32>
    %c0_i32_36 = arith.constant 0 : i32
    %224 = vector.broadcast %c0_i32_36 : i32 to vector<8x128xi32>
    %225 = arith.cmpi eq, %5, %224 : vector<8x128xi32>
    %226 = arith.select %225, %219, %222 : vector<8x128xi1>, vector<8x128xf32>
    %227 = arith.select %225, %220, %223 : vector<8x128xi1>, vector<8x128xf32>
    %c1_i32_37 = arith.constant 1 : i32
    %228 = vector.broadcast %c1_i32_37 : i32 to vector<8x128xi32>
    %229 = arith.cmpi eq, %5, %228 : vector<8x128xi32>
    %cst_38 = arith.constant 0.000000e+00 : f32
    %230 = vector.broadcast %cst_38 : f32 to vector<8x1xf32>
    %231 = vector.extract_strided_slice %219 {offsets = [0, 0], sizes = [8, 127], strides = [1, 1]} : vector<8x128xf32> to vector<8x127xf32>
    %232 = tpu.concatenate %230, %231 in 1 : vector<8x1xf32>, vector<8x127xf32> -> vector<8x128xf32>
    %233 = arith.select %229, %232, %226 : vector<8x128xi1>, vector<8x128xf32>
    %cst_39 = arith.constant 0.000000e+00 : f32
    %234 = vector.broadcast %cst_39 : f32 to vector<8x1xf32>
    %235 = vector.extract_strided_slice %220 {offsets = [0, 0], sizes = [8, 127], strides = [1, 1]} : vector<8x128xf32> to vector<8x127xf32>
    %236 = tpu.concatenate %234, %235 in 1 : vector<8x1xf32>, vector<8x127xf32> -> vector<8x128xf32>
    %237 = arith.select %229, %236, %227 : vector<8x128xi1>, vector<8x128xf32>
    %c2_i32_40 = arith.constant 2 : i32
    %238 = vector.broadcast %c2_i32_40 : i32 to vector<8x128xi32>
    %239 = arith.cmpi eq, %5, %238 : vector<8x128xi32>
    %cst_41 = arith.constant 0.000000e+00 : f32
    %240 = vector.broadcast %cst_41 : f32 to vector<8x2xf32>
    %241 = vector.extract_strided_slice %219 {offsets = [0, 0], sizes = [8, 126], strides = [1, 1]} : vector<8x128xf32> to vector<8x126xf32>
    %242 = tpu.concatenate %240, %241 in 1 : vector<8x2xf32>, vector<8x126xf32> -> vector<8x128xf32>
    %243 = arith.select %239, %242, %233 : vector<8x128xi1>, vector<8x128xf32>
    %cst_42 = arith.constant 0.000000e+00 : f32
    %244 = vector.broadcast %cst_42 : f32 to vector<8x2xf32>
    %245 = vector.extract_strided_slice %220 {offsets = [0, 0], sizes = [8, 126], strides = [1, 1]} : vector<8x128xf32> to vector<8x126xf32>
    %246 = tpu.concatenate %244, %245 in 1 : vector<8x2xf32>, vector<8x126xf32> -> vector<8x128xf32>
    %247 = arith.select %239, %246, %237 : vector<8x128xi1>, vector<8x128xf32>
    %c3_i32_43 = arith.constant 3 : i32
    %248 = vector.broadcast %c3_i32_43 : i32 to vector<8x128xi32>
    %249 = arith.cmpi eq, %5, %248 : vector<8x128xi32>
    %cst_44 = arith.constant 0.000000e+00 : f32
    %250 = vector.broadcast %cst_44 : f32 to vector<8x3xf32>
    %251 = vector.extract_strided_slice %219 {offsets = [0, 0], sizes = [8, 125], strides = [1, 1]} : vector<8x128xf32> to vector<8x125xf32>
    %252 = tpu.concatenate %250, %251 in 1 : vector<8x3xf32>, vector<8x125xf32> -> vector<8x128xf32>
    %253 = arith.select %249, %252, %243 : vector<8x128xi1>, vector<8x128xf32>
    %cst_45 = arith.constant 0.000000e+00 : f32
    %254 = vector.broadcast %cst_45 : f32 to vector<8x3xf32>
    %255 = vector.extract_strided_slice %220 {offsets = [0, 0], sizes = [8, 125], strides = [1, 1]} : vector<8x128xf32> to vector<8x125xf32>
    %256 = tpu.concatenate %254, %255 in 1 : vector<8x3xf32>, vector<8x125xf32> -> vector<8x128xf32>
    %257 = arith.select %249, %256, %247 : vector<8x128xi1>, vector<8x128xf32>
    %c4_i32_46 = arith.constant 4 : i32
    %258 = vector.broadcast %c4_i32_46 : i32 to vector<8x128xi32>
    %259 = arith.cmpi eq, %5, %258 : vector<8x128xi32>
    %cst_47 = arith.constant 0.000000e+00 : f32
    %260 = vector.broadcast %cst_47 : f32 to vector<8x4xf32>
    %261 = vector.extract_strided_slice %219 {offsets = [0, 0], sizes = [8, 124], strides = [1, 1]} : vector<8x128xf32> to vector<8x124xf32>
    %262 = tpu.concatenate %260, %261 in 1 : vector<8x4xf32>, vector<8x124xf32> -> vector<8x128xf32>
    %263 = arith.select %259, %262, %253 : vector<8x128xi1>, vector<8x128xf32>
    %cst_48 = arith.constant 0.000000e+00 : f32
    %264 = vector.broadcast %cst_48 : f32 to vector<8x4xf32>
    %265 = vector.extract_strided_slice %220 {offsets = [0, 0], sizes = [8, 124], strides = [1, 1]} : vector<8x128xf32> to vector<8x124xf32>
    %266 = tpu.concatenate %264, %265 in 1 : vector<8x4xf32>, vector<8x124xf32> -> vector<8x128xf32>
    %267 = arith.select %259, %266, %257 : vector<8x128xi1>, vector<8x128xf32>
    %c5_i32_49 = arith.constant 5 : i32
    %268 = vector.broadcast %c5_i32_49 : i32 to vector<8x128xi32>
    %269 = arith.cmpi eq, %5, %268 : vector<8x128xi32>
    %cst_50 = arith.constant 0.000000e+00 : f32
    %270 = vector.broadcast %cst_50 : f32 to vector<8x5xf32>
    %271 = vector.extract_strided_slice %219 {offsets = [0, 0], sizes = [8, 123], strides = [1, 1]} : vector<8x128xf32> to vector<8x123xf32>
    %272 = tpu.concatenate %270, %271 in 1 : vector<8x5xf32>, vector<8x123xf32> -> vector<8x128xf32>
    %273 = arith.select %269, %272, %263 : vector<8x128xi1>, vector<8x128xf32>
    %cst_51 = arith.constant 0.000000e+00 : f32
    %274 = vector.broadcast %cst_51 : f32 to vector<8x5xf32>
    %275 = vector.extract_strided_slice %220 {offsets = [0, 0], sizes = [8, 123], strides = [1, 1]} : vector<8x128xf32> to vector<8x123xf32>
    %276 = tpu.concatenate %274, %275 in 1 : vector<8x5xf32>, vector<8x123xf32> -> vector<8x128xf32>
    %277 = arith.select %269, %276, %267 : vector<8x128xi1>, vector<8x128xf32>
    %c6_i32_52 = arith.constant 6 : i32
    %278 = vector.broadcast %c6_i32_52 : i32 to vector<8x128xi32>
    %279 = arith.cmpi eq, %5, %278 : vector<8x128xi32>
    %cst_53 = arith.constant 0.000000e+00 : f32
    %280 = vector.broadcast %cst_53 : f32 to vector<8x6xf32>
    %281 = vector.extract_strided_slice %219 {offsets = [0, 0], sizes = [8, 122], strides = [1, 1]} : vector<8x128xf32> to vector<8x122xf32>
    %282 = tpu.concatenate %280, %281 in 1 : vector<8x6xf32>, vector<8x122xf32> -> vector<8x128xf32>
    %283 = arith.select %279, %282, %273 : vector<8x128xi1>, vector<8x128xf32>
    %cst_54 = arith.constant 0.000000e+00 : f32
    %284 = vector.broadcast %cst_54 : f32 to vector<8x6xf32>
    %285 = vector.extract_strided_slice %220 {offsets = [0, 0], sizes = [8, 122], strides = [1, 1]} : vector<8x128xf32> to vector<8x122xf32>
    %286 = tpu.concatenate %284, %285 in 1 : vector<8x6xf32>, vector<8x122xf32> -> vector<8x128xf32>
    %287 = arith.select %279, %286, %277 : vector<8x128xi1>, vector<8x128xf32>
    %c7_i32_55 = arith.constant 7 : i32
    %288 = vector.broadcast %c7_i32_55 : i32 to vector<8x128xi32>
    %289 = arith.cmpi eq, %5, %288 : vector<8x128xi32>
    %cst_56 = arith.constant 0.000000e+00 : f32
    %290 = vector.broadcast %cst_56 : f32 to vector<8x7xf32>
    %291 = vector.extract_strided_slice %219 {offsets = [0, 0], sizes = [8, 121], strides = [1, 1]} : vector<8x128xf32> to vector<8x121xf32>
    %292 = tpu.concatenate %290, %291 in 1 : vector<8x7xf32>, vector<8x121xf32> -> vector<8x128xf32>
    %293 = arith.select %289, %292, %283 : vector<8x128xi1>, vector<8x128xf32>
    %cst_57 = arith.constant 0.000000e+00 : f32
    %294 = vector.broadcast %cst_57 : f32 to vector<8x7xf32>
    %295 = vector.extract_strided_slice %220 {offsets = [0, 0], sizes = [8, 121], strides = [1, 1]} : vector<8x128xf32> to vector<8x121xf32>
    %296 = tpu.concatenate %294, %295 in 1 : vector<8x7xf32>, vector<8x121xf32> -> vector<8x128xf32>
    %297 = arith.select %289, %296, %287 : vector<8x128xi1>, vector<8x128xf32>
    %c8_i32_58 = arith.constant 8 : i32
    %298 = vector.broadcast %c8_i32_58 : i32 to vector<8x128xi32>
    %299 = arith.cmpi eq, %5, %298 : vector<8x128xi32>
    %cst_59 = arith.constant 0.000000e+00 : f32
    %300 = vector.broadcast %cst_59 : f32 to vector<8x8xf32>
    %301 = vector.extract_strided_slice %219 {offsets = [0, 0], sizes = [8, 120], strides = [1, 1]} : vector<8x128xf32> to vector<8x120xf32>
    %302 = tpu.concatenate %300, %301 in 1 : vector<8x8xf32>, vector<8x120xf32> -> vector<8x128xf32>
    %303 = arith.select %299, %302, %293 : vector<8x128xi1>, vector<8x128xf32>
    %cst_60 = arith.constant 0.000000e+00 : f32
    %304 = vector.broadcast %cst_60 : f32 to vector<8x8xf32>
    %305 = vector.extract_strided_slice %220 {offsets = [0, 0], sizes = [8, 120], strides = [1, 1]} : vector<8x128xf32> to vector<8x120xf32>
    %306 = tpu.concatenate %304, %305 in 1 : vector<8x8xf32>, vector<8x120xf32> -> vector<8x128xf32>
    %307 = arith.select %299, %306, %297 : vector<8x128xi1>, vector<8x128xf32>
    %308 = arith.addf %303, %221 : vector<8x128xf32>
    %c1_61 = arith.constant 1 : index
    %c0_62 = arith.constant 0 : index
    %c0_63 = arith.constant 0 : index
    %309 = vector.load %arg4[%c1_61, %c0_62, %c0_63] : memref<8x16x128xf32, #tpu.memory_space<vmem>>, vector<1x8x128xf32>
    %310 = vector.shape_cast %309 : vector<1x8x128xf32> to vector<8x128xf32>
    %311 = vector.shape_cast %308 : vector<8x128xf32> to vector<1x8x128xf32>
    tpu.vector_store %arg4[%c1_61, %c0_62, %c0_63], %311 {strides = array<i32>} : memref<8x16x128xf32, #tpu.memory_space<vmem>>, vector<1x8x128xf32>,
    %312 = arith.addf %307, %221 : vector<8x128xf32>
    %c1_64 = arith.constant 1 : index
    %c8_65 = arith.constant 8 : index
    %c0_66 = arith.constant 0 : index
    %313 = vector.load %arg4[%c1_64, %c8_65, %c0_66] : memref<8x16x128xf32, #tpu.memory_space<vmem>>, vector<1x8x128xf32>
    %314 = vector.shape_cast %313 : vector<1x8x128xf32> to vector<8x128xf32>
    %315 = vector.shape_cast %312 : vector<8x128xf32> to vector<1x8x128xf32>
    tpu.vector_store %arg4[%c1_64, %c8_65, %c0_66], %315 {strides = array<i32>} : memref<8x16x128xf32, #tpu.memory_space<vmem>>, vector<1x8x128xf32>,
    %c2 = arith.constant 2 : index
    %c0_67 = arith.constant 0 : index
    %316 = vector.load %arg3[%c2, %c0_67] : memref<8x148xf32, #tpu.memory_space<vmem>>, vector<1x148xf32>
    %317 = vector.extract_strided_slice %316 {offsets = [0, 4], sizes = [1, 144], strides = [1, 1]} : vector<1x148xf32> to vector<1x144xf32>
    %318 = vector.extract_strided_slice %316 {offsets = [0, 3], sizes = [1, 144], strides = [1, 1]} : vector<1x148xf32> to vector<1x144xf32>
    %319 = arith.subf %317, %318 : vector<1x144xf32>
    %320 = vector.extract_strided_slice %316 {offsets = [0, 2], sizes = [1, 144], strides = [1, 1]} : vector<1x148xf32> to vector<1x144xf32>
    %321 = arith.subf %317, %320 : vector<1x144xf32>
    %322 = vector.extract_strided_slice %316 {offsets = [0, 0], sizes = [1, 144], strides = [1, 1]} : vector<1x148xf32> to vector<1x144xf32>
    %323 = arith.subf %317, %322 : vector<1x144xf32>
    %324 = vector.extract_strided_slice %316 {offsets = [0, 3], sizes = [1, 144], strides = [1, 1]} : vector<1x148xf32> to vector<1x144xf32>
    %325 = arith.subf %317, %324 : vector<1x144xf32>
    %326 = vector.extract_strided_slice %316 {offsets = [0, 3], sizes = [1, 144], strides = [1, 1]} : vector<1x148xf32> to vector<1x144xf32>
    %327 = arith.subf %325, %326 : vector<1x144xf32>
    %328 = vector.extract_strided_slice %316 {offsets = [0, 2], sizes = [1, 144], strides = [1, 1]} : vector<1x148xf32> to vector<1x144xf32>
    %329 = arith.addf %327, %328 : vector<1x144xf32>
    %330 = vector.broadcast %4 : vector<1x1xf32> to vector<1x144xf32>
    %331 = arith.mulf %329, %330 : vector<1x144xf32>
    %332 = tpu.concatenate %319, %321, %323, %331 in 0 : vector<1x144xf32>, vector<1x144xf32>, vector<1x144xf32>, vector<1x144xf32> -> vector<4x144xf32>
    %333 = vector.extract_strided_slice %332 {offsets = [0, 0], sizes = [4, 143], strides = [1, 1]} : vector<4x144xf32> to vector<4x143xf32>
    %334 = vector.extract_strided_slice %332 {offsets = [0, 1], sizes = [4, 143], strides = [1, 1]} : vector<4x144xf32> to vector<4x143xf32>
    %335 = arith.addf %333, %334 : vector<4x143xf32>
    %336 = vector.extract_strided_slice %335 {offsets = [0, 0], sizes = [4, 141], strides = [1, 1]} : vector<4x143xf32> to vector<4x141xf32>
    %337 = vector.extract_strided_slice %335 {offsets = [0, 2], sizes = [4, 141], strides = [1, 1]} : vector<4x143xf32> to vector<4x141xf32>
    %338 = arith.addf %336, %337 : vector<4x141xf32>
    %339 = vector.extract_strided_slice %338 {offsets = [0, 0], sizes = [4, 137], strides = [1, 1]} : vector<4x141xf32> to vector<4x137xf32>
    %340 = vector.extract_strided_slice %338 {offsets = [0, 4], sizes = [4, 137], strides = [1, 1]} : vector<4x141xf32> to vector<4x137xf32>
    %341 = arith.addf %339, %340 : vector<4x137xf32>
    %342 = vector.extract_strided_slice %341 {offsets = [0, 0], sizes = [4, 136], strides = [1, 1]} : vector<4x137xf32> to vector<4x136xf32>
    %343 = vector.extract_strided_slice %332 {offsets = [0, 8], sizes = [4, 136], strides = [1, 1]} : vector<4x144xf32> to vector<4x136xf32>
    %344 = arith.addf %342, %343 : vector<4x136xf32>
    %cst_68 = arith.constant 0.111111112 : f32
    %345 = vector.broadcast %cst_68 : f32 to vector<4x136xf32>
    %346 = arith.mulf %344, %345 : vector<4x136xf32>
    %347 = vector.extract_strided_slice %346 {offsets = [0, 0], sizes = [4, 135], strides = [1, 1]} : vector<4x136xf32> to vector<4x135xf32>
    %348 = vector.extract_strided_slice %346 {offsets = [0, 1], sizes = [4, 135], strides = [1, 1]} : vector<4x136xf32> to vector<4x135xf32>
    %349 = arith.addf %347, %348 : vector<4x135xf32>
    %350 = vector.extract_strided_slice %349 {offsets = [0, 0], sizes = [4, 133], strides = [1, 1]} : vector<4x135xf32> to vector<4x133xf32>
    %351 = vector.extract_strided_slice %349 {offsets = [0, 2], sizes = [4, 133], strides = [1, 1]} : vector<4x135xf32> to vector<4x133xf32>
    %352 = arith.addf %350, %351 : vector<4x133xf32>
    %353 = vector.extract_strided_slice %352 {offsets = [0, 0], sizes = [4, 129], strides = [1, 1]} : vector<4x133xf32> to vector<4x129xf32>
    %354 = vector.extract_strided_slice %352 {offsets = [0, 4], sizes = [4, 129], strides = [1, 1]} : vector<4x133xf32> to vector<4x129xf32>
    %355 = arith.addf %353, %354 : vector<4x129xf32>
    %356 = vector.extract_strided_slice %355 {offsets = [0, 0], sizes = [4, 128], strides = [1, 1]} : vector<4x129xf32> to vector<4x128xf32>
    %357 = vector.extract_strided_slice %346 {offsets = [0, 8], sizes = [4, 128], strides = [1, 1]} : vector<4x136xf32> to vector<4x128xf32>
    %358 = arith.addf %356, %357 : vector<4x128xf32>
    %cst_69 = arith.constant 0.111111112 : f32
    %359 = vector.broadcast %cst_69 : f32 to vector<4x128xf32>
    %360 = arith.mulf %358, %359 : vector<4x128xf32>
    %361 = vector.extract_strided_slice %346 {offsets = [0, 0], sizes = [4, 135], strides = [1, 1]} : vector<4x136xf32> to vector<4x135xf32>
    %362 = vector.extract_strided_slice %346 {offsets = [0, 1], sizes = [4, 135], strides = [1, 1]} : vector<4x136xf32> to vector<4x135xf32>
    %363 = arith.maximumf %361, %362 : vector<4x135xf32>
    %364 = vector.extract_strided_slice %363 {offsets = [0, 0], sizes = [4, 133], strides = [1, 1]} : vector<4x135xf32> to vector<4x133xf32>
    %365 = vector.extract_strided_slice %363 {offsets = [0, 2], sizes = [4, 133], strides = [1, 1]} : vector<4x135xf32> to vector<4x133xf32>
    %366 = arith.maximumf %364, %365 : vector<4x133xf32>
    %367 = vector.extract_strided_slice %366 {offsets = [0, 0], sizes = [4, 129], strides = [1, 1]} : vector<4x133xf32> to vector<4x129xf32>
    %368 = vector.extract_strided_slice %366 {offsets = [0, 4], sizes = [4, 129], strides = [1, 1]} : vector<4x133xf32> to vector<4x129xf32>
    %369 = arith.maximumf %367, %368 : vector<4x129xf32>
    %370 = vector.extract_strided_slice %369 {offsets = [0, 0], sizes = [4, 128], strides = [1, 1]} : vector<4x129xf32> to vector<4x128xf32>
    %371 = vector.extract_strided_slice %369 {offsets = [0, 1], sizes = [4, 128], strides = [1, 1]} : vector<4x129xf32> to vector<4x128xf32>
    %372 = arith.maximumf %370, %371 : vector<4x128xf32>
    %373 = vector.extract_strided_slice %346 {offsets = [0, 0], sizes = [4, 128], strides = [1, 1]} : vector<4x136xf32> to vector<4x128xf32>
    %374 = tpu.concatenate %360, %360 in 0 : vector<4x128xf32>, vector<4x128xf32> -> vector<8x128xf32>
    %375 = tpu.concatenate %372, %372 in 0 : vector<4x128xf32>, vector<4x128xf32> -> vector<8x128xf32>
    %376 = tpu.concatenate %373, %373 in 0 : vector<4x128xf32>, vector<4x128xf32> -> vector<8x128xf32>
    %cst_70 = arith.constant 0.000000e+00 : f32
    %377 = vector.broadcast %cst_70 : f32 to vector<8x128xf32>
    %cst_71 = arith.constant 0.000000e+00 : f32
    %378 = vector.broadcast %cst_71 : f32 to vector<8x128xf32>
    %c0_i32_72 = arith.constant 0 : i32
    %379 = vector.broadcast %c0_i32_72 : i32 to vector<8x128xi32>
    %380 = arith.cmpi eq, %5, %379 : vector<8x128xi32>
    %381 = arith.select %380, %374, %377 : vector<8x128xi1>, vector<8x128xf32>
    %382 = arith.select %380, %375, %378 : vector<8x128xi1>, vector<8x128xf32>
    %c1_i32_73 = arith.constant 1 : i32
    %383 = vector.broadcast %c1_i32_73 : i32 to vector<8x128xi32>
    %384 = arith.cmpi eq, %5, %383 : vector<8x128xi32>
    %cst_74 = arith.constant 0.000000e+00 : f32
    %385 = vector.broadcast %cst_74 : f32 to vector<8x1xf32>
    %386 = vector.extract_strided_slice %374 {offsets = [0, 0], sizes = [8, 127], strides = [1, 1]} : vector<8x128xf32> to vector<8x127xf32>
    %387 = tpu.concatenate %385, %386 in 1 : vector<8x1xf32>, vector<8x127xf32> -> vector<8x128xf32>
    %388 = arith.select %384, %387, %381 : vector<8x128xi1>, vector<8x128xf32>
    %cst_75 = arith.constant 0.000000e+00 : f32
    %389 = vector.broadcast %cst_75 : f32 to vector<8x1xf32>
    %390 = vector.extract_strided_slice %375 {offsets = [0, 0], sizes = [8, 127], strides = [1, 1]} : vector<8x128xf32> to vector<8x127xf32>
    %391 = tpu.concatenate %389, %390 in 1 : vector<8x1xf32>, vector<8x127xf32> -> vector<8x128xf32>
    %392 = arith.select %384, %391, %382 : vector<8x128xi1>, vector<8x128xf32>
    %c2_i32_76 = arith.constant 2 : i32
    %393 = vector.broadcast %c2_i32_76 : i32 to vector<8x128xi32>
    %394 = arith.cmpi eq, %5, %393 : vector<8x128xi32>
    %cst_77 = arith.constant 0.000000e+00 : f32
    %395 = vector.broadcast %cst_77 : f32 to vector<8x2xf32>
    %396 = vector.extract_strided_slice %374 {offsets = [0, 0], sizes = [8, 126], strides = [1, 1]} : vector<8x128xf32> to vector<8x126xf32>
    %397 = tpu.concatenate %395, %396 in 1 : vector<8x2xf32>, vector<8x126xf32> -> vector<8x128xf32>
    %398 = arith.select %394, %397, %388 : vector<8x128xi1>, vector<8x128xf32>
    %cst_78 = arith.constant 0.000000e+00 : f32
    %399 = vector.broadcast %cst_78 : f32 to vector<8x2xf32>
    %400 = vector.extract_strided_slice %375 {offsets = [0, 0], sizes = [8, 126], strides = [1, 1]} : vector<8x128xf32> to vector<8x126xf32>
    %401 = tpu.concatenate %399, %400 in 1 : vector<8x2xf32>, vector<8x126xf32> -> vector<8x128xf32>
    %402 = arith.select %394, %401, %392 : vector<8x128xi1>, vector<8x128xf32>
    %c3_i32_79 = arith.constant 3 : i32
    %403 = vector.broadcast %c3_i32_79 : i32 to vector<8x128xi32>
    %404 = arith.cmpi eq, %5, %403 : vector<8x128xi32>
    %cst_80 = arith.constant 0.000000e+00 : f32
    %405 = vector.broadcast %cst_80 : f32 to vector<8x3xf32>
    %406 = vector.extract_strided_slice %374 {offsets = [0, 0], sizes = [8, 125], strides = [1, 1]} : vector<8x128xf32> to vector<8x125xf32>
    %407 = tpu.concatenate %405, %406 in 1 : vector<8x3xf32>, vector<8x125xf32> -> vector<8x128xf32>
    %408 = arith.select %404, %407, %398 : vector<8x128xi1>, vector<8x128xf32>
    %cst_81 = arith.constant 0.000000e+00 : f32
    %409 = vector.broadcast %cst_81 : f32 to vector<8x3xf32>
    %410 = vector.extract_strided_slice %375 {offsets = [0, 0], sizes = [8, 125], strides = [1, 1]} : vector<8x128xf32> to vector<8x125xf32>
    %411 = tpu.concatenate %409, %410 in 1 : vector<8x3xf32>, vector<8x125xf32> -> vector<8x128xf32>
    %412 = arith.select %404, %411, %402 : vector<8x128xi1>, vector<8x128xf32>
    %c4_i32_82 = arith.constant 4 : i32
    %413 = vector.broadcast %c4_i32_82 : i32 to vector<8x128xi32>
    %414 = arith.cmpi eq, %5, %413 : vector<8x128xi32>
    %cst_83 = arith.constant 0.000000e+00 : f32
    %415 = vector.broadcast %cst_83 : f32 to vector<8x4xf32>
    %416 = vector.extract_strided_slice %374 {offsets = [0, 0], sizes = [8, 124], strides = [1, 1]} : vector<8x128xf32> to vector<8x124xf32>
    %417 = tpu.concatenate %415, %416 in 1 : vector<8x4xf32>, vector<8x124xf32> -> vector<8x128xf32>
    %418 = arith.select %414, %417, %408 : vector<8x128xi1>, vector<8x128xf32>
    %cst_84 = arith.constant 0.000000e+00 : f32
    %419 = vector.broadcast %cst_84 : f32 to vector<8x4xf32>
    %420 = vector.extract_strided_slice %375 {offsets = [0, 0], sizes = [8, 124], strides = [1, 1]} : vector<8x128xf32> to vector<8x124xf32>
    %421 = tpu.concatenate %419, %420 in 1 : vector<8x4xf32>, vector<8x124xf32> -> vector<8x128xf32>
    %422 = arith.select %414, %421, %412 : vector<8x128xi1>, vector<8x128xf32>
    %c5_i32_85 = arith.constant 5 : i32
    %423 = vector.broadcast %c5_i32_85 : i32 to vector<8x128xi32>
    %424 = arith.cmpi eq, %5, %423 : vector<8x128xi32>
    %cst_86 = arith.constant 0.000000e+00 : f32
    %425 = vector.broadcast %cst_86 : f32 to vector<8x5xf32>
    %426 = vector.extract_strided_slice %374 {offsets = [0, 0], sizes = [8, 123], strides = [1, 1]} : vector<8x128xf32> to vector<8x123xf32>
    %427 = tpu.concatenate %425, %426 in 1 : vector<8x5xf32>, vector<8x123xf32> -> vector<8x128xf32>
    %428 = arith.select %424, %427, %418 : vector<8x128xi1>, vector<8x128xf32>
    %cst_87 = arith.constant 0.000000e+00 : f32
    %429 = vector.broadcast %cst_87 : f32 to vector<8x5xf32>
    %430 = vector.extract_strided_slice %375 {offsets = [0, 0], sizes = [8, 123], strides = [1, 1]} : vector<8x128xf32> to vector<8x123xf32>
    %431 = tpu.concatenate %429, %430 in 1 : vector<8x5xf32>, vector<8x123xf32> -> vector<8x128xf32>
    %432 = arith.select %424, %431, %422 : vector<8x128xi1>, vector<8x128xf32>
    %c6_i32_88 = arith.constant 6 : i32
    %433 = vector.broadcast %c6_i32_88 : i32 to vector<8x128xi32>
    %434 = arith.cmpi eq, %5, %433 : vector<8x128xi32>
    %cst_89 = arith.constant 0.000000e+00 : f32
    %435 = vector.broadcast %cst_89 : f32 to vector<8x6xf32>
    %436 = vector.extract_strided_slice %374 {offsets = [0, 0], sizes = [8, 122], strides = [1, 1]} : vector<8x128xf32> to vector<8x122xf32>
    %437 = tpu.concatenate %435, %436 in 1 : vector<8x6xf32>, vector<8x122xf32> -> vector<8x128xf32>
    %438 = arith.select %434, %437, %428 : vector<8x128xi1>, vector<8x128xf32>
    %cst_90 = arith.constant 0.000000e+00 : f32
    %439 = vector.broadcast %cst_90 : f32 to vector<8x6xf32>
    %440 = vector.extract_strided_slice %375 {offsets = [0, 0], sizes = [8, 122], strides = [1, 1]} : vector<8x128xf32> to vector<8x122xf32>
    %441 = tpu.concatenate %439, %440 in 1 : vector<8x6xf32>, vector<8x122xf32> -> vector<8x128xf32>
    %442 = arith.select %434, %441, %432 : vector<8x128xi1>, vector<8x128xf32>
    %c7_i32_91 = arith.constant 7 : i32
    %443 = vector.broadcast %c7_i32_91 : i32 to vector<8x128xi32>
    %444 = arith.cmpi eq, %5, %443 : vector<8x128xi32>
    %cst_92 = arith.constant 0.000000e+00 : f32
    %445 = vector.broadcast %cst_92 : f32 to vector<8x7xf32>
    %446 = vector.extract_strided_slice %374 {offsets = [0, 0], sizes = [8, 121], strides = [1, 1]} : vector<8x128xf32> to vector<8x121xf32>
    %447 = tpu.concatenate %445, %446 in 1 : vector<8x7xf32>, vector<8x121xf32> -> vector<8x128xf32>
    %448 = arith.select %444, %447, %438 : vector<8x128xi1>, vector<8x128xf32>
    %cst_93 = arith.constant 0.000000e+00 : f32
    %449 = vector.broadcast %cst_93 : f32 to vector<8x7xf32>
    %450 = vector.extract_strided_slice %375 {offsets = [0, 0], sizes = [8, 121], strides = [1, 1]} : vector<8x128xf32> to vector<8x121xf32>
    %451 = tpu.concatenate %449, %450 in 1 : vector<8x7xf32>, vector<8x121xf32> -> vector<8x128xf32>
    %452 = arith.select %444, %451, %442 : vector<8x128xi1>, vector<8x128xf32>
    %c8_i32_94 = arith.constant 8 : i32
    %453 = vector.broadcast %c8_i32_94 : i32 to vector<8x128xi32>
    %454 = arith.cmpi eq, %5, %453 : vector<8x128xi32>
    %cst_95 = arith.constant 0.000000e+00 : f32
    %455 = vector.broadcast %cst_95 : f32 to vector<8x8xf32>
    %456 = vector.extract_strided_slice %374 {offsets = [0, 0], sizes = [8, 120], strides = [1, 1]} : vector<8x128xf32> to vector<8x120xf32>
    %457 = tpu.concatenate %455, %456 in 1 : vector<8x8xf32>, vector<8x120xf32> -> vector<8x128xf32>
    %458 = arith.select %454, %457, %448 : vector<8x128xi1>, vector<8x128xf32>
    %cst_96 = arith.constant 0.000000e+00 : f32
    %459 = vector.broadcast %cst_96 : f32 to vector<8x8xf32>
    %460 = vector.extract_strided_slice %375 {offsets = [0, 0], sizes = [8, 120], strides = [1, 1]} : vector<8x128xf32> to vector<8x120xf32>
    %461 = tpu.concatenate %459, %460 in 1 : vector<8x8xf32>, vector<8x120xf32> -> vector<8x128xf32>
    %462 = arith.select %454, %461, %452 : vector<8x128xi1>, vector<8x128xf32>
    %463 = arith.addf %458, %376 : vector<8x128xf32>
    %c2_97 = arith.constant 2 : index
    %c0_98 = arith.constant 0 : index
    %c0_99 = arith.constant 0 : index
    %464 = vector.load %arg4[%c2_97, %c0_98, %c0_99] : memref<8x16x128xf32, #tpu.memory_space<vmem>>, vector<1x8x128xf32>
    %465 = vector.shape_cast %464 : vector<1x8x128xf32> to vector<8x128xf32>
    %466 = vector.shape_cast %463 : vector<8x128xf32> to vector<1x8x128xf32>
    tpu.vector_store %arg4[%c2_97, %c0_98, %c0_99], %466 {strides = array<i32>} : memref<8x16x128xf32, #tpu.memory_space<vmem>>, vector<1x8x128xf32>,
    %467 = arith.addf %462, %376 : vector<8x128xf32>
    %c2_100 = arith.constant 2 : index
    %c8_101 = arith.constant 8 : index
    %c0_102 = arith.constant 0 : index
    %468 = vector.load %arg4[%c2_100, %c8_101, %c0_102] : memref<8x16x128xf32, #tpu.memory_space<vmem>>, vector<1x8x128xf32>
    %469 = vector.shape_cast %468 : vector<1x8x128xf32> to vector<8x128xf32>
    %470 = vector.shape_cast %467 : vector<8x128xf32> to vector<1x8x128xf32>
    tpu.vector_store %arg4[%c2_100, %c8_101, %c0_102], %470 {strides = array<i32>} : memref<8x16x128xf32, #tpu.memory_space<vmem>>, vector<1x8x128xf32>,
    %c3 = arith.constant 3 : index
    %c0_103 = arith.constant 0 : index
    %471 = vector.load %arg3[%c3, %c0_103] : memref<8x148xf32, #tpu.memory_space<vmem>>, vector<1x148xf32>
    %472 = vector.extract_strided_slice %471 {offsets = [0, 4], sizes = [1, 144], strides = [1, 1]} : vector<1x148xf32> to vector<1x144xf32>
    %473 = vector.extract_strided_slice %471 {offsets = [0, 3], sizes = [1, 144], strides = [1, 1]} : vector<1x148xf32> to vector<1x144xf32>
    %474 = arith.subf %472, %473 : vector<1x144xf32>
    %475 = vector.extract_strided_slice %471 {offsets = [0, 2], sizes = [1, 144], strides = [1, 1]} : vector<1x148xf32> to vector<1x144xf32>
    %476 = arith.subf %472, %475 : vector<1x144xf32>
    %477 = vector.extract_strided_slice %471 {offsets = [0, 0], sizes = [1, 144], strides = [1, 1]} : vector<1x148xf32> to vector<1x144xf32>
    %478 = arith.subf %472, %477 : vector<1x144xf32>
    %479 = vector.extract_strided_slice %471 {offsets = [0, 3], sizes = [1, 144], strides = [1, 1]} : vector<1x148xf32> to vector<1x144xf32>
    %480 = arith.subf %472, %479 : vector<1x144xf32>
    %481 = vector.extract_strided_slice %471 {offsets = [0, 3], sizes = [1, 144], strides = [1, 1]} : vector<1x148xf32> to vector<1x144xf32>
    %482 = arith.subf %480, %481 : vector<1x144xf32>
    %483 = vector.extract_strided_slice %471 {offsets = [0, 2], sizes = [1, 144], strides = [1, 1]} : vector<1x148xf32> to vector<1x144xf32>
    %484 = arith.addf %482, %483 : vector<1x144xf32>
    %485 = vector.broadcast %4 : vector<1x1xf32> to vector<1x144xf32>
    %486 = arith.mulf %484, %485 : vector<1x144xf32>
    %487 = tpu.concatenate %474, %476, %478, %486 in 0 : vector<1x144xf32>, vector<1x144xf32>, vector<1x144xf32>, vector<1x144xf32> -> vector<4x144xf32>
    %488 = vector.extract_strided_slice %487 {offsets = [0, 0], sizes = [4, 143], strides = [1, 1]} : vector<4x144xf32> to vector<4x143xf32>
    %489 = vector.extract_strided_slice %487 {offsets = [0, 1], sizes = [4, 143], strides = [1, 1]} : vector<4x144xf32> to vector<4x143xf32>
    %490 = arith.addf %488, %489 : vector<4x143xf32>
    %491 = vector.extract_strided_slice %490 {offsets = [0, 0], sizes = [4, 141], strides = [1, 1]} : vector<4x143xf32> to vector<4x141xf32>
    %492 = vector.extract_strided_slice %490 {offsets = [0, 2], sizes = [4, 141], strides = [1, 1]} : vector<4x143xf32> to vector<4x141xf32>
    %493 = arith.addf %491, %492 : vector<4x141xf32>
    %494 = vector.extract_strided_slice %493 {offsets = [0, 0], sizes = [4, 137], strides = [1, 1]} : vector<4x141xf32> to vector<4x137xf32>
    %495 = vector.extract_strided_slice %493 {offsets = [0, 4], sizes = [4, 137], strides = [1, 1]} : vector<4x141xf32> to vector<4x137xf32>
    %496 = arith.addf %494, %495 : vector<4x137xf32>
    %497 = vector.extract_strided_slice %496 {offsets = [0, 0], sizes = [4, 136], strides = [1, 1]} : vector<4x137xf32> to vector<4x136xf32>
    %498 = vector.extract_strided_slice %487 {offsets = [0, 8], sizes = [4, 136], strides = [1, 1]} : vector<4x144xf32> to vector<4x136xf32>
    %499 = arith.addf %497, %498 : vector<4x136xf32>
    %cst_104 = arith.constant 0.111111112 : f32
    %500 = vector.broadcast %cst_104 : f32 to vector<4x136xf32>
    %501 = arith.mulf %499, %500 : vector<4x136xf32>
    %502 = vector.extract_strided_slice %501 {offsets = [0, 0], sizes = [4, 135], strides = [1, 1]} : vector<4x136xf32> to vector<4x135xf32>
    %503 = vector.extract_strided_slice %501 {offsets = [0, 1], sizes = [4, 135], strides = [1, 1]} : vector<4x136xf32> to vector<4x135xf32>
    %504 = arith.addf %502, %503 : vector<4x135xf32>
    %505 = vector.extract_strided_slice %504 {offsets = [0, 0], sizes = [4, 133], strides = [1, 1]} : vector<4x135xf32> to vector<4x133xf32>
    %506 = vector.extract_strided_slice %504 {offsets = [0, 2], sizes = [4, 133], strides = [1, 1]} : vector<4x135xf32> to vector<4x133xf32>
    %507 = arith.addf %505, %506 : vector<4x133xf32>
    %508 = vector.extract_strided_slice %507 {offsets = [0, 0], sizes = [4, 129], strides = [1, 1]} : vector<4x133xf32> to vector<4x129xf32>
    %509 = vector.extract_strided_slice %507 {offsets = [0, 4], sizes = [4, 129], strides = [1, 1]} : vector<4x133xf32> to vector<4x129xf32>
    %510 = arith.addf %508, %509 : vector<4x129xf32>
    %511 = vector.extract_strided_slice %510 {offsets = [0, 0], sizes = [4, 128], strides = [1, 1]} : vector<4x129xf32> to vector<4x128xf32>
    %512 = vector.extract_strided_slice %501 {offsets = [0, 8], sizes = [4, 128], strides = [1, 1]} : vector<4x136xf32> to vector<4x128xf32>
    %513 = arith.addf %511, %512 : vector<4x128xf32>
    %cst_105 = arith.constant 0.111111112 : f32
    %514 = vector.broadcast %cst_105 : f32 to vector<4x128xf32>
    %515 = arith.mulf %513, %514 : vector<4x128xf32>
    %516 = vector.extract_strided_slice %501 {offsets = [0, 0], sizes = [4, 135], strides = [1, 1]} : vector<4x136xf32> to vector<4x135xf32>
    %517 = vector.extract_strided_slice %501 {offsets = [0, 1], sizes = [4, 135], strides = [1, 1]} : vector<4x136xf32> to vector<4x135xf32>
    %518 = arith.maximumf %516, %517 : vector<4x135xf32>
    %519 = vector.extract_strided_slice %518 {offsets = [0, 0], sizes = [4, 133], strides = [1, 1]} : vector<4x135xf32> to vector<4x133xf32>
    %520 = vector.extract_strided_slice %518 {offsets = [0, 2], sizes = [4, 133], strides = [1, 1]} : vector<4x135xf32> to vector<4x133xf32>
    %521 = arith.maximumf %519, %520 : vector<4x133xf32>
    %522 = vector.extract_strided_slice %521 {offsets = [0, 0], sizes = [4, 129], strides = [1, 1]} : vector<4x133xf32> to vector<4x129xf32>
    %523 = vector.extract_strided_slice %521 {offsets = [0, 4], sizes = [4, 129], strides = [1, 1]} : vector<4x133xf32> to vector<4x129xf32>
    %524 = arith.maximumf %522, %523 : vector<4x129xf32>
    %525 = vector.extract_strided_slice %524 {offsets = [0, 0], sizes = [4, 128], strides = [1, 1]} : vector<4x129xf32> to vector<4x128xf32>
    %526 = vector.extract_strided_slice %524 {offsets = [0, 1], sizes = [4, 128], strides = [1, 1]} : vector<4x129xf32> to vector<4x128xf32>
    %527 = arith.maximumf %525, %526 : vector<4x128xf32>
    %528 = vector.extract_strided_slice %501 {offsets = [0, 0], sizes = [4, 128], strides = [1, 1]} : vector<4x136xf32> to vector<4x128xf32>
    %529 = tpu.concatenate %515, %515 in 0 : vector<4x128xf32>, vector<4x128xf32> -> vector<8x128xf32>
    %530 = tpu.concatenate %527, %527 in 0 : vector<4x128xf32>, vector<4x128xf32> -> vector<8x128xf32>
    %531 = tpu.concatenate %528, %528 in 0 : vector<4x128xf32>, vector<4x128xf32> -> vector<8x128xf32>
    %cst_106 = arith.constant 0.000000e+00 : f32
    %532 = vector.broadcast %cst_106 : f32 to vector<8x128xf32>
    %cst_107 = arith.constant 0.000000e+00 : f32
    %533 = vector.broadcast %cst_107 : f32 to vector<8x128xf32>
    %c0_i32_108 = arith.constant 0 : i32
    %534 = vector.broadcast %c0_i32_108 : i32 to vector<8x128xi32>
    %535 = arith.cmpi eq, %5, %534 : vector<8x128xi32>
    %536 = arith.select %535, %529, %532 : vector<8x128xi1>, vector<8x128xf32>
    %537 = arith.select %535, %530, %533 : vector<8x128xi1>, vector<8x128xf32>
    %c1_i32_109 = arith.constant 1 : i32
    %538 = vector.broadcast %c1_i32_109 : i32 to vector<8x128xi32>
    %539 = arith.cmpi eq, %5, %538 : vector<8x128xi32>
    %cst_110 = arith.constant 0.000000e+00 : f32
    %540 = vector.broadcast %cst_110 : f32 to vector<8x1xf32>
    %541 = vector.extract_strided_slice %529 {offsets = [0, 0], sizes = [8, 127], strides = [1, 1]} : vector<8x128xf32> to vector<8x127xf32>
    %542 = tpu.concatenate %540, %541 in 1 : vector<8x1xf32>, vector<8x127xf32> -> vector<8x128xf32>
    %543 = arith.select %539, %542, %536 : vector<8x128xi1>, vector<8x128xf32>
    %cst_111 = arith.constant 0.000000e+00 : f32
    %544 = vector.broadcast %cst_111 : f32 to vector<8x1xf32>
    %545 = vector.extract_strided_slice %530 {offsets = [0, 0], sizes = [8, 127], strides = [1, 1]} : vector<8x128xf32> to vector<8x127xf32>
    %546 = tpu.concatenate %544, %545 in 1 : vector<8x1xf32>, vector<8x127xf32> -> vector<8x128xf32>
    %547 = arith.select %539, %546, %537 : vector<8x128xi1>, vector<8x128xf32>
    %c2_i32_112 = arith.constant 2 : i32
    %548 = vector.broadcast %c2_i32_112 : i32 to vector<8x128xi32>
    %549 = arith.cmpi eq, %5, %548 : vector<8x128xi32>
    %cst_113 = arith.constant 0.000000e+00 : f32
    %550 = vector.broadcast %cst_113 : f32 to vector<8x2xf32>
    %551 = vector.extract_strided_slice %529 {offsets = [0, 0], sizes = [8, 126], strides = [1, 1]} : vector<8x128xf32> to vector<8x126xf32>
    %552 = tpu.concatenate %550, %551 in 1 : vector<8x2xf32>, vector<8x126xf32> -> vector<8x128xf32>
    %553 = arith.select %549, %552, %543 : vector<8x128xi1>, vector<8x128xf32>
    %cst_114 = arith.constant 0.000000e+00 : f32
    %554 = vector.broadcast %cst_114 : f32 to vector<8x2xf32>
    %555 = vector.extract_strided_slice %530 {offsets = [0, 0], sizes = [8, 126], strides = [1, 1]} : vector<8x128xf32> to vector<8x126xf32>
    %556 = tpu.concatenate %554, %555 in 1 : vector<8x2xf32>, vector<8x126xf32> -> vector<8x128xf32>
    %557 = arith.select %549, %556, %547 : vector<8x128xi1>, vector<8x128xf32>
    %c3_i32_115 = arith.constant 3 : i32
    %558 = vector.broadcast %c3_i32_115 : i32 to vector<8x128xi32>
    %559 = arith.cmpi eq, %5, %558 : vector<8x128xi32>
    %cst_116 = arith.constant 0.000000e+00 : f32
    %560 = vector.broadcast %cst_116 : f32 to vector<8x3xf32>
    %561 = vector.extract_strided_slice %529 {offsets = [0, 0], sizes = [8, 125], strides = [1, 1]} : vector<8x128xf32> to vector<8x125xf32>
    %562 = tpu.concatenate %560, %561 in 1 : vector<8x3xf32>, vector<8x125xf32> -> vector<8x128xf32>
    %563 = arith.select %559, %562, %553 : vector<8x128xi1>, vector<8x128xf32>
    %cst_117 = arith.constant 0.000000e+00 : f32
    %564 = vector.broadcast %cst_117 : f32 to vector<8x3xf32>
    %565 = vector.extract_strided_slice %530 {offsets = [0, 0], sizes = [8, 125], strides = [1, 1]} : vector<8x128xf32> to vector<8x125xf32>
    %566 = tpu.concatenate %564, %565 in 1 : vector<8x3xf32>, vector<8x125xf32> -> vector<8x128xf32>
    %567 = arith.select %559, %566, %557 : vector<8x128xi1>, vector<8x128xf32>
    %c4_i32_118 = arith.constant 4 : i32
    %568 = vector.broadcast %c4_i32_118 : i32 to vector<8x128xi32>
    %569 = arith.cmpi eq, %5, %568 : vector<8x128xi32>
    %cst_119 = arith.constant 0.000000e+00 : f32
    %570 = vector.broadcast %cst_119 : f32 to vector<8x4xf32>
    %571 = vector.extract_strided_slice %529 {offsets = [0, 0], sizes = [8, 124], strides = [1, 1]} : vector<8x128xf32> to vector<8x124xf32>
    %572 = tpu.concatenate %570, %571 in 1 : vector<8x4xf32>, vector<8x124xf32> -> vector<8x128xf32>
    %573 = arith.select %569, %572, %563 : vector<8x128xi1>, vector<8x128xf32>
    %cst_120 = arith.constant 0.000000e+00 : f32
    %574 = vector.broadcast %cst_120 : f32 to vector<8x4xf32>
    %575 = vector.extract_strided_slice %530 {offsets = [0, 0], sizes = [8, 124], strides = [1, 1]} : vector<8x128xf32> to vector<8x124xf32>
    %576 = tpu.concatenate %574, %575 in 1 : vector<8x4xf32>, vector<8x124xf32> -> vector<8x128xf32>
    %577 = arith.select %569, %576, %567 : vector<8x128xi1>, vector<8x128xf32>
    %c5_i32_121 = arith.constant 5 : i32
    %578 = vector.broadcast %c5_i32_121 : i32 to vector<8x128xi32>
    %579 = arith.cmpi eq, %5, %578 : vector<8x128xi32>
    %cst_122 = arith.constant 0.000000e+00 : f32
    %580 = vector.broadcast %cst_122 : f32 to vector<8x5xf32>
    %581 = vector.extract_strided_slice %529 {offsets = [0, 0], sizes = [8, 123], strides = [1, 1]} : vector<8x128xf32> to vector<8x123xf32>
    %582 = tpu.concatenate %580, %581 in 1 : vector<8x5xf32>, vector<8x123xf32> -> vector<8x128xf32>
    %583 = arith.select %579, %582, %573 : vector<8x128xi1>, vector<8x128xf32>
    %cst_123 = arith.constant 0.000000e+00 : f32
    %584 = vector.broadcast %cst_123 : f32 to vector<8x5xf32>
    %585 = vector.extract_strided_slice %530 {offsets = [0, 0], sizes = [8, 123], strides = [1, 1]} : vector<8x128xf32> to vector<8x123xf32>
    %586 = tpu.concatenate %584, %585 in 1 : vector<8x5xf32>, vector<8x123xf32> -> vector<8x128xf32>
    %587 = arith.select %579, %586, %577 : vector<8x128xi1>, vector<8x128xf32>
    %c6_i32_124 = arith.constant 6 : i32
    %588 = vector.broadcast %c6_i32_124 : i32 to vector<8x128xi32>
    %589 = arith.cmpi eq, %5, %588 : vector<8x128xi32>
    %cst_125 = arith.constant 0.000000e+00 : f32
    %590 = vector.broadcast %cst_125 : f32 to vector<8x6xf32>
    %591 = vector.extract_strided_slice %529 {offsets = [0, 0], sizes = [8, 122], strides = [1, 1]} : vector<8x128xf32> to vector<8x122xf32>
    %592 = tpu.concatenate %590, %591 in 1 : vector<8x6xf32>, vector<8x122xf32> -> vector<8x128xf32>
    %593 = arith.select %589, %592, %583 : vector<8x128xi1>, vector<8x128xf32>
    %cst_126 = arith.constant 0.000000e+00 : f32
    %594 = vector.broadcast %cst_126 : f32 to vector<8x6xf32>
    %595 = vector.extract_strided_slice %530 {offsets = [0, 0], sizes = [8, 122], strides = [1, 1]} : vector<8x128xf32> to vector<8x122xf32>
    %596 = tpu.concatenate %594, %595 in 1 : vector<8x6xf32>, vector<8x122xf32> -> vector<8x128xf32>
    %597 = arith.select %589, %596, %587 : vector<8x128xi1>, vector<8x128xf32>
    %c7_i32_127 = arith.constant 7 : i32
    %598 = vector.broadcast %c7_i32_127 : i32 to vector<8x128xi32>
    %599 = arith.cmpi eq, %5, %598 : vector<8x128xi32>
    %cst_128 = arith.constant 0.000000e+00 : f32
    %600 = vector.broadcast %cst_128 : f32 to vector<8x7xf32>
    %601 = vector.extract_strided_slice %529 {offsets = [0, 0], sizes = [8, 121], strides = [1, 1]} : vector<8x128xf32> to vector<8x121xf32>
    %602 = tpu.concatenate %600, %601 in 1 : vector<8x7xf32>, vector<8x121xf32> -> vector<8x128xf32>
    %603 = arith.select %599, %602, %593 : vector<8x128xi1>, vector<8x128xf32>
    %cst_129 = arith.constant 0.000000e+00 : f32
    %604 = vector.broadcast %cst_129 : f32 to vector<8x7xf32>
    %605 = vector.extract_strided_slice %530 {offsets = [0, 0], sizes = [8, 121], strides = [1, 1]} : vector<8x128xf32> to vector<8x121xf32>
    %606 = tpu.concatenate %604, %605 in 1 : vector<8x7xf32>, vector<8x121xf32> -> vector<8x128xf32>
    %607 = arith.select %599, %606, %597 : vector<8x128xi1>, vector<8x128xf32>
    %c8_i32_130 = arith.constant 8 : i32
    %608 = vector.broadcast %c8_i32_130 : i32 to vector<8x128xi32>
    %609 = arith.cmpi eq, %5, %608 : vector<8x128xi32>
    %cst_131 = arith.constant 0.000000e+00 : f32
    %610 = vector.broadcast %cst_131 : f32 to vector<8x8xf32>
    %611 = vector.extract_strided_slice %529 {offsets = [0, 0], sizes = [8, 120], strides = [1, 1]} : vector<8x128xf32> to vector<8x120xf32>
    %612 = tpu.concatenate %610, %611 in 1 : vector<8x8xf32>, vector<8x120xf32> -> vector<8x128xf32>
    %613 = arith.select %609, %612, %603 : vector<8x128xi1>, vector<8x128xf32>
    %cst_132 = arith.constant 0.000000e+00 : f32
    %614 = vector.broadcast %cst_132 : f32 to vector<8x8xf32>
    %615 = vector.extract_strided_slice %530 {offsets = [0, 0], sizes = [8, 120], strides = [1, 1]} : vector<8x128xf32> to vector<8x120xf32>
    %616 = tpu.concatenate %614, %615 in 1 : vector<8x8xf32>, vector<8x120xf32> -> vector<8x128xf32>
    %617 = arith.select %609, %616, %607 : vector<8x128xi1>, vector<8x128xf32>
    %618 = arith.addf %613, %531 : vector<8x128xf32>
    %c3_133 = arith.constant 3 : index
    %c0_134 = arith.constant 0 : index
    %c0_135 = arith.constant 0 : index
    %619 = vector.load %arg4[%c3_133, %c0_134, %c0_135] : memref<8x16x128xf32, #tpu.memory_space<vmem>>, vector<1x8x128xf32>
    %620 = vector.shape_cast %619 : vector<1x8x128xf32> to vector<8x128xf32>
    %621 = vector.shape_cast %618 : vector<8x128xf32> to vector<1x8x128xf32>
    tpu.vector_store %arg4[%c3_133, %c0_134, %c0_135], %621 {strides = array<i32>} : memref<8x16x128xf32, #tpu.memory_space<vmem>>, vector<1x8x128xf32>,
    %622 = arith.addf %617, %531 : vector<8x128xf32>
    %c3_136 = arith.constant 3 : index
    %c8_137 = arith.constant 8 : index
    %c0_138 = arith.constant 0 : index
    %623 = vector.load %arg4[%c3_136, %c8_137, %c0_138] : memref<8x16x128xf32, #tpu.memory_space<vmem>>, vector<1x8x128xf32>
    %624 = vector.shape_cast %623 : vector<1x8x128xf32> to vector<8x128xf32>
    %625 = vector.shape_cast %622 : vector<8x128xf32> to vector<1x8x128xf32>
    tpu.vector_store %arg4[%c3_136, %c8_137, %c0_138], %625 {strides = array<i32>} : memref<8x16x128xf32, #tpu.memory_space<vmem>>, vector<1x8x128xf32>,
    %c4 = arith.constant 4 : index
    %c0_139 = arith.constant 0 : index
    %626 = vector.load %arg3[%c4, %c0_139] : memref<8x148xf32, #tpu.memory_space<vmem>>, vector<1x148xf32>
    %627 = vector.extract_strided_slice %626 {offsets = [0, 4], sizes = [1, 144], strides = [1, 1]} : vector<1x148xf32> to vector<1x144xf32>
    %628 = vector.extract_strided_slice %626 {offsets = [0, 3], sizes = [1, 144], strides = [1, 1]} : vector<1x148xf32> to vector<1x144xf32>
    %629 = arith.subf %627, %628 : vector<1x144xf32>
    %630 = vector.extract_strided_slice %626 {offsets = [0, 2], sizes = [1, 144], strides = [1, 1]} : vector<1x148xf32> to vector<1x144xf32>
    %631 = arith.subf %627, %630 : vector<1x144xf32>
    %632 = vector.extract_strided_slice %626 {offsets = [0, 0], sizes = [1, 144], strides = [1, 1]} : vector<1x148xf32> to vector<1x144xf32>
    %633 = arith.subf %627, %632 : vector<1x144xf32>
    %634 = vector.extract_strided_slice %626 {offsets = [0, 3], sizes = [1, 144], strides = [1, 1]} : vector<1x148xf32> to vector<1x144xf32>
    %635 = arith.subf %627, %634 : vector<1x144xf32>
    %636 = vector.extract_strided_slice %626 {offsets = [0, 3], sizes = [1, 144], strides = [1, 1]} : vector<1x148xf32> to vector<1x144xf32>
    %637 = arith.subf %635, %636 : vector<1x144xf32>
    %638 = vector.extract_strided_slice %626 {offsets = [0, 2], sizes = [1, 144], strides = [1, 1]} : vector<1x148xf32> to vector<1x144xf32>
    %639 = arith.addf %637, %638 : vector<1x144xf32>
    %640 = vector.broadcast %4 : vector<1x1xf32> to vector<1x144xf32>
    %641 = arith.mulf %639, %640 : vector<1x144xf32>
    %642 = tpu.concatenate %629, %631, %633, %641 in 0 : vector<1x144xf32>, vector<1x144xf32>, vector<1x144xf32>, vector<1x144xf32> -> vector<4x144xf32>
    %643 = vector.extract_strided_slice %642 {offsets = [0, 0], sizes = [4, 143], strides = [1, 1]} : vector<4x144xf32> to vector<4x143xf32>
    %644 = vector.extract_strided_slice %642 {offsets = [0, 1], sizes = [4, 143], strides = [1, 1]} : vector<4x144xf32> to vector<4x143xf32>
    %645 = arith.addf %643, %644 : vector<4x143xf32>
    %646 = vector.extract_strided_slice %645 {offsets = [0, 0], sizes = [4, 141], strides = [1, 1]} : vector<4x143xf32> to vector<4x141xf32>
    %647 = vector.extract_strided_slice %645 {offsets = [0, 2], sizes = [4, 141], strides = [1, 1]} : vector<4x143xf32> to vector<4x141xf32>
    %648 = arith.addf %646, %647 : vector<4x141xf32>
    %649 = vector.extract_strided_slice %648 {offsets = [0, 0], sizes = [4, 137], strides = [1, 1]} : vector<4x141xf32> to vector<4x137xf32>
    %650 = vector.extract_strided_slice %648 {offsets = [0, 4], sizes = [4, 137], strides = [1, 1]} : vector<4x141xf32> to vector<4x137xf32>
    %651 = arith.addf %649, %650 : vector<4x137xf32>
    %652 = vector.extract_strided_slice %651 {offsets = [0, 0], sizes = [4, 136], strides = [1, 1]} : vector<4x137xf32> to vector<4x136xf32>
    %653 = vector.extract_strided_slice %642 {offsets = [0, 8], sizes = [4, 136], strides = [1, 1]} : vector<4x144xf32> to vector<4x136xf32>
    %654 = arith.addf %652, %653 : vector<4x136xf32>
    %cst_140 = arith.constant 0.111111112 : f32
    %655 = vector.broadcast %cst_140 : f32 to vector<4x136xf32>
    %656 = arith.mulf %654, %655 : vector<4x136xf32>
    %657 = vector.extract_strided_slice %656 {offsets = [0, 0], sizes = [4, 135], strides = [1, 1]} : vector<4x136xf32> to vector<4x135xf32>
    %658 = vector.extract_strided_slice %656 {offsets = [0, 1], sizes = [4, 135], strides = [1, 1]} : vector<4x136xf32> to vector<4x135xf32>
    %659 = arith.addf %657, %658 : vector<4x135xf32>
    %660 = vector.extract_strided_slice %659 {offsets = [0, 0], sizes = [4, 133], strides = [1, 1]} : vector<4x135xf32> to vector<4x133xf32>
    %661 = vector.extract_strided_slice %659 {offsets = [0, 2], sizes = [4, 133], strides = [1, 1]} : vector<4x135xf32> to vector<4x133xf32>
    %662 = arith.addf %660, %661 : vector<4x133xf32>
    %663 = vector.extract_strided_slice %662 {offsets = [0, 0], sizes = [4, 129], strides = [1, 1]} : vector<4x133xf32> to vector<4x129xf32>
    %664 = vector.extract_strided_slice %662 {offsets = [0, 4], sizes = [4, 129], strides = [1, 1]} : vector<4x133xf32> to vector<4x129xf32>
    %665 = arith.addf %663, %664 : vector<4x129xf32>
    %666 = vector.extract_strided_slice %665 {offsets = [0, 0], sizes = [4, 128], strides = [1, 1]} : vector<4x129xf32> to vector<4x128xf32>
    %667 = vector.extract_strided_slice %656 {offsets = [0, 8], sizes = [4, 128], strides = [1, 1]} : vector<4x136xf32> to vector<4x128xf32>
    %668 = arith.addf %666, %667 : vector<4x128xf32>
    %cst_141 = arith.constant 0.111111112 : f32
    %669 = vector.broadcast %cst_141 : f32 to vector<4x128xf32>
    %670 = arith.mulf %668, %669 : vector<4x128xf32>
    %671 = vector.extract_strided_slice %656 {offsets = [0, 0], sizes = [4, 135], strides = [1, 1]} : vector<4x136xf32> to vector<4x135xf32>
    %672 = vector.extract_strided_slice %656 {offsets = [0, 1], sizes = [4, 135], strides = [1, 1]} : vector<4x136xf32> to vector<4x135xf32>
    %673 = arith.maximumf %671, %672 : vector<4x135xf32>
    %674 = vector.extract_strided_slice %673 {offsets = [0, 0], sizes = [4, 133], strides = [1, 1]} : vector<4x135xf32> to vector<4x133xf32>
    %675 = vector.extract_strided_slice %673 {offsets = [0, 2], sizes = [4, 133], strides = [1, 1]} : vector<4x135xf32> to vector<4x133xf32>
    %676 = arith.maximumf %674, %675 : vector<4x133xf32>
    %677 = vector.extract_strided_slice %676 {offsets = [0, 0], sizes = [4, 129], strides = [1, 1]} : vector<4x133xf32> to vector<4x129xf32>
    %678 = vector.extract_strided_slice %676 {offsets = [0, 4], sizes = [4, 129], strides = [1, 1]} : vector<4x133xf32> to vector<4x129xf32>
    %679 = arith.maximumf %677, %678 : vector<4x129xf32>
    %680 = vector.extract_strided_slice %679 {offsets = [0, 0], sizes = [4, 128], strides = [1, 1]} : vector<4x129xf32> to vector<4x128xf32>
    %681 = vector.extract_strided_slice %679 {offsets = [0, 1], sizes = [4, 128], strides = [1, 1]} : vector<4x129xf32> to vector<4x128xf32>
    %682 = arith.maximumf %680, %681 : vector<4x128xf32>
    %683 = vector.extract_strided_slice %656 {offsets = [0, 0], sizes = [4, 128], strides = [1, 1]} : vector<4x136xf32> to vector<4x128xf32>
    %684 = tpu.concatenate %670, %670 in 0 : vector<4x128xf32>, vector<4x128xf32> -> vector<8x128xf32>
    %685 = tpu.concatenate %682, %682 in 0 : vector<4x128xf32>, vector<4x128xf32> -> vector<8x128xf32>
    %686 = tpu.concatenate %683, %683 in 0 : vector<4x128xf32>, vector<4x128xf32> -> vector<8x128xf32>
    %cst_142 = arith.constant 0.000000e+00 : f32
    %687 = vector.broadcast %cst_142 : f32 to vector<8x128xf32>
    %cst_143 = arith.constant 0.000000e+00 : f32
    %688 = vector.broadcast %cst_143 : f32 to vector<8x128xf32>
    %c0_i32_144 = arith.constant 0 : i32
    %689 = vector.broadcast %c0_i32_144 : i32 to vector<8x128xi32>
    %690 = arith.cmpi eq, %5, %689 : vector<8x128xi32>
    %691 = arith.select %690, %684, %687 : vector<8x128xi1>, vector<8x128xf32>
    %692 = arith.select %690, %685, %688 : vector<8x128xi1>, vector<8x128xf32>
    %c1_i32_145 = arith.constant 1 : i32
    %693 = vector.broadcast %c1_i32_145 : i32 to vector<8x128xi32>
    %694 = arith.cmpi eq, %5, %693 : vector<8x128xi32>
    %cst_146 = arith.constant 0.000000e+00 : f32
    %695 = vector.broadcast %cst_146 : f32 to vector<8x1xf32>
    %696 = vector.extract_strided_slice %684 {offsets = [0, 0], sizes = [8, 127], strides = [1, 1]} : vector<8x128xf32> to vector<8x127xf32>
    %697 = tpu.concatenate %695, %696 in 1 : vector<8x1xf32>, vector<8x127xf32> -> vector<8x128xf32>
    %698 = arith.select %694, %697, %691 : vector<8x128xi1>, vector<8x128xf32>
    %cst_147 = arith.constant 0.000000e+00 : f32
    %699 = vector.broadcast %cst_147 : f32 to vector<8x1xf32>
    %700 = vector.extract_strided_slice %685 {offsets = [0, 0], sizes = [8, 127], strides = [1, 1]} : vector<8x128xf32> to vector<8x127xf32>
    %701 = tpu.concatenate %699, %700 in 1 : vector<8x1xf32>, vector<8x127xf32> -> vector<8x128xf32>
    %702 = arith.select %694, %701, %692 : vector<8x128xi1>, vector<8x128xf32>
    %c2_i32_148 = arith.constant 2 : i32
    %703 = vector.broadcast %c2_i32_148 : i32 to vector<8x128xi32>
    %704 = arith.cmpi eq, %5, %703 : vector<8x128xi32>
    %cst_149 = arith.constant 0.000000e+00 : f32
    %705 = vector.broadcast %cst_149 : f32 to vector<8x2xf32>
    %706 = vector.extract_strided_slice %684 {offsets = [0, 0], sizes = [8, 126], strides = [1, 1]} : vector<8x128xf32> to vector<8x126xf32>
    %707 = tpu.concatenate %705, %706 in 1 : vector<8x2xf32>, vector<8x126xf32> -> vector<8x128xf32>
    %708 = arith.select %704, %707, %698 : vector<8x128xi1>, vector<8x128xf32>
    %cst_150 = arith.constant 0.000000e+00 : f32
    %709 = vector.broadcast %cst_150 : f32 to vector<8x2xf32>
    %710 = vector.extract_strided_slice %685 {offsets = [0, 0], sizes = [8, 126], strides = [1, 1]} : vector<8x128xf32> to vector<8x126xf32>
    %711 = tpu.concatenate %709, %710 in 1 : vector<8x2xf32>, vector<8x126xf32> -> vector<8x128xf32>
    %712 = arith.select %704, %711, %702 : vector<8x128xi1>, vector<8x128xf32>
    %c3_i32_151 = arith.constant 3 : i32
    %713 = vector.broadcast %c3_i32_151 : i32 to vector<8x128xi32>
    %714 = arith.cmpi eq, %5, %713 : vector<8x128xi32>
    %cst_152 = arith.constant 0.000000e+00 : f32
    %715 = vector.broadcast %cst_152 : f32 to vector<8x3xf32>
    %716 = vector.extract_strided_slice %684 {offsets = [0, 0], sizes = [8, 125], strides = [1, 1]} : vector<8x128xf32> to vector<8x125xf32>
    %717 = tpu.concatenate %715, %716 in 1 : vector<8x3xf32>, vector<8x125xf32> -> vector<8x128xf32>
    %718 = arith.select %714, %717, %708 : vector<8x128xi1>, vector<8x128xf32>
    %cst_153 = arith.constant 0.000000e+00 : f32
    %719 = vector.broadcast %cst_153 : f32 to vector<8x3xf32>
    %720 = vector.extract_strided_slice %685 {offsets = [0, 0], sizes = [8, 125], strides = [1, 1]} : vector<8x128xf32> to vector<8x125xf32>
    %721 = tpu.concatenate %719, %720 in 1 : vector<8x3xf32>, vector<8x125xf32> -> vector<8x128xf32>
    %722 = arith.select %714, %721, %712 : vector<8x128xi1>, vector<8x128xf32>
    %c4_i32_154 = arith.constant 4 : i32
    %723 = vector.broadcast %c4_i32_154 : i32 to vector<8x128xi32>
    %724 = arith.cmpi eq, %5, %723 : vector<8x128xi32>
    %cst_155 = arith.constant 0.000000e+00 : f32
    %725 = vector.broadcast %cst_155 : f32 to vector<8x4xf32>
    %726 = vector.extract_strided_slice %684 {offsets = [0, 0], sizes = [8, 124], strides = [1, 1]} : vector<8x128xf32> to vector<8x124xf32>
    %727 = tpu.concatenate %725, %726 in 1 : vector<8x4xf32>, vector<8x124xf32> -> vector<8x128xf32>
    %728 = arith.select %724, %727, %718 : vector<8x128xi1>, vector<8x128xf32>
    %cst_156 = arith.constant 0.000000e+00 : f32
    %729 = vector.broadcast %cst_156 : f32 to vector<8x4xf32>
    %730 = vector.extract_strided_slice %685 {offsets = [0, 0], sizes = [8, 124], strides = [1, 1]} : vector<8x128xf32> to vector<8x124xf32>
    %731 = tpu.concatenate %729, %730 in 1 : vector<8x4xf32>, vector<8x124xf32> -> vector<8x128xf32>
    %732 = arith.select %724, %731, %722 : vector<8x128xi1>, vector<8x128xf32>
    %c5_i32_157 = arith.constant 5 : i32
    %733 = vector.broadcast %c5_i32_157 : i32 to vector<8x128xi32>
    %734 = arith.cmpi eq, %5, %733 : vector<8x128xi32>
    %cst_158 = arith.constant 0.000000e+00 : f32
    %735 = vector.broadcast %cst_158 : f32 to vector<8x5xf32>
    %736 = vector.extract_strided_slice %684 {offsets = [0, 0], sizes = [8, 123], strides = [1, 1]} : vector<8x128xf32> to vector<8x123xf32>
    %737 = tpu.concatenate %735, %736 in 1 : vector<8x5xf32>, vector<8x123xf32> -> vector<8x128xf32>
    %738 = arith.select %734, %737, %728 : vector<8x128xi1>, vector<8x128xf32>
    %cst_159 = arith.constant 0.000000e+00 : f32
    %739 = vector.broadcast %cst_159 : f32 to vector<8x5xf32>
    %740 = vector.extract_strided_slice %685 {offsets = [0, 0], sizes = [8, 123], strides = [1, 1]} : vector<8x128xf32> to vector<8x123xf32>
    %741 = tpu.concatenate %739, %740 in 1 : vector<8x5xf32>, vector<8x123xf32> -> vector<8x128xf32>
    %742 = arith.select %734, %741, %732 : vector<8x128xi1>, vector<8x128xf32>
    %c6_i32_160 = arith.constant 6 : i32
    %743 = vector.broadcast %c6_i32_160 : i32 to vector<8x128xi32>
    %744 = arith.cmpi eq, %5, %743 : vector<8x128xi32>
    %cst_161 = arith.constant 0.000000e+00 : f32
    %745 = vector.broadcast %cst_161 : f32 to vector<8x6xf32>
    %746 = vector.extract_strided_slice %684 {offsets = [0, 0], sizes = [8, 122], strides = [1, 1]} : vector<8x128xf32> to vector<8x122xf32>
    %747 = tpu.concatenate %745, %746 in 1 : vector<8x6xf32>, vector<8x122xf32> -> vector<8x128xf32>
    %748 = arith.select %744, %747, %738 : vector<8x128xi1>, vector<8x128xf32>
    %cst_162 = arith.constant 0.000000e+00 : f32
    %749 = vector.broadcast %cst_162 : f32 to vector<8x6xf32>
    %750 = vector.extract_strided_slice %685 {offsets = [0, 0], sizes = [8, 122], strides = [1, 1]} : vector<8x128xf32> to vector<8x122xf32>
    %751 = tpu.concatenate %749, %750 in 1 : vector<8x6xf32>, vector<8x122xf32> -> vector<8x128xf32>
    %752 = arith.select %744, %751, %742 : vector<8x128xi1>, vector<8x128xf32>
    %c7_i32_163 = arith.constant 7 : i32
    %753 = vector.broadcast %c7_i32_163 : i32 to vector<8x128xi32>
    %754 = arith.cmpi eq, %5, %753 : vector<8x128xi32>
    %cst_164 = arith.constant 0.000000e+00 : f32
    %755 = vector.broadcast %cst_164 : f32 to vector<8x7xf32>
    %756 = vector.extract_strided_slice %684 {offsets = [0, 0], sizes = [8, 121], strides = [1, 1]} : vector<8x128xf32> to vector<8x121xf32>
    %757 = tpu.concatenate %755, %756 in 1 : vector<8x7xf32>, vector<8x121xf32> -> vector<8x128xf32>
    %758 = arith.select %754, %757, %748 : vector<8x128xi1>, vector<8x128xf32>
    %cst_165 = arith.constant 0.000000e+00 : f32
    %759 = vector.broadcast %cst_165 : f32 to vector<8x7xf32>
    %760 = vector.extract_strided_slice %685 {offsets = [0, 0], sizes = [8, 121], strides = [1, 1]} : vector<8x128xf32> to vector<8x121xf32>
    %761 = tpu.concatenate %759, %760 in 1 : vector<8x7xf32>, vector<8x121xf32> -> vector<8x128xf32>
    %762 = arith.select %754, %761, %752 : vector<8x128xi1>, vector<8x128xf32>
    %c8_i32_166 = arith.constant 8 : i32
    %763 = vector.broadcast %c8_i32_166 : i32 to vector<8x128xi32>
    %764 = arith.cmpi eq, %5, %763 : vector<8x128xi32>
    %cst_167 = arith.constant 0.000000e+00 : f32
    %765 = vector.broadcast %cst_167 : f32 to vector<8x8xf32>
    %766 = vector.extract_strided_slice %684 {offsets = [0, 0], sizes = [8, 120], strides = [1, 1]} : vector<8x128xf32> to vector<8x120xf32>
    %767 = tpu.concatenate %765, %766 in 1 : vector<8x8xf32>, vector<8x120xf32> -> vector<8x128xf32>
    %768 = arith.select %764, %767, %758 : vector<8x128xi1>, vector<8x128xf32>
    %cst_168 = arith.constant 0.000000e+00 : f32
    %769 = vector.broadcast %cst_168 : f32 to vector<8x8xf32>
    %770 = vector.extract_strided_slice %685 {offsets = [0, 0], sizes = [8, 120], strides = [1, 1]} : vector<8x128xf32> to vector<8x120xf32>
    %771 = tpu.concatenate %769, %770 in 1 : vector<8x8xf32>, vector<8x120xf32> -> vector<8x128xf32>
    %772 = arith.select %764, %771, %762 : vector<8x128xi1>, vector<8x128xf32>
    %773 = arith.addf %768, %686 : vector<8x128xf32>
    %c4_169 = arith.constant 4 : index
    %c0_170 = arith.constant 0 : index
    %c0_171 = arith.constant 0 : index
    %774 = vector.load %arg4[%c4_169, %c0_170, %c0_171] : memref<8x16x128xf32, #tpu.memory_space<vmem>>, vector<1x8x128xf32>
    %775 = vector.shape_cast %774 : vector<1x8x128xf32> to vector<8x128xf32>
    %776 = vector.shape_cast %773 : vector<8x128xf32> to vector<1x8x128xf32>
    tpu.vector_store %arg4[%c4_169, %c0_170, %c0_171], %776 {strides = array<i32>} : memref<8x16x128xf32, #tpu.memory_space<vmem>>, vector<1x8x128xf32>,
    %777 = arith.addf %772, %686 : vector<8x128xf32>
    %c4_172 = arith.constant 4 : index
    %c8_173 = arith.constant 8 : index
    %c0_174 = arith.constant 0 : index
    %778 = vector.load %arg4[%c4_172, %c8_173, %c0_174] : memref<8x16x128xf32, #tpu.memory_space<vmem>>, vector<1x8x128xf32>
    %779 = vector.shape_cast %778 : vector<1x8x128xf32> to vector<8x128xf32>
    %780 = vector.shape_cast %777 : vector<8x128xf32> to vector<1x8x128xf32>
    tpu.vector_store %arg4[%c4_172, %c8_173, %c0_174], %780 {strides = array<i32>} : memref<8x16x128xf32, #tpu.memory_space<vmem>>, vector<1x8x128xf32>,
    %c5 = arith.constant 5 : index
    %c0_175 = arith.constant 0 : index
    %781 = vector.load %arg3[%c5, %c0_175] : memref<8x148xf32, #tpu.memory_space<vmem>>, vector<1x148xf32>
    %782 = vector.extract_strided_slice %781 {offsets = [0, 4], sizes = [1, 144], strides = [1, 1]} : vector<1x148xf32> to vector<1x144xf32>
    %783 = vector.extract_strided_slice %781 {offsets = [0, 3], sizes = [1, 144], strides = [1, 1]} : vector<1x148xf32> to vector<1x144xf32>
    %784 = arith.subf %782, %783 : vector<1x144xf32>
    %785 = vector.extract_strided_slice %781 {offsets = [0, 2], sizes = [1, 144], strides = [1, 1]} : vector<1x148xf32> to vector<1x144xf32>
    %786 = arith.subf %782, %785 : vector<1x144xf32>
    %787 = vector.extract_strided_slice %781 {offsets = [0, 0], sizes = [1, 144], strides = [1, 1]} : vector<1x148xf32> to vector<1x144xf32>
    %788 = arith.subf %782, %787 : vector<1x144xf32>
    %789 = vector.extract_strided_slice %781 {offsets = [0, 3], sizes = [1, 144], strides = [1, 1]} : vector<1x148xf32> to vector<1x144xf32>
    %790 = arith.subf %782, %789 : vector<1x144xf32>
    %791 = vector.extract_strided_slice %781 {offsets = [0, 3], sizes = [1, 144], strides = [1, 1]} : vector<1x148xf32> to vector<1x144xf32>
    %792 = arith.subf %790, %791 : vector<1x144xf32>
    %793 = vector.extract_strided_slice %781 {offsets = [0, 2], sizes = [1, 144], strides = [1, 1]} : vector<1x148xf32> to vector<1x144xf32>
    %794 = arith.addf %792, %793 : vector<1x144xf32>
    %795 = vector.broadcast %4 : vector<1x1xf32> to vector<1x144xf32>
    %796 = arith.mulf %794, %795 : vector<1x144xf32>
    %797 = tpu.concatenate %784, %786, %788, %796 in 0 : vector<1x144xf32>, vector<1x144xf32>, vector<1x144xf32>, vector<1x144xf32> -> vector<4x144xf32>
    %798 = vector.extract_strided_slice %797 {offsets = [0, 0], sizes = [4, 143], strides = [1, 1]} : vector<4x144xf32> to vector<4x143xf32>
    %799 = vector.extract_strided_slice %797 {offsets = [0, 1], sizes = [4, 143], strides = [1, 1]} : vector<4x144xf32> to vector<4x143xf32>
    %800 = arith.addf %798, %799 : vector<4x143xf32>
    %801 = vector.extract_strided_slice %800 {offsets = [0, 0], sizes = [4, 141], strides = [1, 1]} : vector<4x143xf32> to vector<4x141xf32>
    %802 = vector.extract_strided_slice %800 {offsets = [0, 2], sizes = [4, 141], strides = [1, 1]} : vector<4x143xf32> to vector<4x141xf32>
    %803 = arith.addf %801, %802 : vector<4x141xf32>
    %804 = vector.extract_strided_slice %803 {offsets = [0, 0], sizes = [4, 137], strides = [1, 1]} : vector<4x141xf32> to vector<4x137xf32>
    %805 = vector.extract_strided_slice %803 {offsets = [0, 4], sizes = [4, 137], strides = [1, 1]} : vector<4x141xf32> to vector<4x137xf32>
    %806 = arith.addf %804, %805 : vector<4x137xf32>
    %807 = vector.extract_strided_slice %806 {offsets = [0, 0], sizes = [4, 136], strides = [1, 1]} : vector<4x137xf32> to vector<4x136xf32>
    %808 = vector.extract_strided_slice %797 {offsets = [0, 8], sizes = [4, 136], strides = [1, 1]} : vector<4x144xf32> to vector<4x136xf32>
    %809 = arith.addf %807, %808 : vector<4x136xf32>
    %cst_176 = arith.constant 0.111111112 : f32
    %810 = vector.broadcast %cst_176 : f32 to vector<4x136xf32>
    %811 = arith.mulf %809, %810 : vector<4x136xf32>
    %812 = vector.extract_strided_slice %811 {offsets = [0, 0], sizes = [4, 135], strides = [1, 1]} : vector<4x136xf32> to vector<4x135xf32>
    %813 = vector.extract_strided_slice %811 {offsets = [0, 1], sizes = [4, 135], strides = [1, 1]} : vector<4x136xf32> to vector<4x135xf32>
    %814 = arith.addf %812, %813 : vector<4x135xf32>
    %815 = vector.extract_strided_slice %814 {offsets = [0, 0], sizes = [4, 133], strides = [1, 1]} : vector<4x135xf32> to vector<4x133xf32>
    %816 = vector.extract_strided_slice %814 {offsets = [0, 2], sizes = [4, 133], strides = [1, 1]} : vector<4x135xf32> to vector<4x133xf32>
    %817 = arith.addf %815, %816 : vector<4x133xf32>
    %818 = vector.extract_strided_slice %817 {offsets = [0, 0], sizes = [4, 129], strides = [1, 1]} : vector<4x133xf32> to vector<4x129xf32>
    %819 = vector.extract_strided_slice %817 {offsets = [0, 4], sizes = [4, 129], strides = [1, 1]} : vector<4x133xf32> to vector<4x129xf32>
    %820 = arith.addf %818, %819 : vector<4x129xf32>
    %821 = vector.extract_strided_slice %820 {offsets = [0, 0], sizes = [4, 128], strides = [1, 1]} : vector<4x129xf32> to vector<4x128xf32>
    %822 = vector.extract_strided_slice %811 {offsets = [0, 8], sizes = [4, 128], strides = [1, 1]} : vector<4x136xf32> to vector<4x128xf32>
    %823 = arith.addf %821, %822 : vector<4x128xf32>
    %cst_177 = arith.constant 0.111111112 : f32
    %824 = vector.broadcast %cst_177 : f32 to vector<4x128xf32>
    %825 = arith.mulf %823, %824 : vector<4x128xf32>
    %826 = vector.extract_strided_slice %811 {offsets = [0, 0], sizes = [4, 135], strides = [1, 1]} : vector<4x136xf32> to vector<4x135xf32>
    %827 = vector.extract_strided_slice %811 {offsets = [0, 1], sizes = [4, 135], strides = [1, 1]} : vector<4x136xf32> to vector<4x135xf32>
    %828 = arith.maximumf %826, %827 : vector<4x135xf32>
    %829 = vector.extract_strided_slice %828 {offsets = [0, 0], sizes = [4, 133], strides = [1, 1]} : vector<4x135xf32> to vector<4x133xf32>
    %830 = vector.extract_strided_slice %828 {offsets = [0, 2], sizes = [4, 133], strides = [1, 1]} : vector<4x135xf32> to vector<4x133xf32>
    %831 = arith.maximumf %829, %830 : vector<4x133xf32>
    %832 = vector.extract_strided_slice %831 {offsets = [0, 0], sizes = [4, 129], strides = [1, 1]} : vector<4x133xf32> to vector<4x129xf32>
    %833 = vector.extract_strided_slice %831 {offsets = [0, 4], sizes = [4, 129], strides = [1, 1]} : vector<4x133xf32> to vector<4x129xf32>
    %834 = arith.maximumf %832, %833 : vector<4x129xf32>
    %835 = vector.extract_strided_slice %834 {offsets = [0, 0], sizes = [4, 128], strides = [1, 1]} : vector<4x129xf32> to vector<4x128xf32>
    %836 = vector.extract_strided_slice %834 {offsets = [0, 1], sizes = [4, 128], strides = [1, 1]} : vector<4x129xf32> to vector<4x128xf32>
    %837 = arith.maximumf %835, %836 : vector<4x128xf32>
    %838 = vector.extract_strided_slice %811 {offsets = [0, 0], sizes = [4, 128], strides = [1, 1]} : vector<4x136xf32> to vector<4x128xf32>
    %839 = tpu.concatenate %825, %825 in 0 : vector<4x128xf32>, vector<4x128xf32> -> vector<8x128xf32>
    %840 = tpu.concatenate %837, %837 in 0 : vector<4x128xf32>, vector<4x128xf32> -> vector<8x128xf32>
    %841 = tpu.concatenate %838, %838 in 0 : vector<4x128xf32>, vector<4x128xf32> -> vector<8x128xf32>
    %cst_178 = arith.constant 0.000000e+00 : f32
    %842 = vector.broadcast %cst_178 : f32 to vector<8x128xf32>
    %cst_179 = arith.constant 0.000000e+00 : f32
    %843 = vector.broadcast %cst_179 : f32 to vector<8x128xf32>
    %c0_i32_180 = arith.constant 0 : i32
    %844 = vector.broadcast %c0_i32_180 : i32 to vector<8x128xi32>
    %845 = arith.cmpi eq, %5, %844 : vector<8x128xi32>
    %846 = arith.select %845, %839, %842 : vector<8x128xi1>, vector<8x128xf32>
    %847 = arith.select %845, %840, %843 : vector<8x128xi1>, vector<8x128xf32>
    %c1_i32_181 = arith.constant 1 : i32
    %848 = vector.broadcast %c1_i32_181 : i32 to vector<8x128xi32>
    %849 = arith.cmpi eq, %5, %848 : vector<8x128xi32>
    %cst_182 = arith.constant 0.000000e+00 : f32
    %850 = vector.broadcast %cst_182 : f32 to vector<8x1xf32>
    %851 = vector.extract_strided_slice %839 {offsets = [0, 0], sizes = [8, 127], strides = [1, 1]} : vector<8x128xf32> to vector<8x127xf32>
    %852 = tpu.concatenate %850, %851 in 1 : vector<8x1xf32>, vector<8x127xf32> -> vector<8x128xf32>
    %853 = arith.select %849, %852, %846 : vector<8x128xi1>, vector<8x128xf32>
    %cst_183 = arith.constant 0.000000e+00 : f32
    %854 = vector.broadcast %cst_183 : f32 to vector<8x1xf32>
    %855 = vector.extract_strided_slice %840 {offsets = [0, 0], sizes = [8, 127], strides = [1, 1]} : vector<8x128xf32> to vector<8x127xf32>
    %856 = tpu.concatenate %854, %855 in 1 : vector<8x1xf32>, vector<8x127xf32> -> vector<8x128xf32>
    %857 = arith.select %849, %856, %847 : vector<8x128xi1>, vector<8x128xf32>
    %c2_i32_184 = arith.constant 2 : i32
    %858 = vector.broadcast %c2_i32_184 : i32 to vector<8x128xi32>
    %859 = arith.cmpi eq, %5, %858 : vector<8x128xi32>
    %cst_185 = arith.constant 0.000000e+00 : f32
    %860 = vector.broadcast %cst_185 : f32 to vector<8x2xf32>
    %861 = vector.extract_strided_slice %839 {offsets = [0, 0], sizes = [8, 126], strides = [1, 1]} : vector<8x128xf32> to vector<8x126xf32>
    %862 = tpu.concatenate %860, %861 in 1 : vector<8x2xf32>, vector<8x126xf32> -> vector<8x128xf32>
    %863 = arith.select %859, %862, %853 : vector<8x128xi1>, vector<8x128xf32>
    %cst_186 = arith.constant 0.000000e+00 : f32
    %864 = vector.broadcast %cst_186 : f32 to vector<8x2xf32>
    %865 = vector.extract_strided_slice %840 {offsets = [0, 0], sizes = [8, 126], strides = [1, 1]} : vector<8x128xf32> to vector<8x126xf32>
    %866 = tpu.concatenate %864, %865 in 1 : vector<8x2xf32>, vector<8x126xf32> -> vector<8x128xf32>
    %867 = arith.select %859, %866, %857 : vector<8x128xi1>, vector<8x128xf32>
    %c3_i32_187 = arith.constant 3 : i32
    %868 = vector.broadcast %c3_i32_187 : i32 to vector<8x128xi32>
    %869 = arith.cmpi eq, %5, %868 : vector<8x128xi32>
    %cst_188 = arith.constant 0.000000e+00 : f32
    %870 = vector.broadcast %cst_188 : f32 to vector<8x3xf32>
    %871 = vector.extract_strided_slice %839 {offsets = [0, 0], sizes = [8, 125], strides = [1, 1]} : vector<8x128xf32> to vector<8x125xf32>
    %872 = tpu.concatenate %870, %871 in 1 : vector<8x3xf32>, vector<8x125xf32> -> vector<8x128xf32>
    %873 = arith.select %869, %872, %863 : vector<8x128xi1>, vector<8x128xf32>
    %cst_189 = arith.constant 0.000000e+00 : f32
    %874 = vector.broadcast %cst_189 : f32 to vector<8x3xf32>
    %875 = vector.extract_strided_slice %840 {offsets = [0, 0], sizes = [8, 125], strides = [1, 1]} : vector<8x128xf32> to vector<8x125xf32>
    %876 = tpu.concatenate %874, %875 in 1 : vector<8x3xf32>, vector<8x125xf32> -> vector<8x128xf32>
    %877 = arith.select %869, %876, %867 : vector<8x128xi1>, vector<8x128xf32>
    %c4_i32_190 = arith.constant 4 : i32
    %878 = vector.broadcast %c4_i32_190 : i32 to vector<8x128xi32>
    %879 = arith.cmpi eq, %5, %878 : vector<8x128xi32>
    %cst_191 = arith.constant 0.000000e+00 : f32
    %880 = vector.broadcast %cst_191 : f32 to vector<8x4xf32>
    %881 = vector.extract_strided_slice %839 {offsets = [0, 0], sizes = [8, 124], strides = [1, 1]} : vector<8x128xf32> to vector<8x124xf32>
    %882 = tpu.concatenate %880, %881 in 1 : vector<8x4xf32>, vector<8x124xf32> -> vector<8x128xf32>
    %883 = arith.select %879, %882, %873 : vector<8x128xi1>, vector<8x128xf32>
    %cst_192 = arith.constant 0.000000e+00 : f32
    %884 = vector.broadcast %cst_192 : f32 to vector<8x4xf32>
    %885 = vector.extract_strided_slice %840 {offsets = [0, 0], sizes = [8, 124], strides = [1, 1]} : vector<8x128xf32> to vector<8x124xf32>
    %886 = tpu.concatenate %884, %885 in 1 : vector<8x4xf32>, vector<8x124xf32> -> vector<8x128xf32>
    %887 = arith.select %879, %886, %877 : vector<8x128xi1>, vector<8x128xf32>
    %c5_i32_193 = arith.constant 5 : i32
    %888 = vector.broadcast %c5_i32_193 : i32 to vector<8x128xi32>
    %889 = arith.cmpi eq, %5, %888 : vector<8x128xi32>
    %cst_194 = arith.constant 0.000000e+00 : f32
    %890 = vector.broadcast %cst_194 : f32 to vector<8x5xf32>
    %891 = vector.extract_strided_slice %839 {offsets = [0, 0], sizes = [8, 123], strides = [1, 1]} : vector<8x128xf32> to vector<8x123xf32>
    %892 = tpu.concatenate %890, %891 in 1 : vector<8x5xf32>, vector<8x123xf32> -> vector<8x128xf32>
    %893 = arith.select %889, %892, %883 : vector<8x128xi1>, vector<8x128xf32>
    %cst_195 = arith.constant 0.000000e+00 : f32
    %894 = vector.broadcast %cst_195 : f32 to vector<8x5xf32>
    %895 = vector.extract_strided_slice %840 {offsets = [0, 0], sizes = [8, 123], strides = [1, 1]} : vector<8x128xf32> to vector<8x123xf32>
    %896 = tpu.concatenate %894, %895 in 1 : vector<8x5xf32>, vector<8x123xf32> -> vector<8x128xf32>
    %897 = arith.select %889, %896, %887 : vector<8x128xi1>, vector<8x128xf32>
    %c6_i32_196 = arith.constant 6 : i32
    %898 = vector.broadcast %c6_i32_196 : i32 to vector<8x128xi32>
    %899 = arith.cmpi eq, %5, %898 : vector<8x128xi32>
    %cst_197 = arith.constant 0.000000e+00 : f32
    %900 = vector.broadcast %cst_197 : f32 to vector<8x6xf32>
    %901 = vector.extract_strided_slice %839 {offsets = [0, 0], sizes = [8, 122], strides = [1, 1]} : vector<8x128xf32> to vector<8x122xf32>
    %902 = tpu.concatenate %900, %901 in 1 : vector<8x6xf32>, vector<8x122xf32> -> vector<8x128xf32>
    %903 = arith.select %899, %902, %893 : vector<8x128xi1>, vector<8x128xf32>
    %cst_198 = arith.constant 0.000000e+00 : f32
    %904 = vector.broadcast %cst_198 : f32 to vector<8x6xf32>
    %905 = vector.extract_strided_slice %840 {offsets = [0, 0], sizes = [8, 122], strides = [1, 1]} : vector<8x128xf32> to vector<8x122xf32>
    %906 = tpu.concatenate %904, %905 in 1 : vector<8x6xf32>, vector<8x122xf32> -> vector<8x128xf32>
    %907 = arith.select %899, %906, %897 : vector<8x128xi1>, vector<8x128xf32>
    %c7_i32_199 = arith.constant 7 : i32
    %908 = vector.broadcast %c7_i32_199 : i32 to vector<8x128xi32>
    %909 = arith.cmpi eq, %5, %908 : vector<8x128xi32>
    %cst_200 = arith.constant 0.000000e+00 : f32
    %910 = vector.broadcast %cst_200 : f32 to vector<8x7xf32>
    %911 = vector.extract_strided_slice %839 {offsets = [0, 0], sizes = [8, 121], strides = [1, 1]} : vector<8x128xf32> to vector<8x121xf32>
    %912 = tpu.concatenate %910, %911 in 1 : vector<8x7xf32>, vector<8x121xf32> -> vector<8x128xf32>
    %913 = arith.select %909, %912, %903 : vector<8x128xi1>, vector<8x128xf32>
    %cst_201 = arith.constant 0.000000e+00 : f32
    %914 = vector.broadcast %cst_201 : f32 to vector<8x7xf32>
    %915 = vector.extract_strided_slice %840 {offsets = [0, 0], sizes = [8, 121], strides = [1, 1]} : vector<8x128xf32> to vector<8x121xf32>
    %916 = tpu.concatenate %914, %915 in 1 : vector<8x7xf32>, vector<8x121xf32> -> vector<8x128xf32>
    %917 = arith.select %909, %916, %907 : vector<8x128xi1>, vector<8x128xf32>
    %c8_i32_202 = arith.constant 8 : i32
    %918 = vector.broadcast %c8_i32_202 : i32 to vector<8x128xi32>
    %919 = arith.cmpi eq, %5, %918 : vector<8x128xi32>
    %cst_203 = arith.constant 0.000000e+00 : f32
    %920 = vector.broadcast %cst_203 : f32 to vector<8x8xf32>
    %921 = vector.extract_strided_slice %839 {offsets = [0, 0], sizes = [8, 120], strides = [1, 1]} : vector<8x128xf32> to vector<8x120xf32>
    %922 = tpu.concatenate %920, %921 in 1 : vector<8x8xf32>, vector<8x120xf32> -> vector<8x128xf32>
    %923 = arith.select %919, %922, %913 : vector<8x128xi1>, vector<8x128xf32>
    %cst_204 = arith.constant 0.000000e+00 : f32
    %924 = vector.broadcast %cst_204 : f32 to vector<8x8xf32>
    %925 = vector.extract_strided_slice %840 {offsets = [0, 0], sizes = [8, 120], strides = [1, 1]} : vector<8x128xf32> to vector<8x120xf32>
    %926 = tpu.concatenate %924, %925 in 1 : vector<8x8xf32>, vector<8x120xf32> -> vector<8x128xf32>
    %927 = arith.select %919, %926, %917 : vector<8x128xi1>, vector<8x128xf32>
    %928 = arith.addf %923, %841 : vector<8x128xf32>
    %c5_205 = arith.constant 5 : index
    %c0_206 = arith.constant 0 : index
    %c0_207 = arith.constant 0 : index
    %929 = vector.load %arg4[%c5_205, %c0_206, %c0_207] : memref<8x16x128xf32, #tpu.memory_space<vmem>>, vector<1x8x128xf32>
    %930 = vector.shape_cast %929 : vector<1x8x128xf32> to vector<8x128xf32>
    %931 = vector.shape_cast %928 : vector<8x128xf32> to vector<1x8x128xf32>
    tpu.vector_store %arg4[%c5_205, %c0_206, %c0_207], %931 {strides = array<i32>} : memref<8x16x128xf32, #tpu.memory_space<vmem>>, vector<1x8x128xf32>,
    %932 = arith.addf %927, %841 : vector<8x128xf32>
    %c5_208 = arith.constant 5 : index
    %c8_209 = arith.constant 8 : index
    %c0_210 = arith.constant 0 : index
    %933 = vector.load %arg4[%c5_208, %c8_209, %c0_210] : memref<8x16x128xf32, #tpu.memory_space<vmem>>, vector<1x8x128xf32>
    %934 = vector.shape_cast %933 : vector<1x8x128xf32> to vector<8x128xf32>
    %935 = vector.shape_cast %932 : vector<8x128xf32> to vector<1x8x128xf32>
    tpu.vector_store %arg4[%c5_208, %c8_209, %c0_210], %935 {strides = array<i32>} : memref<8x16x128xf32, #tpu.memory_space<vmem>>, vector<1x8x128xf32>,
    %c6 = arith.constant 6 : index
    %c0_211 = arith.constant 0 : index
    %936 = vector.load %arg3[%c6, %c0_211] : memref<8x148xf32, #tpu.memory_space<vmem>>, vector<1x148xf32>
    %937 = vector.extract_strided_slice %936 {offsets = [0, 4], sizes = [1, 144], strides = [1, 1]} : vector<1x148xf32> to vector<1x144xf32>
    %938 = vector.extract_strided_slice %936 {offsets = [0, 3], sizes = [1, 144], strides = [1, 1]} : vector<1x148xf32> to vector<1x144xf32>
    %939 = arith.subf %937, %938 : vector<1x144xf32>
    %940 = vector.extract_strided_slice %936 {offsets = [0, 2], sizes = [1, 144], strides = [1, 1]} : vector<1x148xf32> to vector<1x144xf32>
    %941 = arith.subf %937, %940 : vector<1x144xf32>
    %942 = vector.extract_strided_slice %936 {offsets = [0, 0], sizes = [1, 144], strides = [1, 1]} : vector<1x148xf32> to vector<1x144xf32>
    %943 = arith.subf %937, %942 : vector<1x144xf32>
    %944 = vector.extract_strided_slice %936 {offsets = [0, 3], sizes = [1, 144], strides = [1, 1]} : vector<1x148xf32> to vector<1x144xf32>
    %945 = arith.subf %937, %944 : vector<1x144xf32>
    %946 = vector.extract_strided_slice %936 {offsets = [0, 3], sizes = [1, 144], strides = [1, 1]} : vector<1x148xf32> to vector<1x144xf32>
    %947 = arith.subf %945, %946 : vector<1x144xf32>
    %948 = vector.extract_strided_slice %936 {offsets = [0, 2], sizes = [1, 144], strides = [1, 1]} : vector<1x148xf32> to vector<1x144xf32>
    %949 = arith.addf %947, %948 : vector<1x144xf32>
    %950 = vector.broadcast %4 : vector<1x1xf32> to vector<1x144xf32>
    %951 = arith.mulf %949, %950 : vector<1x144xf32>
    %952 = tpu.concatenate %939, %941, %943, %951 in 0 : vector<1x144xf32>, vector<1x144xf32>, vector<1x144xf32>, vector<1x144xf32> -> vector<4x144xf32>
    %953 = vector.extract_strided_slice %952 {offsets = [0, 0], sizes = [4, 143], strides = [1, 1]} : vector<4x144xf32> to vector<4x143xf32>
    %954 = vector.extract_strided_slice %952 {offsets = [0, 1], sizes = [4, 143], strides = [1, 1]} : vector<4x144xf32> to vector<4x143xf32>
    %955 = arith.addf %953, %954 : vector<4x143xf32>
    %956 = vector.extract_strided_slice %955 {offsets = [0, 0], sizes = [4, 141], strides = [1, 1]} : vector<4x143xf32> to vector<4x141xf32>
    %957 = vector.extract_strided_slice %955 {offsets = [0, 2], sizes = [4, 141], strides = [1, 1]} : vector<4x143xf32> to vector<4x141xf32>
    %958 = arith.addf %956, %957 : vector<4x141xf32>
    %959 = vector.extract_strided_slice %958 {offsets = [0, 0], sizes = [4, 137], strides = [1, 1]} : vector<4x141xf32> to vector<4x137xf32>
    %960 = vector.extract_strided_slice %958 {offsets = [0, 4], sizes = [4, 137], strides = [1, 1]} : vector<4x141xf32> to vector<4x137xf32>
    %961 = arith.addf %959, %960 : vector<4x137xf32>
    %962 = vector.extract_strided_slice %961 {offsets = [0, 0], sizes = [4, 136], strides = [1, 1]} : vector<4x137xf32> to vector<4x136xf32>
    %963 = vector.extract_strided_slice %952 {offsets = [0, 8], sizes = [4, 136], strides = [1, 1]} : vector<4x144xf32> to vector<4x136xf32>
    %964 = arith.addf %962, %963 : vector<4x136xf32>
    %cst_212 = arith.constant 0.111111112 : f32
    %965 = vector.broadcast %cst_212 : f32 to vector<4x136xf32>
    %966 = arith.mulf %964, %965 : vector<4x136xf32>
    %967 = vector.extract_strided_slice %966 {offsets = [0, 0], sizes = [4, 135], strides = [1, 1]} : vector<4x136xf32> to vector<4x135xf32>
    %968 = vector.extract_strided_slice %966 {offsets = [0, 1], sizes = [4, 135], strides = [1, 1]} : vector<4x136xf32> to vector<4x135xf32>
    %969 = arith.addf %967, %968 : vector<4x135xf32>
    %970 = vector.extract_strided_slice %969 {offsets = [0, 0], sizes = [4, 133], strides = [1, 1]} : vector<4x135xf32> to vector<4x133xf32>
    %971 = vector.extract_strided_slice %969 {offsets = [0, 2], sizes = [4, 133], strides = [1, 1]} : vector<4x135xf32> to vector<4x133xf32>
    %972 = arith.addf %970, %971 : vector<4x133xf32>
    %973 = vector.extract_strided_slice %972 {offsets = [0, 0], sizes = [4, 129], strides = [1, 1]} : vector<4x133xf32> to vector<4x129xf32>
    %974 = vector.extract_strided_slice %972 {offsets = [0, 4], sizes = [4, 129], strides = [1, 1]} : vector<4x133xf32> to vector<4x129xf32>
    %975 = arith.addf %973, %974 : vector<4x129xf32>
    %976 = vector.extract_strided_slice %975 {offsets = [0, 0], sizes = [4, 128], strides = [1, 1]} : vector<4x129xf32> to vector<4x128xf32>
    %977 = vector.extract_strided_slice %966 {offsets = [0, 8], sizes = [4, 128], strides = [1, 1]} : vector<4x136xf32> to vector<4x128xf32>
    %978 = arith.addf %976, %977 : vector<4x128xf32>
    %cst_213 = arith.constant 0.111111112 : f32
    %979 = vector.broadcast %cst_213 : f32 to vector<4x128xf32>
    %980 = arith.mulf %978, %979 : vector<4x128xf32>
    %981 = vector.extract_strided_slice %966 {offsets = [0, 0], sizes = [4, 135], strides = [1, 1]} : vector<4x136xf32> to vector<4x135xf32>
    %982 = vector.extract_strided_slice %966 {offsets = [0, 1], sizes = [4, 135], strides = [1, 1]} : vector<4x136xf32> to vector<4x135xf32>
    %983 = arith.maximumf %981, %982 : vector<4x135xf32>
    %984 = vector.extract_strided_slice %983 {offsets = [0, 0], sizes = [4, 133], strides = [1, 1]} : vector<4x135xf32> to vector<4x133xf32>
    %985 = vector.extract_strided_slice %983 {offsets = [0, 2], sizes = [4, 133], strides = [1, 1]} : vector<4x135xf32> to vector<4x133xf32>
    %986 = arith.maximumf %984, %985 : vector<4x133xf32>
    %987 = vector.extract_strided_slice %986 {offsets = [0, 0], sizes = [4, 129], strides = [1, 1]} : vector<4x133xf32> to vector<4x129xf32>
    %988 = vector.extract_strided_slice %986 {offsets = [0, 4], sizes = [4, 129], strides = [1, 1]} : vector<4x133xf32> to vector<4x129xf32>
    %989 = arith.maximumf %987, %988 : vector<4x129xf32>
    %990 = vector.extract_strided_slice %989 {offsets = [0, 0], sizes = [4, 128], strides = [1, 1]} : vector<4x129xf32> to vector<4x128xf32>
    %991 = vector.extract_strided_slice %989 {offsets = [0, 1], sizes = [4, 128], strides = [1, 1]} : vector<4x129xf32> to vector<4x128xf32>
    %992 = arith.maximumf %990, %991 : vector<4x128xf32>
    %993 = vector.extract_strided_slice %966 {offsets = [0, 0], sizes = [4, 128], strides = [1, 1]} : vector<4x136xf32> to vector<4x128xf32>
    %994 = tpu.concatenate %980, %980 in 0 : vector<4x128xf32>, vector<4x128xf32> -> vector<8x128xf32>
    %995 = tpu.concatenate %992, %992 in 0 : vector<4x128xf32>, vector<4x128xf32> -> vector<8x128xf32>
    %996 = tpu.concatenate %993, %993 in 0 : vector<4x128xf32>, vector<4x128xf32> -> vector<8x128xf32>
    %cst_214 = arith.constant 0.000000e+00 : f32
    %997 = vector.broadcast %cst_214 : f32 to vector<8x128xf32>
    %cst_215 = arith.constant 0.000000e+00 : f32
    %998 = vector.broadcast %cst_215 : f32 to vector<8x128xf32>
    %c0_i32_216 = arith.constant 0 : i32
    %999 = vector.broadcast %c0_i32_216 : i32 to vector<8x128xi32>
    %1000 = arith.cmpi eq, %5, %999 : vector<8x128xi32>
    %1001 = arith.select %1000, %994, %997 : vector<8x128xi1>, vector<8x128xf32>
    %1002 = arith.select %1000, %995, %998 : vector<8x128xi1>, vector<8x128xf32>
    %c1_i32_217 = arith.constant 1 : i32
    %1003 = vector.broadcast %c1_i32_217 : i32 to vector<8x128xi32>
    %1004 = arith.cmpi eq, %5, %1003 : vector<8x128xi32>
    %cst_218 = arith.constant 0.000000e+00 : f32
    %1005 = vector.broadcast %cst_218 : f32 to vector<8x1xf32>
    %1006 = vector.extract_strided_slice %994 {offsets = [0, 0], sizes = [8, 127], strides = [1, 1]} : vector<8x128xf32> to vector<8x127xf32>
    %1007 = tpu.concatenate %1005, %1006 in 1 : vector<8x1xf32>, vector<8x127xf32> -> vector<8x128xf32>
    %1008 = arith.select %1004, %1007, %1001 : vector<8x128xi1>, vector<8x128xf32>
    %cst_219 = arith.constant 0.000000e+00 : f32
    %1009 = vector.broadcast %cst_219 : f32 to vector<8x1xf32>
    %1010 = vector.extract_strided_slice %995 {offsets = [0, 0], sizes = [8, 127], strides = [1, 1]} : vector<8x128xf32> to vector<8x127xf32>
    %1011 = tpu.concatenate %1009, %1010 in 1 : vector<8x1xf32>, vector<8x127xf32> -> vector<8x128xf32>
    %1012 = arith.select %1004, %1011, %1002 : vector<8x128xi1>, vector<8x128xf32>
    %c2_i32_220 = arith.constant 2 : i32
    %1013 = vector.broadcast %c2_i32_220 : i32 to vector<8x128xi32>
    %1014 = arith.cmpi eq, %5, %1013 : vector<8x128xi32>
    %cst_221 = arith.constant 0.000000e+00 : f32
    %1015 = vector.broadcast %cst_221 : f32 to vector<8x2xf32>
    %1016 = vector.extract_strided_slice %994 {offsets = [0, 0], sizes = [8, 126], strides = [1, 1]} : vector<8x128xf32> to vector<8x126xf32>
    %1017 = tpu.concatenate %1015, %1016 in 1 : vector<8x2xf32>, vector<8x126xf32> -> vector<8x128xf32>
    %1018 = arith.select %1014, %1017, %1008 : vector<8x128xi1>, vector<8x128xf32>
    %cst_222 = arith.constant 0.000000e+00 : f32
    %1019 = vector.broadcast %cst_222 : f32 to vector<8x2xf32>
    %1020 = vector.extract_strided_slice %995 {offsets = [0, 0], sizes = [8, 126], strides = [1, 1]} : vector<8x128xf32> to vector<8x126xf32>
    %1021 = tpu.concatenate %1019, %1020 in 1 : vector<8x2xf32>, vector<8x126xf32> -> vector<8x128xf32>
    %1022 = arith.select %1014, %1021, %1012 : vector<8x128xi1>, vector<8x128xf32>
    %c3_i32_223 = arith.constant 3 : i32
    %1023 = vector.broadcast %c3_i32_223 : i32 to vector<8x128xi32>
    %1024 = arith.cmpi eq, %5, %1023 : vector<8x128xi32>
    %cst_224 = arith.constant 0.000000e+00 : f32
    %1025 = vector.broadcast %cst_224 : f32 to vector<8x3xf32>
    %1026 = vector.extract_strided_slice %994 {offsets = [0, 0], sizes = [8, 125], strides = [1, 1]} : vector<8x128xf32> to vector<8x125xf32>
    %1027 = tpu.concatenate %1025, %1026 in 1 : vector<8x3xf32>, vector<8x125xf32> -> vector<8x128xf32>
    %1028 = arith.select %1024, %1027, %1018 : vector<8x128xi1>, vector<8x128xf32>
    %cst_225 = arith.constant 0.000000e+00 : f32
    %1029 = vector.broadcast %cst_225 : f32 to vector<8x3xf32>
    %1030 = vector.extract_strided_slice %995 {offsets = [0, 0], sizes = [8, 125], strides = [1, 1]} : vector<8x128xf32> to vector<8x125xf32>
    %1031 = tpu.concatenate %1029, %1030 in 1 : vector<8x3xf32>, vector<8x125xf32> -> vector<8x128xf32>
    %1032 = arith.select %1024, %1031, %1022 : vector<8x128xi1>, vector<8x128xf32>
    %c4_i32_226 = arith.constant 4 : i32
    %1033 = vector.broadcast %c4_i32_226 : i32 to vector<8x128xi32>
    %1034 = arith.cmpi eq, %5, %1033 : vector<8x128xi32>
    %cst_227 = arith.constant 0.000000e+00 : f32
    %1035 = vector.broadcast %cst_227 : f32 to vector<8x4xf32>
    %1036 = vector.extract_strided_slice %994 {offsets = [0, 0], sizes = [8, 124], strides = [1, 1]} : vector<8x128xf32> to vector<8x124xf32>
    %1037 = tpu.concatenate %1035, %1036 in 1 : vector<8x4xf32>, vector<8x124xf32> -> vector<8x128xf32>
    %1038 = arith.select %1034, %1037, %1028 : vector<8x128xi1>, vector<8x128xf32>
    %cst_228 = arith.constant 0.000000e+00 : f32
    %1039 = vector.broadcast %cst_228 : f32 to vector<8x4xf32>
    %1040 = vector.extract_strided_slice %995 {offsets = [0, 0], sizes = [8, 124], strides = [1, 1]} : vector<8x128xf32> to vector<8x124xf32>
    %1041 = tpu.concatenate %1039, %1040 in 1 : vector<8x4xf32>, vector<8x124xf32> -> vector<8x128xf32>
    %1042 = arith.select %1034, %1041, %1032 : vector<8x128xi1>, vector<8x128xf32>
    %c5_i32_229 = arith.constant 5 : i32
    %1043 = vector.broadcast %c5_i32_229 : i32 to vector<8x128xi32>
    %1044 = arith.cmpi eq, %5, %1043 : vector<8x128xi32>
    %cst_230 = arith.constant 0.000000e+00 : f32
    %1045 = vector.broadcast %cst_230 : f32 to vector<8x5xf32>
    %1046 = vector.extract_strided_slice %994 {offsets = [0, 0], sizes = [8, 123], strides = [1, 1]} : vector<8x128xf32> to vector<8x123xf32>
    %1047 = tpu.concatenate %1045, %1046 in 1 : vector<8x5xf32>, vector<8x123xf32> -> vector<8x128xf32>
    %1048 = arith.select %1044, %1047, %1038 : vector<8x128xi1>, vector<8x128xf32>
    %cst_231 = arith.constant 0.000000e+00 : f32
    %1049 = vector.broadcast %cst_231 : f32 to vector<8x5xf32>
    %1050 = vector.extract_strided_slice %995 {offsets = [0, 0], sizes = [8, 123], strides = [1, 1]} : vector<8x128xf32> to vector<8x123xf32>
    %1051 = tpu.concatenate %1049, %1050 in 1 : vector<8x5xf32>, vector<8x123xf32> -> vector<8x128xf32>
    %1052 = arith.select %1044, %1051, %1042 : vector<8x128xi1>, vector<8x128xf32>
    %c6_i32_232 = arith.constant 6 : i32
    %1053 = vector.broadcast %c6_i32_232 : i32 to vector<8x128xi32>
    %1054 = arith.cmpi eq, %5, %1053 : vector<8x128xi32>
    %cst_233 = arith.constant 0.000000e+00 : f32
    %1055 = vector.broadcast %cst_233 : f32 to vector<8x6xf32>
    %1056 = vector.extract_strided_slice %994 {offsets = [0, 0], sizes = [8, 122], strides = [1, 1]} : vector<8x128xf32> to vector<8x122xf32>
    %1057 = tpu.concatenate %1055, %1056 in 1 : vector<8x6xf32>, vector<8x122xf32> -> vector<8x128xf32>
    %1058 = arith.select %1054, %1057, %1048 : vector<8x128xi1>, vector<8x128xf32>
    %cst_234 = arith.constant 0.000000e+00 : f32
    %1059 = vector.broadcast %cst_234 : f32 to vector<8x6xf32>
    %1060 = vector.extract_strided_slice %995 {offsets = [0, 0], sizes = [8, 122], strides = [1, 1]} : vector<8x128xf32> to vector<8x122xf32>
    %1061 = tpu.concatenate %1059, %1060 in 1 : vector<8x6xf32>, vector<8x122xf32> -> vector<8x128xf32>
    %1062 = arith.select %1054, %1061, %1052 : vector<8x128xi1>, vector<8x128xf32>
    %c7_i32_235 = arith.constant 7 : i32
    %1063 = vector.broadcast %c7_i32_235 : i32 to vector<8x128xi32>
    %1064 = arith.cmpi eq, %5, %1063 : vector<8x128xi32>
    %cst_236 = arith.constant 0.000000e+00 : f32
    %1065 = vector.broadcast %cst_236 : f32 to vector<8x7xf32>
    %1066 = vector.extract_strided_slice %994 {offsets = [0, 0], sizes = [8, 121], strides = [1, 1]} : vector<8x128xf32> to vector<8x121xf32>
    %1067 = tpu.concatenate %1065, %1066 in 1 : vector<8x7xf32>, vector<8x121xf32> -> vector<8x128xf32>
    %1068 = arith.select %1064, %1067, %1058 : vector<8x128xi1>, vector<8x128xf32>
    %cst_237 = arith.constant 0.000000e+00 : f32
    %1069 = vector.broadcast %cst_237 : f32 to vector<8x7xf32>
    %1070 = vector.extract_strided_slice %995 {offsets = [0, 0], sizes = [8, 121], strides = [1, 1]} : vector<8x128xf32> to vector<8x121xf32>
    %1071 = tpu.concatenate %1069, %1070 in 1 : vector<8x7xf32>, vector<8x121xf32> -> vector<8x128xf32>
    %1072 = arith.select %1064, %1071, %1062 : vector<8x128xi1>, vector<8x128xf32>
    %c8_i32_238 = arith.constant 8 : i32
    %1073 = vector.broadcast %c8_i32_238 : i32 to vector<8x128xi32>
    %1074 = arith.cmpi eq, %5, %1073 : vector<8x128xi32>
    %cst_239 = arith.constant 0.000000e+00 : f32
    %1075 = vector.broadcast %cst_239 : f32 to vector<8x8xf32>
    %1076 = vector.extract_strided_slice %994 {offsets = [0, 0], sizes = [8, 120], strides = [1, 1]} : vector<8x128xf32> to vector<8x120xf32>
    %1077 = tpu.concatenate %1075, %1076 in 1 : vector<8x8xf32>, vector<8x120xf32> -> vector<8x128xf32>
    %1078 = arith.select %1074, %1077, %1068 : vector<8x128xi1>, vector<8x128xf32>
    %cst_240 = arith.constant 0.000000e+00 : f32
    %1079 = vector.broadcast %cst_240 : f32 to vector<8x8xf32>
    %1080 = vector.extract_strided_slice %995 {offsets = [0, 0], sizes = [8, 120], strides = [1, 1]} : vector<8x128xf32> to vector<8x120xf32>
    %1081 = tpu.concatenate %1079, %1080 in 1 : vector<8x8xf32>, vector<8x120xf32> -> vector<8x128xf32>
    %1082 = arith.select %1074, %1081, %1072 : vector<8x128xi1>, vector<8x128xf32>
    %1083 = arith.addf %1078, %996 : vector<8x128xf32>
    %c6_241 = arith.constant 6 : index
    %c0_242 = arith.constant 0 : index
    %c0_243 = arith.constant 0 : index
    %1084 = vector.load %arg4[%c6_241, %c0_242, %c0_243] : memref<8x16x128xf32, #tpu.memory_space<vmem>>, vector<1x8x128xf32>
    %1085 = vector.shape_cast %1084 : vector<1x8x128xf32> to vector<8x128xf32>
    %1086 = vector.shape_cast %1083 : vector<8x128xf32> to vector<1x8x128xf32>
    tpu.vector_store %arg4[%c6_241, %c0_242, %c0_243], %1086 {strides = array<i32>} : memref<8x16x128xf32, #tpu.memory_space<vmem>>, vector<1x8x128xf32>,
    %1087 = arith.addf %1082, %996 : vector<8x128xf32>
    %c6_244 = arith.constant 6 : index
    %c8_245 = arith.constant 8 : index
    %c0_246 = arith.constant 0 : index
    %1088 = vector.load %arg4[%c6_244, %c8_245, %c0_246] : memref<8x16x128xf32, #tpu.memory_space<vmem>>, vector<1x8x128xf32>
    %1089 = vector.shape_cast %1088 : vector<1x8x128xf32> to vector<8x128xf32>
    %1090 = vector.shape_cast %1087 : vector<8x128xf32> to vector<1x8x128xf32>
    tpu.vector_store %arg4[%c6_244, %c8_245, %c0_246], %1090 {strides = array<i32>} : memref<8x16x128xf32, #tpu.memory_space<vmem>>, vector<1x8x128xf32>,
    %c7 = arith.constant 7 : index
    %c0_247 = arith.constant 0 : index
    %1091 = vector.load %arg3[%c7, %c0_247] : memref<8x148xf32, #tpu.memory_space<vmem>>, vector<1x148xf32>
    %1092 = vector.extract_strided_slice %1091 {offsets = [0, 4], sizes = [1, 144], strides = [1, 1]} : vector<1x148xf32> to vector<1x144xf32>
    %1093 = vector.extract_strided_slice %1091 {offsets = [0, 3], sizes = [1, 144], strides = [1, 1]} : vector<1x148xf32> to vector<1x144xf32>
    %1094 = arith.subf %1092, %1093 : vector<1x144xf32>
    %1095 = vector.extract_strided_slice %1091 {offsets = [0, 2], sizes = [1, 144], strides = [1, 1]} : vector<1x148xf32> to vector<1x144xf32>
    %1096 = arith.subf %1092, %1095 : vector<1x144xf32>
    %1097 = vector.extract_strided_slice %1091 {offsets = [0, 0], sizes = [1, 144], strides = [1, 1]} : vector<1x148xf32> to vector<1x144xf32>
    %1098 = arith.subf %1092, %1097 : vector<1x144xf32>
    %1099 = vector.extract_strided_slice %1091 {offsets = [0, 3], sizes = [1, 144], strides = [1, 1]} : vector<1x148xf32> to vector<1x144xf32>
    %1100 = arith.subf %1092, %1099 : vector<1x144xf32>
    %1101 = vector.extract_strided_slice %1091 {offsets = [0, 3], sizes = [1, 144], strides = [1, 1]} : vector<1x148xf32> to vector<1x144xf32>
    %1102 = arith.subf %1100, %1101 : vector<1x144xf32>
    %1103 = vector.extract_strided_slice %1091 {offsets = [0, 2], sizes = [1, 144], strides = [1, 1]} : vector<1x148xf32> to vector<1x144xf32>
    %1104 = arith.addf %1102, %1103 : vector<1x144xf32>
    %1105 = vector.broadcast %4 : vector<1x1xf32> to vector<1x144xf32>
    %1106 = arith.mulf %1104, %1105 : vector<1x144xf32>
    %1107 = tpu.concatenate %1094, %1096, %1098, %1106 in 0 : vector<1x144xf32>, vector<1x144xf32>, vector<1x144xf32>, vector<1x144xf32> -> vector<4x144xf32>
    %1108 = vector.extract_strided_slice %1107 {offsets = [0, 0], sizes = [4, 143], strides = [1, 1]} : vector<4x144xf32> to vector<4x143xf32>
    %1109 = vector.extract_strided_slice %1107 {offsets = [0, 1], sizes = [4, 143], strides = [1, 1]} : vector<4x144xf32> to vector<4x143xf32>
    %1110 = arith.addf %1108, %1109 : vector<4x143xf32>
    %1111 = vector.extract_strided_slice %1110 {offsets = [0, 0], sizes = [4, 141], strides = [1, 1]} : vector<4x143xf32> to vector<4x141xf32>
    %1112 = vector.extract_strided_slice %1110 {offsets = [0, 2], sizes = [4, 141], strides = [1, 1]} : vector<4x143xf32> to vector<4x141xf32>
    %1113 = arith.addf %1111, %1112 : vector<4x141xf32>
    %1114 = vector.extract_strided_slice %1113 {offsets = [0, 0], sizes = [4, 137], strides = [1, 1]} : vector<4x141xf32> to vector<4x137xf32>
    %1115 = vector.extract_strided_slice %1113 {offsets = [0, 4], sizes = [4, 137], strides = [1, 1]} : vector<4x141xf32> to vector<4x137xf32>
    %1116 = arith.addf %1114, %1115 : vector<4x137xf32>
    %1117 = vector.extract_strided_slice %1116 {offsets = [0, 0], sizes = [4, 136], strides = [1, 1]} : vector<4x137xf32> to vector<4x136xf32>
    %1118 = vector.extract_strided_slice %1107 {offsets = [0, 8], sizes = [4, 136], strides = [1, 1]} : vector<4x144xf32> to vector<4x136xf32>
    %1119 = arith.addf %1117, %1118 : vector<4x136xf32>
    %cst_248 = arith.constant 0.111111112 : f32
    %1120 = vector.broadcast %cst_248 : f32 to vector<4x136xf32>
    %1121 = arith.mulf %1119, %1120 : vector<4x136xf32>
    %1122 = vector.extract_strided_slice %1121 {offsets = [0, 0], sizes = [4, 135], strides = [1, 1]} : vector<4x136xf32> to vector<4x135xf32>
    %1123 = vector.extract_strided_slice %1121 {offsets = [0, 1], sizes = [4, 135], strides = [1, 1]} : vector<4x136xf32> to vector<4x135xf32>
    %1124 = arith.addf %1122, %1123 : vector<4x135xf32>
    %1125 = vector.extract_strided_slice %1124 {offsets = [0, 0], sizes = [4, 133], strides = [1, 1]} : vector<4x135xf32> to vector<4x133xf32>
    %1126 = vector.extract_strided_slice %1124 {offsets = [0, 2], sizes = [4, 133], strides = [1, 1]} : vector<4x135xf32> to vector<4x133xf32>
    %1127 = arith.addf %1125, %1126 : vector<4x133xf32>
    %1128 = vector.extract_strided_slice %1127 {offsets = [0, 0], sizes = [4, 129], strides = [1, 1]} : vector<4x133xf32> to vector<4x129xf32>
    %1129 = vector.extract_strided_slice %1127 {offsets = [0, 4], sizes = [4, 129], strides = [1, 1]} : vector<4x133xf32> to vector<4x129xf32>
    %1130 = arith.addf %1128, %1129 : vector<4x129xf32>
    %1131 = vector.extract_strided_slice %1130 {offsets = [0, 0], sizes = [4, 128], strides = [1, 1]} : vector<4x129xf32> to vector<4x128xf32>
    %1132 = vector.extract_strided_slice %1121 {offsets = [0, 8], sizes = [4, 128], strides = [1, 1]} : vector<4x136xf32> to vector<4x128xf32>
    %1133 = arith.addf %1131, %1132 : vector<4x128xf32>
    %cst_249 = arith.constant 0.111111112 : f32
    %1134 = vector.broadcast %cst_249 : f32 to vector<4x128xf32>
    %1135 = arith.mulf %1133, %1134 : vector<4x128xf32>
    %1136 = vector.extract_strided_slice %1121 {offsets = [0, 0], sizes = [4, 135], strides = [1, 1]} : vector<4x136xf32> to vector<4x135xf32>
    %1137 = vector.extract_strided_slice %1121 {offsets = [0, 1], sizes = [4, 135], strides = [1, 1]} : vector<4x136xf32> to vector<4x135xf32>
    %1138 = arith.maximumf %1136, %1137 : vector<4x135xf32>
    %1139 = vector.extract_strided_slice %1138 {offsets = [0, 0], sizes = [4, 133], strides = [1, 1]} : vector<4x135xf32> to vector<4x133xf32>
    %1140 = vector.extract_strided_slice %1138 {offsets = [0, 2], sizes = [4, 133], strides = [1, 1]} : vector<4x135xf32> to vector<4x133xf32>
    %1141 = arith.maximumf %1139, %1140 : vector<4x133xf32>
    %1142 = vector.extract_strided_slice %1141 {offsets = [0, 0], sizes = [4, 129], strides = [1, 1]} : vector<4x133xf32> to vector<4x129xf32>
    %1143 = vector.extract_strided_slice %1141 {offsets = [0, 4], sizes = [4, 129], strides = [1, 1]} : vector<4x133xf32> to vector<4x129xf32>
    %1144 = arith.maximumf %1142, %1143 : vector<4x129xf32>
    %1145 = vector.extract_strided_slice %1144 {offsets = [0, 0], sizes = [4, 128], strides = [1, 1]} : vector<4x129xf32> to vector<4x128xf32>
    %1146 = vector.extract_strided_slice %1144 {offsets = [0, 1], sizes = [4, 128], strides = [1, 1]} : vector<4x129xf32> to vector<4x128xf32>
    %1147 = arith.maximumf %1145, %1146 : vector<4x128xf32>
    %1148 = vector.extract_strided_slice %1121 {offsets = [0, 0], sizes = [4, 128], strides = [1, 1]} : vector<4x136xf32> to vector<4x128xf32>
    %1149 = tpu.concatenate %1135, %1135 in 0 : vector<4x128xf32>, vector<4x128xf32> -> vector<8x128xf32>
    %1150 = tpu.concatenate %1147, %1147 in 0 : vector<4x128xf32>, vector<4x128xf32> -> vector<8x128xf32>
    %1151 = tpu.concatenate %1148, %1148 in 0 : vector<4x128xf32>, vector<4x128xf32> -> vector<8x128xf32>
    %cst_250 = arith.constant 0.000000e+00 : f32
    %1152 = vector.broadcast %cst_250 : f32 to vector<8x128xf32>
    %cst_251 = arith.constant 0.000000e+00 : f32
    %1153 = vector.broadcast %cst_251 : f32 to vector<8x128xf32>
    %c0_i32_252 = arith.constant 0 : i32
    %1154 = vector.broadcast %c0_i32_252 : i32 to vector<8x128xi32>
    %1155 = arith.cmpi eq, %5, %1154 : vector<8x128xi32>
    %1156 = arith.select %1155, %1149, %1152 : vector<8x128xi1>, vector<8x128xf32>
    %1157 = arith.select %1155, %1150, %1153 : vector<8x128xi1>, vector<8x128xf32>
    %c1_i32_253 = arith.constant 1 : i32
    %1158 = vector.broadcast %c1_i32_253 : i32 to vector<8x128xi32>
    %1159 = arith.cmpi eq, %5, %1158 : vector<8x128xi32>
    %cst_254 = arith.constant 0.000000e+00 : f32
    %1160 = vector.broadcast %cst_254 : f32 to vector<8x1xf32>
    %1161 = vector.extract_strided_slice %1149 {offsets = [0, 0], sizes = [8, 127], strides = [1, 1]} : vector<8x128xf32> to vector<8x127xf32>
    %1162 = tpu.concatenate %1160, %1161 in 1 : vector<8x1xf32>, vector<8x127xf32> -> vector<8x128xf32>
    %1163 = arith.select %1159, %1162, %1156 : vector<8x128xi1>, vector<8x128xf32>
    %cst_255 = arith.constant 0.000000e+00 : f32
    %1164 = vector.broadcast %cst_255 : f32 to vector<8x1xf32>
    %1165 = vector.extract_strided_slice %1150 {offsets = [0, 0], sizes = [8, 127], strides = [1, 1]} : vector<8x128xf32> to vector<8x127xf32>
    %1166 = tpu.concatenate %1164, %1165 in 1 : vector<8x1xf32>, vector<8x127xf32> -> vector<8x128xf32>
    %1167 = arith.select %1159, %1166, %1157 : vector<8x128xi1>, vector<8x128xf32>
    %c2_i32_256 = arith.constant 2 : i32
    %1168 = vector.broadcast %c2_i32_256 : i32 to vector<8x128xi32>
    %1169 = arith.cmpi eq, %5, %1168 : vector<8x128xi32>
    %cst_257 = arith.constant 0.000000e+00 : f32
    %1170 = vector.broadcast %cst_257 : f32 to vector<8x2xf32>
    %1171 = vector.extract_strided_slice %1149 {offsets = [0, 0], sizes = [8, 126], strides = [1, 1]} : vector<8x128xf32> to vector<8x126xf32>
    %1172 = tpu.concatenate %1170, %1171 in 1 : vector<8x2xf32>, vector<8x126xf32> -> vector<8x128xf32>
    %1173 = arith.select %1169, %1172, %1163 : vector<8x128xi1>, vector<8x128xf32>
    %cst_258 = arith.constant 0.000000e+00 : f32
    %1174 = vector.broadcast %cst_258 : f32 to vector<8x2xf32>
    %1175 = vector.extract_strided_slice %1150 {offsets = [0, 0], sizes = [8, 126], strides = [1, 1]} : vector<8x128xf32> to vector<8x126xf32>
    %1176 = tpu.concatenate %1174, %1175 in 1 : vector<8x2xf32>, vector<8x126xf32> -> vector<8x128xf32>
    %1177 = arith.select %1169, %1176, %1167 : vector<8x128xi1>, vector<8x128xf32>
    %c3_i32_259 = arith.constant 3 : i32
    %1178 = vector.broadcast %c3_i32_259 : i32 to vector<8x128xi32>
    %1179 = arith.cmpi eq, %5, %1178 : vector<8x128xi32>
    %cst_260 = arith.constant 0.000000e+00 : f32
    %1180 = vector.broadcast %cst_260 : f32 to vector<8x3xf32>
    %1181 = vector.extract_strided_slice %1149 {offsets = [0, 0], sizes = [8, 125], strides = [1, 1]} : vector<8x128xf32> to vector<8x125xf32>
    %1182 = tpu.concatenate %1180, %1181 in 1 : vector<8x3xf32>, vector<8x125xf32> -> vector<8x128xf32>
    %1183 = arith.select %1179, %1182, %1173 : vector<8x128xi1>, vector<8x128xf32>
    %cst_261 = arith.constant 0.000000e+00 : f32
    %1184 = vector.broadcast %cst_261 : f32 to vector<8x3xf32>
    %1185 = vector.extract_strided_slice %1150 {offsets = [0, 0], sizes = [8, 125], strides = [1, 1]} : vector<8x128xf32> to vector<8x125xf32>
    %1186 = tpu.concatenate %1184, %1185 in 1 : vector<8x3xf32>, vector<8x125xf32> -> vector<8x128xf32>
    %1187 = arith.select %1179, %1186, %1177 : vector<8x128xi1>, vector<8x128xf32>
    %c4_i32_262 = arith.constant 4 : i32
    %1188 = vector.broadcast %c4_i32_262 : i32 to vector<8x128xi32>
    %1189 = arith.cmpi eq, %5, %1188 : vector<8x128xi32>
    %cst_263 = arith.constant 0.000000e+00 : f32
    %1190 = vector.broadcast %cst_263 : f32 to vector<8x4xf32>
    %1191 = vector.extract_strided_slice %1149 {offsets = [0, 0], sizes = [8, 124], strides = [1, 1]} : vector<8x128xf32> to vector<8x124xf32>
    %1192 = tpu.concatenate %1190, %1191 in 1 : vector<8x4xf32>, vector<8x124xf32> -> vector<8x128xf32>
    %1193 = arith.select %1189, %1192, %1183 : vector<8x128xi1>, vector<8x128xf32>
    %cst_264 = arith.constant 0.000000e+00 : f32
    %1194 = vector.broadcast %cst_264 : f32 to vector<8x4xf32>
    %1195 = vector.extract_strided_slice %1150 {offsets = [0, 0], sizes = [8, 124], strides = [1, 1]} : vector<8x128xf32> to vector<8x124xf32>
    %1196 = tpu.concatenate %1194, %1195 in 1 : vector<8x4xf32>, vector<8x124xf32> -> vector<8x128xf32>
    %1197 = arith.select %1189, %1196, %1187 : vector<8x128xi1>, vector<8x128xf32>
    %c5_i32_265 = arith.constant 5 : i32
    %1198 = vector.broadcast %c5_i32_265 : i32 to vector<8x128xi32>
    %1199 = arith.cmpi eq, %5, %1198 : vector<8x128xi32>
    %cst_266 = arith.constant 0.000000e+00 : f32
    %1200 = vector.broadcast %cst_266 : f32 to vector<8x5xf32>
    %1201 = vector.extract_strided_slice %1149 {offsets = [0, 0], sizes = [8, 123], strides = [1, 1]} : vector<8x128xf32> to vector<8x123xf32>
    %1202 = tpu.concatenate %1200, %1201 in 1 : vector<8x5xf32>, vector<8x123xf32> -> vector<8x128xf32>
    %1203 = arith.select %1199, %1202, %1193 : vector<8x128xi1>, vector<8x128xf32>
    %cst_267 = arith.constant 0.000000e+00 : f32
    %1204 = vector.broadcast %cst_267 : f32 to vector<8x5xf32>
    %1205 = vector.extract_strided_slice %1150 {offsets = [0, 0], sizes = [8, 123], strides = [1, 1]} : vector<8x128xf32> to vector<8x123xf32>
    %1206 = tpu.concatenate %1204, %1205 in 1 : vector<8x5xf32>, vector<8x123xf32> -> vector<8x128xf32>
    %1207 = arith.select %1199, %1206, %1197 : vector<8x128xi1>, vector<8x128xf32>
    %c6_i32_268 = arith.constant 6 : i32
    %1208 = vector.broadcast %c6_i32_268 : i32 to vector<8x128xi32>
    %1209 = arith.cmpi eq, %5, %1208 : vector<8x128xi32>
    %cst_269 = arith.constant 0.000000e+00 : f32
    %1210 = vector.broadcast %cst_269 : f32 to vector<8x6xf32>
    %1211 = vector.extract_strided_slice %1149 {offsets = [0, 0], sizes = [8, 122], strides = [1, 1]} : vector<8x128xf32> to vector<8x122xf32>
    %1212 = tpu.concatenate %1210, %1211 in 1 : vector<8x6xf32>, vector<8x122xf32> -> vector<8x128xf32>
    %1213 = arith.select %1209, %1212, %1203 : vector<8x128xi1>, vector<8x128xf32>
    %cst_270 = arith.constant 0.000000e+00 : f32
    %1214 = vector.broadcast %cst_270 : f32 to vector<8x6xf32>
    %1215 = vector.extract_strided_slice %1150 {offsets = [0, 0], sizes = [8, 122], strides = [1, 1]} : vector<8x128xf32> to vector<8x122xf32>
    %1216 = tpu.concatenate %1214, %1215 in 1 : vector<8x6xf32>, vector<8x122xf32> -> vector<8x128xf32>
    %1217 = arith.select %1209, %1216, %1207 : vector<8x128xi1>, vector<8x128xf32>
    %c7_i32_271 = arith.constant 7 : i32
    %1218 = vector.broadcast %c7_i32_271 : i32 to vector<8x128xi32>
    %1219 = arith.cmpi eq, %5, %1218 : vector<8x128xi32>
    %cst_272 = arith.constant 0.000000e+00 : f32
    %1220 = vector.broadcast %cst_272 : f32 to vector<8x7xf32>
    %1221 = vector.extract_strided_slice %1149 {offsets = [0, 0], sizes = [8, 121], strides = [1, 1]} : vector<8x128xf32> to vector<8x121xf32>
    %1222 = tpu.concatenate %1220, %1221 in 1 : vector<8x7xf32>, vector<8x121xf32> -> vector<8x128xf32>
    %1223 = arith.select %1219, %1222, %1213 : vector<8x128xi1>, vector<8x128xf32>
    %cst_273 = arith.constant 0.000000e+00 : f32
    %1224 = vector.broadcast %cst_273 : f32 to vector<8x7xf32>
    %1225 = vector.extract_strided_slice %1150 {offsets = [0, 0], sizes = [8, 121], strides = [1, 1]} : vector<8x128xf32> to vector<8x121xf32>
    %1226 = tpu.concatenate %1224, %1225 in 1 : vector<8x7xf32>, vector<8x121xf32> -> vector<8x128xf32>
    %1227 = arith.select %1219, %1226, %1217 : vector<8x128xi1>, vector<8x128xf32>
    %c8_i32_274 = arith.constant 8 : i32
    %1228 = vector.broadcast %c8_i32_274 : i32 to vector<8x128xi32>
    %1229 = arith.cmpi eq, %5, %1228 : vector<8x128xi32>
    %cst_275 = arith.constant 0.000000e+00 : f32
    %1230 = vector.broadcast %cst_275 : f32 to vector<8x8xf32>
    %1231 = vector.extract_strided_slice %1149 {offsets = [0, 0], sizes = [8, 120], strides = [1, 1]} : vector<8x128xf32> to vector<8x120xf32>
    %1232 = tpu.concatenate %1230, %1231 in 1 : vector<8x8xf32>, vector<8x120xf32> -> vector<8x128xf32>
    %1233 = arith.select %1229, %1232, %1223 : vector<8x128xi1>, vector<8x128xf32>
    %cst_276 = arith.constant 0.000000e+00 : f32
    %1234 = vector.broadcast %cst_276 : f32 to vector<8x8xf32>
    %1235 = vector.extract_strided_slice %1150 {offsets = [0, 0], sizes = [8, 120], strides = [1, 1]} : vector<8x128xf32> to vector<8x120xf32>
    %1236 = tpu.concatenate %1234, %1235 in 1 : vector<8x8xf32>, vector<8x120xf32> -> vector<8x128xf32>
    %1237 = arith.select %1229, %1236, %1227 : vector<8x128xi1>, vector<8x128xf32>
    %1238 = arith.addf %1233, %1151 : vector<8x128xf32>
    %c7_277 = arith.constant 7 : index
    %c0_278 = arith.constant 0 : index
    %c0_279 = arith.constant 0 : index
    %1239 = vector.load %arg4[%c7_277, %c0_278, %c0_279] : memref<8x16x128xf32, #tpu.memory_space<vmem>>, vector<1x8x128xf32>
    %1240 = vector.shape_cast %1239 : vector<1x8x128xf32> to vector<8x128xf32>
    %1241 = vector.shape_cast %1238 : vector<8x128xf32> to vector<1x8x128xf32>
    tpu.vector_store %arg4[%c7_277, %c0_278, %c0_279], %1241 {strides = array<i32>} : memref<8x16x128xf32, #tpu.memory_space<vmem>>, vector<1x8x128xf32>,
    %1242 = arith.addf %1237, %1151 : vector<8x128xf32>
    %c7_280 = arith.constant 7 : index
    %c8_281 = arith.constant 8 : index
    %c0_282 = arith.constant 0 : index
    %1243 = vector.load %arg4[%c7_280, %c8_281, %c0_282] : memref<8x16x128xf32, #tpu.memory_space<vmem>>, vector<1x8x128xf32>
    %1244 = vector.shape_cast %1243 : vector<1x8x128xf32> to vector<8x128xf32>
    %1245 = vector.shape_cast %1242 : vector<8x128xf32> to vector<1x8x128xf32>
    tpu.vector_store %arg4[%c7_280, %c8_281, %c0_282], %1245 {strides = array<i32>} : memref<8x16x128xf32, #tpu.memory_space<vmem>>, vector<1x8x128xf32>,
    return
  }
  func.func @transform_0(%arg0: i32) -> (i32, i32) {
    %c0_i32 = arith.constant 0 : i32
    %c0_i32_0 = arith.constant 0 : i32
    %c0_i32_1 = arith.constant 0 : i32
    return %c0_i32, %c0_i32_0 : i32, i32
  }
  func.func @transform_1(%arg0: i32) -> (i32, i32) {
    %c0_i32 = arith.constant 0 : i32
    %c0_i32_0 = arith.constant 0 : i32
    %c0_i32_1 = arith.constant 0 : i32
    return %c0_i32, %c0_i32_0 : i32, i32
  }
  func.func @transform_2(%arg0: i32) -> (i32, i32) {
    %c0_i32 = arith.constant 0 : i32
    %c0_i32_0 = arith.constant 0 : i32
    return %arg0, %c0_i32 : i32, i32
  }
  func.func @transform_3(%arg0: i32) -> (i32, i32, i32) {
    %c0_i32 = arith.constant 0 : i32
    %c0_i32_0 = arith.constant 0 : i32
    %c0_i32_1 = arith.constant 0 : i32
    return %arg0, %c0_i32, %c0_i32_0 : i32, i32, i32
  }
}

</mosaic_0001>

<bundles_post_ra>
// kernel: tpu_custom_call.1
= control target key start
LH: loop header
LB: loop body
LE: loop exit
PB: predicated region body
PF: predicated region fallthrough
CT: control target
= control target key end

     0   :  { %s5661_s0 = inlined_call_operand.<no memory space> [shape: f32[1,1], index: 0, kind: input, shape index: {}]   ;;  %s5662_s1 = inlined_call_operand.hbm [shape: s32[8,128], index: 1, kind: input, shape index: {}]   ;;  %s5663_s2 = inlined_call_operand.hbm [shape: f32[8,148], index: 2, kind: input, shape index: {}]   ;;  %s5664_s3 = inlined_call_operand.hbm [shape: f32[8,16,128], index: 3, kind: output, shape index: {}]  }
   0x1   :  { %v8_v0 = vstv %s5661_s0 }
   0x2   :  { %9 = vst [vmem:[#allocation2] sm:$0x1] %v8_v0 }
   0x3   :  { %10 = vsyncpa [#allocation4], 0 }
   0x4   :  { %11 = vsyncpa [#allocation7], 0 }
   0x5   :  { %12 = vsyncpa [#allocation5], 0  ;;  %s2922_s14 = smov [#allocation3]   ;;  %s2923_s16 = smov [#allocation6]  }
   0x6   :  { %s21_s15 = sshll.u32 %s2922_s14, 4  ;;  %s31_s17 = sshll.u32 %s2923_s16, 4  ;;  %s22_s15 = int_to_ptr.vmem [resolvable:$true] %s21_s15  ;;  %s32_s17 = int_to_ptr.vmem [resolvable:$true] %s31_s17 }
   0x7   :  { %s2850_s20 = scalar_lea.hbm %s5662_s1, 128 }
   0x8   :  { %p2851_p0 = scmp.ne.s32.totalorder %s5662_s1, %s2850_s20  ;;  %p2854_p1 = scmp.lt.u32.totalorder %s2850_s20, %s5662_s1 }
   0xa   :  { %p2856_p2 = pnand %p2854_p1, %p2851_p0 }
   0xc   :  { %2859 = shalt.err (!%p2856_p2)
}
   0xd   :  { %s2860_s24 = scalar_lea.vmem %s22_s15, 128  ;;  %p2865_p4 = scmp.lt.s32.totalorder %s22_s15, %s22_s15 }
   0xe   :  { %p2861_p3 = scmp.ne.s32.totalorder %s22_s15, %s2860_s24  ;;  %p2866_p5 = scmp.lt.s32.totalorder %s2860_s24, %s2860_s24 }
  0x10   :  { %p2867_p6 = por %p2866_p5, %p2865_p4 }
  0x12   :  { %p2868_p7 = pnand %p2867_p6, %p2861_p3 }
  0x14   :  { %2871 = shalt.err (!%p2868_p7)
}
  0x15   :  { %24 = dma.hbm_to_vmem [thread:$0]  %s5662_s1, 128, %s22_s15, [#allocation4]  }
  0x16   :  { %s2872_s29 = scalar_lea.hbm %s5663_s2, 256 }
  0x17   :  { %p2873_p8 = scmp.ne.s32.totalorder %s5663_s2, %s2872_s29  ;;  %p2876_p9 = scmp.lt.u32.totalorder %s2872_s29, %s5663_s2 }
  0x19   :  { %p2878_p10 = pnand %p2876_p9, %p2873_p8 }
  0x1b   :  { %2881 = shalt.err (!%p2878_p10)
}
  0x1c   :  { %s2882_s7 = scalar_lea.vmem %s32_s17, 256  ;;  %p2887_p12 = scmp.lt.s32.totalorder %s32_s17, %s32_s17 }
  0x1d   :  { %p2883_p11 = scmp.ne.s32.totalorder %s32_s17, %s2882_s7  ;;  %p2888_p13 = scmp.lt.s32.totalorder %s2882_s7, %s2882_s7 }
  0x1f   :  { %p2889_p0 = por %p2888_p13, %p2887_p12 }
  0x21   :  { %p2890_p1 = pnand %p2889_p0, %p2883_p11 }
  0x23   :  { %2893 = shalt.err (!%p2890_p1)
}
  0x24   :  { %34 = dma.hbm_to_vmem [thread:$0]  %s5663_s2, 256, %s32_s17, [#allocation7]  }
  0x25   :  { %2916 = dma.done.wait [#allocation4], 128  }
  0x26   :  { %2917 = vsyncadd [#allocation4], 4294967168 }
  0x27   :  { %2918 = dma.done.wait [#allocation7], 256  }
  0x28   :  { %2919 = vsyncadd [#allocation7], 4294967040  ;;  %v2924_v1 = vmov 0   ;;  %v2984_v2 = vld [vmem:[#allocation6] ss:$8 sm:$0x3]  ;;  %v75_v17 = vlaneseq }
  0x29   :  { %2848 = vset.pattern.permute.xlu1 %v2924_v1  ;;  %2849 = vset.pattern.permute.xlu0 %v2924_v1  ;;  %s2925_s9 = smov 4   ;;  %s2926_s10 = smov 1   ;;  %v2990_v3 = vld [vmem:[#allocation6 + $0x1] ss:$8 sm:$0x3]  ;;  %vm5688_vm0 = vcmask 7168  }
  0x2a   :  { %61 = vrot.lane.b32.xlu1 %v2984_v2, %s2925_s9  ;;  %47 = vrot.lane.b32.xlu0 %v2984_v2, %s2926_s10  ;;  %v41_v4 = vld [vmem:[#allocation2] sm:$0x1]  ;;  %s2927_s2 = smov 2   ;;  %v2998_v6 = vld [vmem:[#allocation6 + $0x2] ss:$8 sm:$0x3] }
  0x2b   :  { %v2832_v5 = vclamps-f32 %v41_v4, 1.0  ;;  %v3008_v7 = vld [vmem:[#allocation6 + $0x4] ss:$8 sm:$0x3]  ;;  %vm5689_vm1 = vcmask 15360   ;;  %v76_v23 = vshrl.u32 %v75_v17, 7 }
  0x2c   :  { %v3010_v8 = vld [vmem:[#allocation6 + $0x3] ss:$8 sm:$0x3]  ;;  %v3016_v9 = vld [vmem:[#allocation6 + $0x6] ss:$8 sm:$0x3] }
  0x2d   :  { %v3018_v10 = vld [vmem:[#allocation6 + $0x5] ss:$8 sm:$0x3]  ;;  %v3024_v11 = vld [vmem:[#allocation6 + $0x7] ss:$8 sm:$0x3] }
  0x2e   :  { %429 = vrot.lane.b32.xlu1 %v2990_v3, %s2927_s2  ;;  %54 = vrot.lane.b32.xlu0 %v2984_v2, %s2927_s2  ;;  %vm5684_vm2 = vcmask 31744   ;;  %v3053_v31 = vsub.s32 1, %v76_v23  ;;  %v3056_v33 = vsub.s32 0, %v76_v23  ;;  %vm124_vm3 = vcmask 1040384   ;;  %s2928_s11 = smov 127   ;;  %s2929_s12 = smov 120  }
  0x2f   :  { %vm127_vm4 = vcmask 1041408   ;;  %vm130_vm5 = vcmask 1042432   ;;  %s2930_s13 = smov 126   ;;  %vm5687_vm6 = vcmask 1039360   ;;  %s2931_s14 = smov 124   ;;  %vm5694_vm7 = vcmask 1031168  }
  0x30   :  { %vm163_vm8 = vcmask 1014784   ;;  %vm173_vm9 = vcmask 982016   ;;  %vm266_vm10 = vcmask 1043456   ;;  %s2932_s15 = smov 125   ;;  %s2933_s16 = smov 3   ;;  %vm307_vm11 = vcmask 1022976  }
  0x31   :  { %vm5680_vm13 = vcmask 23552   ;;  %s2934_s17 = smov [#allocation8]  }
  0x32   :  { %423 = vrot.lane.b32.xlu0 %v2990_v3, %s2926_s10  ;;  %72 = vperm.xlu1 %2848, %v2832_v5   ;;  %s2819_s18 = sshll.u32 %s2934_s17, 4  ;;  %s2820_s18 = int_to_ptr.vmem [resolvable:$true] %s2819_s18 }
  0x33   :  { %s2894_s19 = scalar_lea.vmem %s2820_s18, 2048  ;;  %p2899_p3 = scmp.lt.s32.totalorder %s2820_s18, %s2820_s18 }
  0x34   :  { %p2895_p2 = scmp.ne.s32.totalorder %s2820_s18, %s2894_s19  ;;  %p2900_p4 = scmp.lt.s32.totalorder %s2894_s19, %s2894_s19 }
  0x36   :  { %435 = vrot.lane.b32.xlu0 %v2990_v3, %s2925_s9  ;;  %765 = vrot.lane.b32.xlu1 %v2998_v6, %s2926_s10  ;;  %p2901_p5 = por %p2900_p4, %p2899_p3 }
  0x38   :  { %p2902_p6 = pnand %p2901_p5, %p2895_p2 }
  0x3a   :  { %771 = vrot.lane.b32.xlu0 %v2998_v6, %s2927_s2  ;;  %777 = vrot.lane.b32.xlu1 %v2998_v6, %s2925_s9 }
  0x3e   :  { %1449 = vrot.lane.b32.xlu0 %v3008_v7, %s2926_s10  ;;  %1107 = vrot.lane.b32.xlu1 %v3010_v8, %s2926_s10 }
  0x42   :  { %2133 = vrot.lane.b32.xlu0 %v3016_v9, %s2926_s10  ;;  %1791 = vrot.lane.b32.xlu1 %v3018_v10, %s2926_s10 }
  0x46   :  { %1113 = vrot.lane.b32.xlu0 %v3010_v8, %s2927_s2  ;;  %2475 = vrot.lane.b32.xlu1 %v3024_v11, %s2926_s10 }
  0x4a   :  { %1797 = vrot.lane.b32.xlu0 %v3018_v10, %s2927_s2  ;;  %1455 = vrot.lane.b32.xlu1 %v3008_v7, %s2927_s2 }
  0x4e   :  { %2481 = vrot.lane.b32.xlu0 %v3024_v11, %s2927_s2  ;;  %2139 = vrot.lane.b32.xlu1 %v3016_v9, %s2927_s2 }
  0x52   :  { %1461 = vrot.lane.b32.xlu0 %v3008_v7, %s2925_s9  ;;  %1119 = vrot.lane.b32.xlu1 %v3010_v8, %s2925_s9 }
  0x56   :  { %2145 = vrot.lane.b32.xlu0 %v3016_v9, %s2925_s9  ;;  %1803 = vrot.lane.b32.xlu1 %v3018_v10, %s2925_s9 }
  0x5a   :  { %2487 = vrot.lane.b32.xlu1 %v3024_v11, %s2925_s9 }
  0x9c   :  { %v48_v12 = vpop.permute.xlu0 %47  ;;  %v62_v18 = vpop.permute.xlu1 %61 }
  0x9d   :  { %v49_v14 = vrot.slane %v48_v12, 7  ;;  %v63_v24 = vrot.slane %v62_v18, 7 }
  0x9f   :  { %v51_v19 = vsel %vm5688_vm0, %v49_v14, %v48_v12  ;;  %v65_v32 = vsel %vm5684_vm2, %v63_v24, %v62_v18 }
  0xa0   :  { %v55_v13 = vpop.permute.xlu0 %54  ;;  %v53_v25 = vsub.f32 %v2984_v2, %v51_v19  ;;  %v430_v27 = vpop.permute.xlu1 %429  ;;  %v67_v41 = vsub.f32 %v2984_v2, %v65_v32 }
  0xa1   :  { %v56_v16 = vrot.slane %v55_v13, 7  ;;  %v431_v34 = vrot.slane %v430_v27, 7 }
  0xa2   :  { %v68_v26 = vsub.f32 %v53_v25, %v51_v19  ;;  %v88_v37 = vrot.slane %v53_v25, %v3053_v31  ;;  %v84_v42 = vrot.slane %v53_v25, %v3056_v33  ;;  %v110_v53 = vrot.slane %v67_v41, %v3053_v31 }
  0xa3   :  { %v58_v22 = vsel %vm5689_vm1, %v56_v16, %v55_v13  ;;  %v432_v46 = vsel %vm5689_vm1, %v431_v34, %v430_v27  ;;  %v106_v56 = vrot.slane %v67_v41, %v3056_v33 }
  0xa4   :  { %v424_v15 = vpop.permute.xlu0 %423  ;;  %v60_v28 = vsub.f32 %v2984_v2, %v58_v22  ;;  %v69_v38 = vadd.f32 %v68_v26, %v58_v22  ;;  %v434_v57 = vsub.f32 %v2990_v3, %v432_v46 }
  0xa5   :  { %v425_v20 = vrot.slane %v424_v15, 7 }
  0xa6   :  { %v99_v39 = vrot.slane %v60_v28, %v3053_v31  ;;  %v95_v43 = vrot.slane %v60_v28, %v3056_v33  ;;  %v459_v19 = vrot.slane %v434_v57, %v3056_v33  ;;  %v463_v23 = vrot.slane %v434_v57, %v3053_v31 }
  0xa7   :  { %v426_v29 = vsel %vm5688_vm0, %v425_v20, %v424_v15 }
  0xa8   :  { %v436_v21 = vpop.permute.xlu0 %435  ;;  %v3059_v35 = vsub.f32 %v2990_v3, %v426_v29  ;;  %v126_v52 = vsel %vm124_vm3, %v88_v37, %v99_v39  ;;  %v125_v55 = vsel %vm124_vm3, %v84_v42, %v95_v43 }
  0xa9   :  { %v437_v36 = vrot.slane %v436_v21, 7  ;;  %v129_v62 = vsel %vm127_vm4, %v126_v52, %v110_v53  ;;  %v128_v4 = vsel %vm127_vm4, %v125_v55, %v106_v56 }
  0xaa   :  { %v441_v47 = vsub.f32 %v3059_v35, %v426_v29  ;;  %v448_v0 = vrot.slane %v3059_v35, %v3056_v33  ;;  %v452_v16 = vrot.slane %v3059_v35, %v3053_v31 }
  0xab   :  { %v438_v48 = vsel %vm5684_vm2, %v437_v36, %v436_v21 }
  0xac   :  { %v772_v30 = vpop.permute.xlu0 %771  ;;  %v440_v58 = vsub.f32 %v2990_v3, %v438_v48  ;;  %v442_v60 = vadd.f32 %v441_v47, %v432_v46  ;;  %v489_v36 = vsel %vm124_vm3, %v452_v16, %v463_v23 }
  0xad   :  { %v773_v49 = vrot.slane %v772_v30, 7 }
  0xae   :  { %v470_v17 = vrot.slane %v440_v58, %v3056_v33  ;;  %v474_v20 = vrot.slane %v440_v58, %v3053_v31 }
  0xaf   :  { %v774_v1 = vsel %vm5689_vm1, %v773_v49, %v772_v30  ;;  %v488_v30 = vsel %vm124_vm3, %v448_v0, %v459_v19 }
  0xb0   :  { %v3063_v40 = vpop.permute.xlu0 %1449  ;;  %v776_v21 = vsub.f32 %v2998_v6, %v774_v1  ;;  %v490_v35 = vsel %vm127_vm4, %v488_v30, %v470_v17  ;;  %v491_v41 = vsel %vm127_vm4, %v489_v36, %v474_v20 }
  0xb1   :  { %v73_v44 = vpop.permute.xlu1 %72  ;;  %v1451_v24 = vrot.slane %v3063_v40, 7 }
  0xb2   :  { %v3069_v45 = vrot.slane %v73_v44, %v3056_v33  ;;  %v801_v37 = vrot.slane %v776_v21, %v3056_v33 }
  0xb4   :  { %v3074_v50 = vpop.permute.xlu0 %2133  ;;  %v79_v51 = vmul.f32 %v3069_v45, %v69_v38  ;;  %v443_v15 = vmul.f32 %v442_v60, %v3069_v45  ;;  %v805_v38 = vrot.slane %v776_v21, %v3053_v31 }
  0xb5   :  { %v766_v54 = vpop.permute.xlu1 %765  ;;  %v2135_v43 = vrot.slane %v3074_v50, 7 }
  0xb6   :  { %v767_v59 = vrot.slane %v766_v54, 7  ;;  %v121_v61 = vrot.slane %v79_v51, %v3053_v31  ;;  %v117_v63 = vrot.slane %v79_v51, %v3056_v33  ;;  %v481_v29 = vrot.slane %v443_v15, %v3056_v33 }
  0xb7   :  { %v485_v32 = vrot.slane %v443_v15, %v3053_v31  ;;  %v3152_v56 = vsel %vm5688_vm0, %v2135_v43, %v3074_v50 }
  0xb8   :  { %v768_v2 = vsel %vm5688_vm0, %v767_v59, %v766_v54  ;;  %v1114_v5 = vpop.permute.xlu0 %1113  ;;  %v3093_v12 = vsel %vm130_vm5, %v129_v62, %v121_v61  ;;  %v3096_v13 = vsel %vm130_vm5, %v128_v4, %v117_v63  ;;  %v3133_v48 = vsel %vm130_vm5, %v490_v35, %v481_v29 }
  0xb9   :  { %v770_v3 = vsub.f32 %v2998_v6, %v768_v2  ;;  %v778_v14 = vpop.permute.xlu1 %777  ;;  %137 = vrot.lane.b32.xlu1 %v3093_v12, %s2928_s11  ;;  %135 = vrot.lane.b32.xlu0 %v3096_v13, %s2928_s11  ;;  %v1115_v44 = vrot.slane %v1114_v5, 7  ;;  %v3136_v49 = vsel %vm130_vm5, %v491_v41, %v485_v32 }
  0xba   :  { %v779_v18 = vrot.slane %v778_v14, 7 }
  0xbb   :  { %v783_v22 = vsub.f32 %v770_v3, %v768_v2  ;;  %v790_v42 = vrot.slane %v770_v3, %v3056_v33  ;;  %v794_v47 = vrot.slane %v770_v3, %v3053_v31  ;;  %v1116_v57 = vsel %vm5689_vm1, %v1115_v44, %v1114_v5 }
  0xbc   :  { %v780_v25 = vsel %vm5684_vm2, %v779_v18, %v778_v14  ;;  %v1798_v26 = vpop.permute.xlu0 %1797  ;;  %v3170_v3 = vsub.f32 %v3016_v9, %v3152_v56  ;;  %v1118_v14 = vsub.f32 %v3010_v8, %v1116_v57 }
  0xbd   :  { %v784_v27 = vadd.f32 %v783_v22, %v774_v1  ;;  %v1108_v28 = vpop.permute.xlu1 %1107  ;;  %v782_v34 = vsub.f32 %v2998_v6, %v780_v25  ;;  %171 = vrot.lane.b32.xlu1 %v3093_v12, %s2929_s12  ;;  %169 = vrot.lane.b32.xlu0 %v3096_v13, %s2929_s12  ;;  %v3127_v6 = vsel %vm5688_vm0, %v1451_v24, %v3063_v40  ;;  %v1799_v58 = vrot.slane %v1798_v26, 7 }
  0xbe   :  { %v1109_v39 = vrot.slane %v1108_v28, 7  ;;  %v3147_v54 = vsub.f32 %v3008_v7, %v3127_v6  ;;  %v831_v62 = vsel %vm124_vm3, %v794_v47, %v805_v38  ;;  %v830_v0 = vsel %vm124_vm3, %v790_v42, %v801_v37 }
  0xbf   :  { %v785_v52 = vmul.f32 %v784_v27, %v3069_v45  ;;  %v812_v40 = vrot.slane %v782_v34, %v3056_v33  ;;  %v816_v53 = vrot.slane %v782_v34, %v3053_v31  ;;  %v1800_v16 = vsel %vm5689_vm1, %v1799_v58, %v1798_v26 }
  0xc0   :  { %v2482_v46 = vpop.permute.xlu0 %2481  ;;  %v1110_v55 = vsel %vm5688_vm0, %v1109_v39, %v1108_v28  ;;  %v1467_v21 = vsub.f32 %v3147_v54, %v3127_v6  ;;  %v1474_v25 = vrot.slane %v3147_v54, %v3056_v33  ;;  %v1478_v26 = vrot.slane %v3147_v54, %v3053_v31 }
  0xc1   :  { %v1792_v51 = vpop.permute.xlu1 %1791  ;;  %496 = vrot.lane.b32.xlu1 %v3133_v48, %s2928_s11  ;;  %498 = vrot.lane.b32.xlu0 %v3136_v49, %s2928_s11  ;;  %v827_v61 = vrot.slane %v785_v52, %v3053_v31  ;;  %v823_v63 = vrot.slane %v785_v52, %v3056_v33  ;;  %v3160_v1 = vsub.f32 %v3010_v8, %v1110_v55  ;;  %v2483_v2 = vrot.slane %v2482_v46, 7 }
  0xc2   :  { %v1793_v59 = vrot.slane %v1792_v51, 7  ;;  %v833_v50 = vsel %vm127_vm4, %v831_v62, %v816_v53  ;;  %v832_v4 = vsel %vm127_vm4, %v830_v0, %v812_v40  ;;  %v2151_v27 = vsub.f32 %v3170_v3, %v3152_v56 }
  0xc3   :  { %v3176_v17 = vsel %vm130_vm5, %v833_v50, %v827_v61  ;;  %v3179_v18 = vsel %vm130_vm5, %v832_v4, %v823_v63  ;;  %v1125_v22 = vsub.f32 %v3160_v1, %v1110_v55  ;;  %v3185_v23 = vsel %vm5689_vm1, %v2483_v2, %v2482_v46 }
  0xc4   :  { %v1462_v5 = vpop.permute.xlu0 %1461  ;;  %v1794_v15 = vsel %vm5688_vm0, %v1793_v59, %v1792_v51  ;;  %v2158_v29 = vrot.slane %v3170_v3, %v3056_v33  ;;  %v1147_v30 = vrot.slane %v1118_v14, %v3053_v31  ;;  %v3204_v32 = vsub.f32 %v3018_v10, %v1800_v16 }
  0xc5   :  { %v2476_v60 = vpop.permute.xlu1 %2475  ;;  %527 = vrot.lane.b32.xlu1 %v3133_v48, %s2929_s12  ;;  %529 = vrot.lane.b32.xlu0 %v3136_v49, %s2929_s12  ;;  %v1463_v20 = vrot.slane %v1462_v5, 7  ;;  %v3198_v28 = vsub.f32 %v3018_v10, %v1794_v15  ;;  %v1136_v36 = vrot.slane %v3160_v1, %v3053_v31  ;;  %v3211_v37 = vsub.f32 %v3024_v11, %v3185_v23 }
  0xc6   :  { %v2162_v6 = vrot.slane %v3170_v3, %v3053_v31  ;;  %v1143_v42 = vrot.slane %v1118_v14, %v3056_v33  ;;  %v1126_v43 = vadd.f32 %v1125_v22, %v1116_v57  ;;  %v2477_v44 = vrot.slane %v2476_v60, 7 }
  0xc7   :  { %v1464_v39 = vsel %vm5684_vm2, %v1463_v20, %v1462_v5  ;;  %v1132_v46 = vrot.slane %v3160_v1, %v3056_v33  ;;  %v1809_v47 = vsub.f32 %v3198_v28, %v1794_v15  ;;  %v1827_v40 = vrot.slane %v3204_v32, %v3056_v33 }
  0xc8   :  { %v2146_v35 = vpop.permute.xlu0 %2145  ;;  %v1831_v53 = vrot.slane %v3204_v32, %v3053_v31  ;;  %v1466_v55 = vsub.f32 %v3008_v7, %v1464_v39  ;;  %v1816_v56 = vrot.slane %v3198_v28, %v3056_v33  ;;  %v2511_v57 = vrot.slane %v3211_v37, %v3056_v33 }
  0xc9   :  { %v1456_v19 = vpop.permute.xlu1 %1455  ;;  %840 = vrot.lane.b32.xlu1 %v3176_v17, %s2928_s11  ;;  %838 = vrot.lane.b32.xlu0 %v3179_v18, %s2928_s11  ;;  %v2147_v52 = vrot.slane %v2146_v35, 7  ;;  %v1173_v61 = vsel %vm124_vm3, %v1136_v36, %v1147_v30  ;;  %v1820_v62 = vrot.slane %v3198_v28, %v3053_v31  ;;  %v2478_v63 = vsel %vm5688_vm0, %v2477_v44, %v2476_v60 }
  0xca   :  { %v1457_v24 = vrot.slane %v1456_v19, 7  ;;  %v1127_v1 = vmul.f32 %v1126_v43, %v3069_v45  ;;  %v1172_v4 = vsel %vm124_vm3, %v1132_v46, %v1143_v42  ;;  %v1500_v15 = vrot.slane %v1466_v55, %v3053_v31 }
  0xcb   :  { %v2148_v50 = vsel %vm5684_vm2, %v2147_v52, %v2146_v35  ;;  %v3248_v60 = vsub.f32 %v3024_v11, %v2478_v63  ;;  %v1496_v20 = vrot.slane %v1466_v55, %v3056_v33 }
  0xcc   :  { %v1458_v34 = vsel %vm5689_vm1, %v1457_v24, %v1456_v19  ;;  %v2150_v28 = vsub.f32 %v3016_v9, %v2148_v50  ;;  %v1169_v32 = vrot.slane %v1127_v1, %v3053_v31  ;;  %v1856_v50 = vsel %vm124_vm3, %v1816_v56, %v1827_v40 }
  0xcd   :  { %v1460_v38 = vsub.f32 %v3008_v7, %v1458_v34  ;;  %v2140_v41 = vpop.permute.xlu1 %2139  ;;  %871 = vrot.lane.b32.xlu1 %v3176_v17, %s2929_s12  ;;  %869 = vrot.lane.b32.xlu0 %v3179_v18, %s2929_s12  ;;  %v1468_v54 = vadd.f32 %v1467_v21, %v1458_v34  ;;  %v1810_v7 = vadd.f32 %v1809_v47, %v1800_v16 }
  0xce   :  { %v2141_v51 = vrot.slane %v2140_v41, 7  ;;  %v2493_v55 = vsub.f32 %v3248_v60, %v2478_v63 }
  0xcf   :  { %v1489_v58 = vrot.slane %v1460_v38, %v3053_v31  ;;  %v1469_v5 = vmul.f32 %v1468_v54, %v3069_v45  ;;  %v1485_v14 = vrot.slane %v1460_v38, %v3056_v33  ;;  %v1165_v38 = vrot.slane %v1127_v1, %v3056_v33 }
  0xd0   :  { %v2142_v2 = vsel %vm5689_vm1, %v2141_v51, %v2140_v41  ;;  %v2180_v1 = vrot.slane %v2150_v28, %v3056_v33  ;;  %v2494_v56 = vadd.f32 %v2493_v55, %v3185_v23 }
  0xd1   :  { %v1120_v59 = vpop.permute.xlu1 %1119  ;;  %v1515_v22 = vsel %vm124_vm3, %v1478_v26, %v1489_v58  ;;  %v2144_v24 = vsub.f32 %v3016_v9, %v2142_v2  ;;  %v2152_v34 = vadd.f32 %v2151_v27, %v2142_v2  ;;  %v1514_v41 = vsel %vm124_vm3, %v1474_v25, %v1485_v14 }
  0xd2   :  { %v1121_v0 = vrot.slane %v1120_v59, 7  ;;  %v1517_v26 = vsel %vm127_vm4, %v1515_v22, %v1500_v15  ;;  %v1507_v44 = vrot.slane %v1469_v5, %v3056_v33  ;;  %v1516_v54 = vsel %vm127_vm4, %v1514_v41, %v1496_v20 }
  0xd3   :  { %v2173_v46 = vrot.slane %v2144_v24, %v3053_v31  ;;  %v2169_v58 = vrot.slane %v2144_v24, %v3056_v33  ;;  %v1857_v2 = vsel %vm124_vm3, %v1820_v62, %v1831_v53  ;;  %v2504_v20 = vrot.slane %v3248_v60, %v3053_v31 }
  0xd4   :  { %v1122_v19 = vsel %vm5684_vm2, %v1121_v0, %v1120_v59  ;;  %v2153_v0 = vmul.f32 %v2152_v34, %v3069_v45  ;;  %v3294_v63 = vsel %vm130_vm5, %v1516_v54, %v1507_v44 }
  0xd5   :  { %v1124_v16 = vsub.f32 %v3010_v8, %v1122_v19  ;;  %v1804_v21 = vpop.permute.xlu1 %1803  ;;  %v1511_v8 = vrot.slane %v1469_v5, %v3053_v31  ;;  %v2500_v19 = vrot.slane %v3248_v60, %v3056_v33 }
  0xd6   :  { %v1805_v30 = vrot.slane %v1804_v21, 7  ;;  %v2195_v23 = vrot.slane %v2153_v0, %v3053_v31 }
  0xd7   :  { %v1154_v35 = vrot.slane %v1124_v16, %v3056_v33  ;;  %v1158_v36 = vrot.slane %v1124_v16, %v3053_v31  ;;  %v3291_v5 = vsel %vm130_vm5, %v1517_v26, %v1511_v8 }
  0xd8   :  { %v1806_v39 = vsel %vm5684_vm2, %v1805_v30, %v1804_v21 }
  0xd9   :  { %v1808_v9 = vsub.f32 %v3018_v10, %v1806_v39  ;;  %v2488_v42 = vpop.permute.xlu1 %2487  ;;  %v1175_v43 = vsel %vm127_vm4, %v1173_v61, %v1158_v36  ;;  %v1174_v27 = vsel %vm127_vm4, %v1172_v4, %v1154_v35  ;;  %v1811_v61 = vmul.f32 %v1810_v7, %v3069_v45 }
  0xda   :  { %v2489_v47 = vrot.slane %v2488_v42, 7  ;;  %v3269_v51 = vsel %vm130_vm5, %v1175_v43, %v1169_v32  ;;  %v3272_v52 = vsel %vm130_vm5, %v1174_v27, %v1165_v38  ;;  %v2184_v4 = vrot.slane %v2150_v28, %v3053_v31 }
  0xdb   :  { %v1838_v25 = vrot.slane %v1808_v9, %v3056_v33  ;;  %v1842_v10 = vrot.slane %v1808_v9, %v3053_v31  ;;  %1182 = vrot.lane.b32.xlu0 %v3269_v51, %s2928_s11  ;;  %1180 = vrot.lane.b32.xlu1 %v3272_v52, %s2928_s11  ;;  %v2199_v7 = vsel %vm124_vm3, %v2162_v6, %v2173_v46 }
  0xdc   :  { %v2490_v59 = vsel %vm5684_vm2, %v2489_v47, %v2488_v42  ;;  %v1853_v62 = vrot.slane %v1811_v61, %v3053_v31  ;;  %v1849_v15 = vrot.slane %v1811_v61, %v3056_v33  ;;  %v2515_v6 = vrot.slane %v3211_v37, %v3053_v31 }
  0xdd   :  { %v2492_v14 = vsub.f32 %v3024_v11, %v2490_v59  ;;  %v1859_v40 = vsel %vm127_vm4, %v1857_v2, %v1842_v10  ;;  %v1858_v53 = vsel %vm127_vm4, %v1856_v50, %v1838_v25  ;;  %v2198_v11 = vsel %vm124_vm3, %v2158_v29, %v2169_v58 }
  0xde   :  { %v3322_v16 = vsel %vm130_vm5, %v1859_v40, %v1853_v62  ;;  %v3325_v21 = vsel %vm130_vm5, %v1858_v53, %v1849_v15  ;;  %v2201_v3 = vsel %vm127_vm4, %v2199_v7, %v2184_v4  ;;  %v2191_v29 = vrot.slane %v2153_v0, %v3056_v33 }
  0xdf   :  { %1524 = vrot.lane.b32.xlu0 %v3291_v5, %s2928_s11  ;;  %1522 = vrot.lane.b32.xlu1 %v3294_v63, %s2928_s11  ;;  %v2522_v22 = vrot.slane %v2492_v14, %v3056_v33  ;;  %v2526_v24 = vrot.slane %v2492_v14, %v3053_v31  ;;  %v2200_v60 = vsel %vm127_vm4, %v2198_v11, %v2180_v1 }
  0xe0   :  { %v2495_v28 = vmul.f32 %v2494_v56, %v3069_v45  ;;  %v3338_v30 = vsel %vm130_vm5, %v2201_v3, %v2195_v23  ;;  %v3341_v32 = vsel %vm130_vm5, %v2200_v60, %v2191_v29  ;;  %v2541_v34 = vsel %vm124_vm3, %v2504_v20, %v2515_v6 }
  0xe1   :  { %v2540_v35 = vsel %vm124_vm3, %v2500_v19, %v2511_v57  ;;  %v2543_v45 = vsel %vm127_vm4, %v2541_v34, %v2526_v24 }
  0xe2   :  { %v2542_v36 = vsel %vm127_vm4, %v2540_v35, %v2522_v22  ;;  %v2537_v38 = vrot.slane %v2495_v28, %v3053_v31  ;;  %v2533_v39 = vrot.slane %v2495_v28, %v3056_v33 }
  0xe3   :  { %1866 = vrot.lane.b32.xlu0 %v3322_v16, %s2928_s11  ;;  %1864 = vrot.lane.b32.xlu1 %v3325_v21, %s2928_s11 }
  0xe4   :  { %v3357_v8 = vsel %vm130_vm5, %v2543_v45, %v2537_v38  ;;  %v3360_v37 = vsel %vm130_vm5, %v2542_v36, %v2533_v39  ;;  %vm5685_vm5 = vcmask 39936  }
  0xe7   :  { %2208 = vrot.lane.b32.xlu0 %v3338_v30, %s2928_s11  ;;  %2206 = vrot.lane.b32.xlu1 %v3341_v32, %s2928_s11 }
  0xeb   :  { %2550 = vrot.lane.b32.xlu0 %v3357_v8, %s2928_s11  ;;  %2548 = vrot.lane.b32.xlu1 %v3360_v37, %s2928_s11 }
  0xef   :  { %1213 = vrot.lane.b32.xlu0 %v3269_v51, %s2929_s12  ;;  %1211 = vrot.lane.b32.xlu1 %v3272_v52, %s2929_s12 }
  0xf3   :  { %1553 = vrot.lane.b32.xlu0 %v3294_v63, %s2929_s12  ;;  %1555 = vrot.lane.b32.xlu1 %v3291_v5, %s2929_s12 }
  0xf7   :  { %1895 = vrot.lane.b32.xlu0 %v3325_v21, %s2929_s12  ;;  %1897 = vrot.lane.b32.xlu1 %v3322_v16, %s2929_s12 }
  0xfb   :  { %2237 = vrot.lane.b32.xlu0 %v3341_v32, %s2929_s12  ;;  %2239 = vrot.lane.b32.xlu1 %v3338_v30, %s2929_s12 }
  0xff   :  { %2579 = vrot.lane.b32.xlu0 %v3360_v37, %s2929_s12  ;;  %2581 = vrot.lane.b32.xlu1 %v3357_v8, %s2929_s12 }
 0x12b   :  { %v136_v31 = vpop.permute.xlu0 %135  ;;  %v138_v33 = vpop.permute.xlu1 %137 }
 0x12c   :  { %v3387_v57 = vadd.f32 %v138_v33, %v3093_v12  ;;  %v140_v19 = vsel %vm5687_vm6, %v136_v31, %v138_v33 }
 0x12d   :  { %v143_v23 = vadd.f32 %v140_v19, %v3096_v13 }
 0x12e   :  { %149 = vrot.lane.b32.xlu1 %v3387_v57, %s2930_s13 }
 0x12f   :  { %v3391_v26 = vpop.permute.xlu0 %169  ;;  %v3393_v41 = vpop.permute.xlu1 %171 }
 0x133   :  { %v499_v9 = vpop.permute.xlu0 %498  ;;  %v497_v42 = vpop.permute.xlu1 %496 }
 0x134   :  { %v3396_v43 = vadd.f32 %v499_v9, %v3136_v49  ;;  %v500_v47 = vsel %vm5687_vm6, %v497_v42, %v499_v9 }
 0x135   :  { %v3411_v49 = vadd.f32 %v500_v47, %v3133_v48 }
 0x136   :  { %509 = vrot.lane.b32.xlu0 %v3396_v43, %s2930_s13 }
 0x137   :  { %v3400_v27 = vpop.permute.xlu1 %527  ;;  %v3402_v44 = vpop.permute.xlu0 %529 }
 0x13b   :  { %v841_v12 = vpop.permute.xlu1 %840  ;;  %v839_v25 = vpop.permute.xlu0 %838 }
 0x13c   :  { %v3405_v46 = vadd.f32 %v841_v12, %v3176_v17 }
 0x13e   :  { %851 = vrot.lane.b32.xlu1 %v3405_v46, %s2930_s13 }
 0x13f   :  { %v3415_v10 = vpop.permute.xlu0 %869  ;;  %v3417_v54 = vpop.permute.xlu1 %871 }
 0x142   :  { %507 = vrot.lane.b32.xlu1 %v3411_v49, %s2930_s13 }
 0x14d   :  { %v1183_v55 = vpop.permute.xlu0 %1182  ;;  %v1181_v58 = vpop.permute.xlu1 %1180 }
 0x14e   :  { %v1188_v17 = vadd.f32 %v1183_v55, %v3269_v51  ;;  %v1184_v59 = vsel %vm5687_vm6, %v1181_v58, %v1183_v55 }
 0x14f   :  { %v3422_v61 = vadd.f32 %v1184_v59, %v3272_v52 }
 0x150   :  { %1193 = vrot.lane.b32.xlu0 %v1188_v17, %s2930_s13 }
 0x151   :  { %v1525_v48 = vpop.permute.xlu0 %1524  ;;  %1191 = vrot.lane.b32.xlu1 %v3422_v61, %s2930_s13  ;;  %v1523_v0 = vpop.permute.xlu1 %1522 }
 0x152   :  { %v1530_v1 = vadd.f32 %v1525_v48, %v3291_v5  ;;  %v1526_v2 = vsel %vm5687_vm6, %v1523_v0, %v1525_v48 }
 0x153   :  { %v3430_v50 = vadd.f32 %v1526_v2, %v3294_v63 }
 0x154   :  { %1535 = vrot.lane.b32.xlu0 %v1530_v1, %s2930_s13 }
 0x155   :  { %v1867_v51 = vpop.permute.xlu0 %1866  ;;  %1533 = vrot.lane.b32.xlu1 %v3430_v50, %s2930_s13  ;;  %v1865_v52 = vpop.permute.xlu1 %1864 }
 0x156   :  { %v1872_v4 = vadd.f32 %v1867_v51, %v3322_v16  ;;  %v1868_v7 = vsel %vm5687_vm6, %v1865_v52, %v1867_v51  ;;  %v842_v16 = vsel %vm5687_vm6, %v839_v25, %v841_v12 }
 0x157   :  { %v3438_v14 = vadd.f32 %v1868_v7, %v3325_v21  ;;  %v845_v21 = vadd.f32 %v842_v16, %v3179_v18 }
 0x158   :  { %1877 = vrot.lane.b32.xlu0 %v1872_v4, %s2930_s13 }
 0x159   :  { %v2209_v5 = vpop.permute.xlu0 %2208  ;;  %1875 = vrot.lane.b32.xlu1 %v3438_v14, %s2930_s13  ;;  %v2207_v63 = vpop.permute.xlu1 %2206 }
 0x15a   :  { %v2214_v40 = vadd.f32 %v2209_v5, %v3338_v30  ;;  %v2210_v53 = vsel %vm5687_vm6, %v2207_v63, %v2209_v5 }
 0x15b   :  { %v3446_v56 = vadd.f32 %v2210_v53, %v3341_v32 }
 0x15c   :  { %2219 = vrot.lane.b32.xlu0 %v2214_v40, %s2930_s13 }
 0x15d   :  { %v2551_v62 = vpop.permute.xlu0 %2550  ;;  %2217 = vrot.lane.b32.xlu1 %v3446_v56, %s2930_s13  ;;  %v2549_v15 = vpop.permute.xlu1 %2548 }
 0x15e   :  { %v2556_v11 = vadd.f32 %v2551_v62, %v3357_v8  ;;  %v2552_v6 = vsel %vm5687_vm6, %v2549_v15, %v2551_v62 }
 0x15f   :  { %v3455_v20 = vadd.f32 %v2552_v6, %v3360_v37 }
 0x160   :  { %2561 = vrot.lane.b32.xlu0 %v2556_v11, %s2930_s13 }
 0x161   :  { %2559 = vrot.lane.b32.xlu1 %v3455_v20, %s2930_s13  ;;  %v3465_v3 = vpop.permute.xlu1 %1211  ;;  %v3469_v22 = vpop.permute.xlu0 %1213 }
 0x164   :  { %147 = vrot.lane.b32.xlu0 %v143_v23, %s2930_s13 }
 0x165   :  { %v3467_v29 = vpop.permute.xlu1 %1555  ;;  %v3473_v60 = vpop.permute.xlu0 %1553 }
 0x168   :  { %849 = vrot.lane.b32.xlu0 %v845_v21, %s2930_s13 }
 0x169   :  { %v3471_v24 = vpop.permute.xlu1 %1897  ;;  %v3477_v13 = vpop.permute.xlu0 %1895 }
 0x16d   :  { %v3475_v28 = vpop.permute.xlu1 %2239  ;;  %v3481_v32 = vpop.permute.xlu0 %2237 }
 0x171   :  { %v3479_v30 = vpop.permute.xlu1 %2581  ;;  %v3485_v35 = vpop.permute.xlu0 %2579 }
 0x1a0   :  { %v150_v18 = vpop.permute.xlu1 %149 }
 0x1a1   :  { %v156_v34 = vadd.f32 %v150_v18, %v3387_v57 }
 0x1a3   :  { %161 = vrot.lane.b32.xlu1 %v156_v34, %s2931_s14 }
 0x1a8   :  { %v510_v45 = vpop.permute.xlu0 %509 }
 0x1a9   :  { %v515_v36 = vadd.f32 %v510_v45, %v3396_v43 }
 0x1ab   :  { %520 = vrot.lane.b32.xlu0 %v515_v36, %s2931_s14 }
 0x1b0   :  { %v852_v38 = vpop.permute.xlu1 %851 }
 0x1b1   :  { %v857_v39 = vadd.f32 %v852_v38, %v3405_v46 }
 0x1b3   :  { %862 = vrot.lane.b32.xlu1 %v857_v39, %s2931_s14 }
 0x1b4   :  { %v508_v57 = vpop.permute.xlu1 %507 }
 0x1b5   :  { %v511_v55 = vsel %vm5694_vm7, %v508_v57, %v510_v45 }
 0x1b6   :  { %v3513_v59 = vadd.f32 %v511_v55, %v3411_v49 }
 0x1c2   :  { %v1194_v8 = vpop.permute.xlu0 %1193 }
 0x1c3   :  { %v3491_v37 = vadd.f32 %v1194_v8, %v1188_v17  ;;  %v1192_v43 = vpop.permute.xlu1 %1191 }
 0x1c4   :  { %v1195_v0 = vsel %vm5694_vm7, %v1192_v43, %v1194_v8 }
 0x1c5   :  { %1204 = vrot.lane.b32.xlu0 %v3491_v37, %s2931_s14  ;;  %v3524_v52 = vadd.f32 %v1195_v0, %v3422_v61 }
 0x1c6   :  { %v1536_v31 = vpop.permute.xlu0 %1535 }
 0x1c7   :  { %v3495_v33 = vadd.f32 %v1536_v31, %v1530_v1  ;;  %v1534_v58 = vpop.permute.xlu1 %1533 }
 0x1c8   :  { %v1537_v7 = vsel %vm5694_vm7, %v1534_v58, %v1536_v31 }
 0x1c9   :  { %1546 = vrot.lane.b32.xlu1 %v3495_v33, %s2931_s14  ;;  %v3535_v5 = vadd.f32 %v1537_v7, %v3430_v50 }
 0x1ca   :  { %v1878_v9 = vpop.permute.xlu0 %1877 }
 0x1cb   :  { %v3499_v42 = vadd.f32 %v1878_v9, %v1872_v4  ;;  %v1876_v2 = vpop.permute.xlu1 %1875 }
 0x1cd   :  { %1888 = vrot.lane.b32.xlu1 %v3499_v42, %s2931_s14 }
 0x1ce   :  { %v2220_v12 = vpop.permute.xlu0 %2219 }
 0x1cf   :  { %v3503_v46 = vadd.f32 %v2220_v12, %v2214_v40  ;;  %v2218_v63 = vpop.permute.xlu1 %2217  ;;  %v1879_v40 = vsel %vm5694_vm7, %v1876_v2, %v1878_v9 }
 0x1d0   :  { %v3541_v61 = vadd.f32 %v1879_v40, %v3438_v14  ;;  %v2221_v53 = vsel %vm5694_vm7, %v2218_v63, %v2220_v12 }
 0x1d1   :  { %2230 = vrot.lane.b32.xlu1 %v3503_v46, %s2931_s14  ;;  %v3547_v15 = vadd.f32 %v2221_v53, %v3446_v56 }
 0x1d2   :  { %v2562_v47 = vpop.permute.xlu0 %2561 }
 0x1d3   :  { %v3507_v25 = vadd.f32 %v2562_v47, %v2556_v11  ;;  %v2560_v62 = vpop.permute.xlu1 %2559 }
 0x1d4   :  { %v2563_v50 = vsel %vm5694_vm7, %v2560_v62, %v2562_v47 }
 0x1d5   :  { %2572 = vrot.lane.b32.xlu1 %v3507_v25, %s2931_s14  ;;  %v3553_v11 = vadd.f32 %v2563_v50, %v3455_v20 }
 0x1d6   :  { %v148_v17 = vpop.permute.xlu0 %147 }
 0x1d7   :  { %v152_v48 = vsel %vm5694_vm7, %v148_v17, %v150_v18 }
 0x1d8   :  { %v3517_v1 = vadd.f32 %v152_v48, %v143_v23 }
 0x1d9   :  { %518 = vrot.lane.b32.xlu1 %v3513_v59, %s2931_s14 }
 0x1da   :  { %v850_v51 = vpop.permute.xlu0 %849  ;;  %159 = vrot.lane.b32.xlu0 %v3517_v1, %s2931_s14 }
 0x1db   :  { %v853_v49 = vsel %vm5694_vm7, %v850_v51, %v852_v38 }
 0x1dc   :  { %v3527_v4 = vadd.f32 %v853_v49, %v845_v21 }
 0x1dd   :  { %1202 = vrot.lane.b32.xlu1 %v3524_v52, %s2931_s14 }
 0x1de   :  { %860 = vrot.lane.b32.xlu0 %v3527_v4, %s2931_s14 }
 0x1e2   :  { %1544 = vrot.lane.b32.xlu0 %v3535_v5, %s2931_s14 }
 0x1e6   :  { %1886 = vrot.lane.b32.xlu0 %v3541_v61, %s2931_s14 }
 0x1ea   :  { %2228 = vrot.lane.b32.xlu0 %v3547_v15, %s2931_s14 }
 0x1ee   :  { %2570 = vrot.lane.b32.xlu0 %v3553_v11, %s2931_s14 }
 0x215   :  { %v162_v14 = vpop.permute.xlu1 %161 }
 0x216   :  { %v168_v6 = vadd.f32 %v162_v14, %v156_v34 }
 0x218   :  { %v178_v19 = vadd.f32 %v3393_v41, %v168_v6 }
 0x21a   :  { %v3558_v23 = vmul.f32 0.11111111, %v178_v19 }
 0x21c   :  { %185 = vrot.lane.b32.xlu1 %v3558_v23, %s2928_s11  ;;  %v278_v53 = vrot.slane %v3558_v23, 4 }
 0x21d   :  { %v521_v56 = vpop.permute.xlu0 %520 }
 0x21e   :  { %v526_v16 = vadd.f32 %v521_v56, %v515_v36 }
 0x220   :  { %v535_v21 = vadd.f32 %v3402_v44, %v526_v16  ;;  %216 = vrot.lane.b32.xlu1 %v3558_v23, %s2929_s12 }
 0x222   :  { %v3565_v20 = vmul.f32 0.11111111, %v535_v21 }
 0x224   :  { %542 = vrot.lane.b32.xlu0 %v3565_v20, %s2928_s11 }
 0x225   :  { %v3569_v18 = vpop.permute.xlu1 %862 }
 0x226   :  { %v868_v34 = vadd.f32 %v3569_v18, %v857_v39 }
 0x228   :  { %v877_v45 = vadd.f32 %v3417_v54, %v868_v34  ;;  %573 = vrot.lane.b32.xlu0 %v3565_v20, %s2929_s12  ;;  %v1215_v34 = vsel %vm173_vm9, %v3465_v3, %v3469_v22 }
 0x22a   :  { %v3575_v36 = vmul.f32 0.11111111, %v877_v45 }
 0x22c   :  { %915 = vrot.lane.b32.xlu0 %v3575_v36, %s2929_s12  ;;  %884 = vrot.lane.b32.xlu1 %v3575_v36, %s2928_s11 }
 0x237   :  { %v1205_v38 = vpop.permute.xlu0 %1204 }
 0x238   :  { %v1210_v8 = vadd.f32 %v1205_v38, %v3491_v37 }
 0x23a   :  { %v1219_v31 = vadd.f32 %v3469_v22, %v1210_v8 }
 0x23b   :  { %v1547_v57 = vpop.permute.xlu1 %1546 }
 0x23c   :  { %v3583_v39 = vmul.f32 0.11111111, %v1219_v31  ;;  %v1552_v9 = vadd.f32 %v1547_v57, %v3495_v33 }
 0x23e   :  { %1226 = vrot.lane.b32.xlu0 %v3583_v39, %s2928_s11  ;;  %v1561_v12 = vadd.f32 %v3467_v29, %v1552_v9 }
 0x23f   :  { %v1889_v43 = vpop.permute.xlu1 %1888 }
 0x240   :  { %v1894_v47 = vadd.f32 %v1889_v43, %v3499_v42  ;;  %v3592_v37 = vmul.f32 0.11111111, %v1561_v12 }
 0x242   :  { %1257 = vrot.lane.b32.xlu0 %v3583_v39, %s2929_s12  ;;  %v1903_v58 = vadd.f32 %v3471_v24, %v1894_v47 }
 0x243   :  { %v2231_v55 = vpop.permute.xlu1 %2230 }
 0x244   :  { %v2236_v17 = vadd.f32 %v2231_v55, %v3503_v46  ;;  %v3601_v0 = vmul.f32 0.11111111, %v1903_v58 }
 0x246   :  { %v2245_v33 = vadd.f32 %v3475_v28, %v2236_v17  ;;  %1568 = vrot.lane.b32.xlu0 %v3592_v37, %s2928_s11 }
 0x247   :  { %v3599_v48 = vpop.permute.xlu1 %2572 }
 0x248   :  { %v3603_v42 = vmul.f32 0.11111111, %v2245_v33  ;;  %v2578_v2 = vadd.f32 %v3599_v48, %v3507_v25  ;;  %v531_v25 = vsel %vm173_vm9, %v3400_v27, %v3402_v44 }
 0x24a   :  { %5696 = vst [vmem:[#allocation12_spill] sm:$0xff] %v3603_v42  ;;  %v2587_v51 = vadd.f32 %v3479_v30, %v2578_v2  ;;  %1910 = vrot.lane.b32.xlu0 %v3601_v0, %s2928_s11  ;;  %2283 = vrot.lane.b32.xlu1 %v3603_v42, %s2929_s12 }
 0x24b   :  { %v519_v46 = vpop.permute.xlu1 %518 }
 0x24c   :  { %v3612_v49 = vmul.f32 0.11111111, %v2587_v51  ;;  %v522_v7 = vsel %vm163_vm8, %v519_v46, %v521_v56  ;;  %v160_v63 = vpop.permute.xlu0 %159  ;;  %v282_v56 = vsel %vm266_vm10, %v3558_v23, %v278_v53  ;;  %v1318_v46 = vrot.slane %v3583_v39, 4 }
 0x24d   :  { %v525_v40 = vadd.f32 %v522_v7, %v3513_v59  ;;  %v164_v19 = vsel %vm163_vm8, %v160_v63, %v162_v14  ;;  %v174_v14 = vsel %vm173_vm9, %v3391_v26, %v3393_v41 }
 0x24e   :  { %5697 = vst [vmem:[#allocation13_spill] sm:$0xff] %v3612_v49  ;;  %2252 = vrot.lane.b32.xlu0 %v3603_v42, %s2928_s11  ;;  %2625 = vrot.lane.b32.xlu1 %v3612_v49, %s2929_s12  ;;  %v167_v21 = vadd.f32 %v164_v19, %v3517_v1 }
 0x24f   :  { %v1203_v62 = vpop.permute.xlu1 %1202  ;;  %v534_v50 = vadd.f32 %v531_v25, %v525_v40 }
 0x250   :  { %v861_v6 = vpop.permute.xlu0 %860  ;;  %v1206_v59 = vsel %vm163_vm8, %v1203_v62, %v1205_v38  ;;  %v177_v45 = vadd.f32 %v174_v14, %v167_v21  ;;  %v2002_v62 = vrot.slane %v3601_v0, 4 }
 0x251   :  { %v3631_v16 = vmul.f32 0.11111111, %v534_v50  ;;  %v1209_v27 = vadd.f32 %v1206_v59, %v3524_v52  ;;  %v864_v3 = vsel %vm163_vm8, %v861_v6, %v3569_v18  ;;  %v634_v18 = vrot.slane %v3565_v20, 4 }
 0x252   :  { %412 = vrot.lane.b32.xlu1 %v282_v56, %s2931_s14  ;;  %2594 = vrot.lane.b32.xlu0 %v3612_v49, %s2928_s11  ;;  %v3650_v8 = vmul.f32 0.11111111, %v177_v45  ;;  %v867_v9 = vadd.f32 %v864_v3, %v3527_v4  ;;  %v2006_v6 = vsel %vm266_vm10, %v3601_v0, %v2002_v62 }
 0x253   :  { %v1218_v38 = vadd.f32 %v1215_v34, %v1209_v27  ;;  %v638_v33 = vsel %vm266_vm10, %v3565_v20, %v634_v18  ;;  %v633_v63 = vrot.slane %v3631_v16, 4 }
 0x254   :  { %v1545_v44 = vpop.permute.xlu0 %1544  ;;  %v277_v59 = vrot.slane %v3650_v8, 4 }
 0x255   :  { %v1548_v52 = vsel %vm163_vm8, %v1545_v44, %v1547_v57  ;;  %v3652_v31 = vmul.f32 0.11111111, %v1218_v38  ;;  %v1557_v57 = vsel %vm173_vm9, %v3473_v60, %v3467_v29  ;;  %v873_v29 = vsel %vm173_vm9, %v3415_v10, %v3417_v54 }
 0x256   :  { %1599 = vrot.lane.b32.xlu0 %v3592_v37, %s2929_s12  ;;  %540 = vrot.lane.b32.xlu1 %v3631_v16, %s2928_s11  ;;  %v1551_v26 = vadd.f32 %v1548_v52, %v3535_v5  ;;  %v1899_v60 = vsel %vm173_vm9, %v3477_v13, %v3471_v24  ;;  %v876_v4 = vadd.f32 %v873_v29, %v867_v9 }
 0x257   :  { %v2241_v10 = vsel %vm173_vm9, %v3481_v32, %v3475_v28  ;;  %v976_v32 = vrot.slane %v3575_v36, 4  ;;  %v637_v40 = vsel %vm266_vm10, %v3631_v16, %v633_v63  ;;  %v1317_v50 = vrot.slane %v3652_v31, 4 }
 0x258   :  { %v1887_v1 = vpop.permute.xlu0 %1886  ;;  %v1560_v12 = vadd.f32 %v1557_v57, %v1551_v26  ;;  %v3692_v54 = vmul.f32 0.11111111, %v876_v4  ;;  %v281_v21 = vsel %vm266_vm10, %v3650_v8, %v277_v59 }
 0x259   :  { %v1890_v22 = vsel %vm163_vm8, %v1887_v1, %v1889_v43  ;;  %v980_v51 = vsel %vm266_vm10, %v3575_v36, %v976_v32  ;;  %v1321_v19 = vsel %vm266_vm10, %v3652_v31, %v1317_v50 }
 0x25a   :  { %1941 = vrot.lane.b32.xlu0 %v3601_v0, %s2929_s12  ;;  %571 = vrot.lane.b32.xlu1 %v3631_v16, %s2929_s12  ;;  %v1893_v5 = vadd.f32 %v1890_v22, %v3541_v61  ;;  %v3679_v61 = vmul.f32 0.11111111, %v1560_v12  ;;  %v975_v53 = vrot.slane %v3692_v54, 4 }
 0x25c   :  { %v2229_v41 = vpop.permute.xlu0 %2228  ;;  %v979_v25 = vsel %vm266_vm10, %v3692_v54, %v975_v53  ;;  %v1659_v56 = vrot.slane %v3679_v61, 4 }
 0x25d   :  { %v2232_v47 = vsel %vm163_vm8, %v2229_v41, %v2231_v55  ;;  %v1902_v55 = vadd.f32 %v1899_v60, %v1893_v5 }
 0x25e   :  { %183 = vrot.lane.b32.xlu0 %v3650_v8, %s2928_s11  ;;  %1224 = vrot.lane.b32.xlu1 %v3652_v31, %s2928_s11  ;;  %v2235_v58 = vadd.f32 %v2232_v47, %v3547_v15  ;;  %v1663_v27 = vsel %vm266_vm10, %v3679_v61, %v1659_v56 }
 0x25f   :  { %v3694_v24 = vmul.f32 0.11111111, %v1902_v55 }
 0x260   :  { %v2571_v43 = vpop.permute.xlu0 %2570  ;;  %v2244_v13 = vadd.f32 %v2241_v10, %v2235_v58 }
 0x261   :  { %v2574_v17 = vsel %vm163_vm8, %v2571_v43, %v3599_v48  ;;  %v2583_v48 = vsel %vm173_vm9, %v3485_v35, %v3479_v30  ;;  %v1322_v30 = vsel %vm266_vm10, %v3583_v39, %v1318_v46  ;;  %v1660_v35 = vrot.slane %v3592_v37, 4 }
 0x262   :  { %214 = vrot.lane.b32.xlu0 %v3650_v8, %s2929_s12  ;;  %1255 = vrot.lane.b32.xlu1 %v3652_v31, %s2929_s12  ;;  %v2577_v15 = vadd.f32 %v2574_v17, %v3553_v11  ;;  %v3704_v2 = vmul.f32 0.11111111, %v2244_v13  ;;  %v2001_v44 = vrot.slane %v3694_v24, 4 }
 0x263   :  { %v1664_v7 = vsel %vm266_vm10, %v3592_v37, %v1660_v35 }
 0x264   :  { %5698 = vst [vmem:[#allocation14_spill] sm:$0xff] %v3704_v2  ;;  %v2586_v28 = vadd.f32 %v2583_v48, %v2577_v15  ;;  %v2005_v14 = vsel %vm266_vm10, %v3694_v24, %v2001_v44 }
 0x266   :  { %753 = vrot.lane.b32.xlu0 %v638_v33, %s2931_s14  ;;  %1566 = vrot.lane.b32.xlu1 %v3679_v61, %s2928_s11  ;;  %v3711_v11 = vmul.f32 0.11111111, %v2586_v28 }
 0x268   :  { %5699 = vst [vmem:[#allocation15_spill] sm:$0xff] %v3711_v11 }
 0x26a   :  { %882 = vrot.lane.b32.xlu0 %v3692_v54, %s2928_s11  ;;  %1908 = vrot.lane.b32.xlu1 %v3694_v24, %s2928_s11 }
 0x26e   :  { %913 = vrot.lane.b32.xlu0 %v3692_v54, %s2929_s12  ;;  %2250 = vrot.lane.b32.xlu1 %v3704_v2, %s2928_s11 }
 0x272   :  { %1095 = vrot.lane.b32.xlu0 %v980_v51, %s2931_s14  ;;  %2592 = vrot.lane.b32.xlu1 %v3711_v11, %s2928_s11 }
 0x276   :  { %1437 = vrot.lane.b32.xlu0 %v1322_v30, %s2931_s14  ;;  %1597 = vrot.lane.b32.xlu1 %v3679_v61, %s2929_s12 }
 0x27a   :  { %1779 = vrot.lane.b32.xlu0 %v1664_v7, %s2931_s14  ;;  %1939 = vrot.lane.b32.xlu1 %v3694_v24, %s2929_s12 }
 0x27e   :  { %2281 = vrot.lane.b32.xlu0 %v3704_v2, %s2929_s12  ;;  %751 = vrot.lane.b32.xlu1 %v637_v40, %s2931_s14 }
 0x282   :  { %2623 = vrot.lane.b32.xlu0 %v3711_v11, %s2929_s12  ;;  %1093 = vrot.lane.b32.xlu1 %v979_v25, %s2931_s14 }
 0x286   :  { %2121 = vrot.lane.b32.xlu0 %v2006_v6, %s2931_s14  ;;  %1435 = vrot.lane.b32.xlu1 %v1321_v19, %s2931_s14 }
 0x28a   :  { %410 = vrot.lane.b32.xlu0 %v281_v21, %s2931_s14  ;;  %1777 = vrot.lane.b32.xlu1 %v1663_v27, %s2931_s14 }
 0x28e   :  { %2119 = vrot.lane.b32.xlu1 %v2005_v14, %s2931_s14  ;;  %v186_v34 = vpop.permute.xlu1 %185 }
 0x28f   :  { %v3763_v45 = vadd.f32 %v186_v34, %v3558_v23  ;;  %v3768_v38 = vmax.f32 %v3558_v23, %v186_v34 }
 0x292   :  { %196 = vrot.lane.b32.xlu1 %v3763_v45, %s2930_s13  ;;  %v3777_v26 = vpop.permute.xlu1 %216 }
 0x296   :  { %231 = vrot.lane.b32.xlu1 %v3768_v38, %s2930_s13  ;;  %v543_v1 = vpop.permute.xlu0 %542 }
 0x297   :  { %v3773_v52 = vadd.f32 %v543_v1, %v3565_v20  ;;  %v3780_v41 = vmax.f32 %v3565_v20, %v543_v1 }
 0x299   :  { %553 = vrot.lane.b32.xlu0 %v3773_v52, %s2930_s13 }
 0x29a   :  { %v3794_v57 = vpop.permute.xlu0 %573 }
 0x29d   :  { %588 = vrot.lane.b32.xlu0 %v3780_v41, %s2930_s13 }
 0x29e   :  { %v885_v23 = vpop.permute.xlu1 %884  ;;  %v3796_v20 = vpop.permute.xlu0 %915 }
 0x29f   :  { %v3785_v3 = vadd.f32 %v885_v23, %v3575_v36  ;;  %v3788_v22 = vmax.f32 %v3575_v36, %v885_v23 }
 0x2a1   :  { %895 = vrot.lane.b32.xlu1 %v3785_v3, %s2930_s13  ;;  %930 = vrot.lane.b32.xlu0 %v3788_v22, %s2930_s13 }
 0x2b0   :  { %v1227_v9 = vpop.permute.xlu0 %1226 }
 0x2b1   :  { %v3799_v12 = vadd.f32 %v1227_v9, %v3583_v39  ;;  %v3806_v36 = vmax.f32 %v3583_v39, %v1227_v9 }
 0x2b3   :  { %1237 = vrot.lane.b32.xlu0 %v3799_v12, %s2930_s13 }
 0x2b4   :  { %v3803_v5 = vpop.permute.xlu0 %1257 }
 0x2b7   :  { %1272 = vrot.lane.b32.xlu0 %v3806_v36, %s2930_s13 }
 0x2b8   :  { %v1569_v47 = vpop.permute.xlu0 %1568 }
 0x2b9   :  { %v3811_v18 = vadd.f32 %v1569_v47, %v3592_v37  ;;  %v3820_v60 = vmax.f32 %v3592_v37, %v1569_v47 }
 0x2bb   :  { %1579 = vrot.lane.b32.xlu0 %v3811_v18, %s2930_s13 }
 0x2bc   :  { %v3815_v43 = vpop.permute.xlu0 %1910  ;;  %v3817_v29 = vpop.permute.xlu1 %2283 }
 0x2bd   :  { %5700 = vst [vmem:[#allocation16_spill] sm:$0xff] %v3817_v29  ;;  %v3830_v55 = vmax.f32 %v3601_v0, %v3815_v43  ;;  %v3864_v51 = vadd.f32 %v3815_v43, %v3601_v0 }
 0x2bf   :  { %1614 = vrot.lane.b32.xlu0 %v3820_v60, %s2930_s13 }
 0x2c0   :  { %v3824_v39 = vpop.permute.xlu0 %2252  ;;  %v3826_v4 = vpop.permute.xlu1 %2625 }
 0x2c1   :  { %v3840_v37 = vmax.f32 %v3603_v42, %v3824_v39  ;;  %v3875_v7 = vadd.f32 %v3824_v39, %v3603_v42 }
 0x2c3   :  { %1956 = vrot.lane.b32.xlu0 %v3830_v55, %s2930_s13 }
 0x2c4   :  { %v3834_v58 = vpop.permute.xlu0 %2594  ;;  %v3836_v17 = vpop.permute.xlu1 %412 }
 0x2c5   :  { %5701 = vst [vmem:[#allocation17_spill] sm:$0xff] %v3836_v17  ;;  %v3848_v13 = vmax.f32 %v3612_v49, %v3834_v58 }
 0x2c7   :  { %2298 = vrot.lane.b32.xlu0 %v3840_v37, %s2930_s13 }
 0x2c8   :  { %v3844_v33 = vpop.permute.xlu0 %1599  ;;  %v541_v10 = vpop.permute.xlu1 %540 }
 0x2c9   :  { %v544_v15 = vsel %vm5687_vm6, %v541_v10, %v543_v1 }
 0x2ca   :  { %v3852_v48 = vadd.f32 %v544_v15, %v3631_v16  ;;  %v3867_v46 = vmax.f32 %v3631_v16, %v544_v15  ;;  %v3885_v16 = vadd.f32 %v3834_v58, %v3612_v49 }
 0x2cb   :  { %2640 = vrot.lane.b32.xlu0 %v3848_v13, %s2930_s13 }
 0x2cc   :  { %v3856_v28 = vpop.permute.xlu0 %1941  ;;  %551 = vrot.lane.b32.xlu1 %v3852_v48, %s2930_s13  ;;  %v3860_v32 = vpop.permute.xlu1 %571 }
 0x2cd   :  { %5702 = vst [vmem:[#allocation18_spill] sm:$0xff] %v3856_v28 }
 0x2cf   :  { %1921 = vrot.lane.b32.xlu0 %v3864_v51, %s2930_s13 }
 0x2d0   :  { %v184_v30 = vpop.permute.xlu0 %183  ;;  %586 = vrot.lane.b32.xlu1 %v3867_v46, %s2930_s13  ;;  %v1225_v35 = vpop.permute.xlu1 %1224 }
 0x2d1   :  { %v187_v40 = vsel %vm5687_vm6, %v184_v30, %v186_v34  ;;  %v1228_v21 = vsel %vm5687_vm6, %v1225_v35, %v1227_v9 }
 0x2d2   :  { %v3893_v62 = vadd.f32 %v187_v40, %v3650_v8  ;;  %v3898_v19 = vmax.f32 %v3650_v8, %v187_v40  ;;  %v3915_v8 = vadd.f32 %v1228_v21, %v3652_v31 }
 0x2d3   :  { %2263 = vrot.lane.b32.xlu0 %v3875_v7, %s2930_s13 }
 0x2d4   :  { %v3879_v0 = vpop.permute.xlu0 %214  ;;  %v3881_v63 = vpop.permute.xlu1 %1255 }
 0x2d5   :  { %5703 = vst [vmem:[#allocation19_spill] sm:$0xff] %v3879_v0  ;;  %5704 = vst [vmem:[#allocation20_spill] sm:$0xff] %v3881_v63 }
 0x2d7   :  { %2605 = vrot.lane.b32.xlu0 %v3885_v16, %s2930_s13 }
 0x2d8   :  { %v3890_v53 = vpop.permute.xlu0 %753  ;;  %v1567_v25 = vpop.permute.xlu1 %1566 }
 0x2d9   :  { %5705 = vst [vmem:[#allocation21_spill] sm:$0xff] %v3890_v53  ;;  %v1570_v9 = vsel %vm5687_vm6, %v1567_v25, %v1569_v47 }
 0x2da   :  { %v3932_v10 = vadd.f32 %v1570_v9, %v3679_v61 }
 0x2db   :  { %194 = vrot.lane.b32.xlu0 %v3893_v62, %s2930_s13 }
 0x2dc   :  { %v883_v50 = vpop.permute.xlu0 %882  ;;  %v1909_v6 = vpop.permute.xlu1 %1908 }
 0x2dd   :  { %v886_v59 = vsel %vm5687_vm6, %v883_v50, %v885_v23  ;;  %v3924_v23 = vmax.f32 %v3652_v31, %v1228_v21  ;;  %v3941_v31 = vmax.f32 %v3679_v61, %v1570_v9  ;;  %v1912_v47 = vsel %vm5687_vm6, %v1909_v6, %v3815_v43 }
 0x2de   :  { %v3902_v56 = vmax.f32 %v3692_v54, %v886_v59  ;;  %v3912_v14 = vadd.f32 %v886_v59, %v3692_v54  ;;  %v3952_v25 = vmax.f32 %v3694_v24, %v1912_v47  ;;  %v3981_v49 = vadd.f32 %v1912_v47, %v3694_v24 }
 0x2df   :  { %229 = vrot.lane.b32.xlu0 %v3898_v19, %s2930_s13 }
 0x2e0   :  { %v3907_v27 = vpop.permute.xlu0 %913  ;;  %928 = vrot.lane.b32.xlu1 %v3902_v56, %s2930_s13  ;;  %v2251_v44 = vpop.permute.xlu1 %2250 }
 0x2e1   :  { %v2254_v50 = vsel %vm5687_vm6, %v2251_v44, %v3824_v39 }
 0x2e2   :  { %v3961_v43 = vmax.f32 %v3704_v2, %v2254_v50 }
 0x2e3   :  { %893 = vrot.lane.b32.xlu0 %v3912_v14, %s2930_s13 }
 0x2e4   :  { %v3919_v34 = vpop.permute.xlu0 %1095  ;;  %1235 = vrot.lane.b32.xlu1 %v3915_v8, %s2930_s13  ;;  %v2593_v1 = vpop.permute.xlu1 %2592 }
 0x2e5   :  { %5706 = vst [vmem:[#allocation22_spill] sm:$0xff] %v3919_v34  ;;  %v2596_v59 = vsel %vm5687_vm6, %v2593_v1, %v3834_v58  ;;  %v3988_v1 = vadd.f32 %v2254_v50, %v3704_v2 }
 0x2e6   :  { %v3972_v39 = vmax.f32 %v3711_v11, %v2596_v59  ;;  %v3995_v17 = vadd.f32 %v2596_v59, %v3711_v11 }
 0x2e8   :  { %1270 = vrot.lane.b32.xlu1 %v3924_v23, %s2930_s13  ;;  %v3929_v54 = vpop.permute.xlu1 %1597  ;;  %v3934_v15 = vpop.permute.xlu0 %1437 }
 0x2e9   :  { %5707 = vst [vmem:[#allocation23_spill] sm:$0xff] %v3929_v54  ;;  %5708 = vst [vmem:[#allocation24_spill] sm:$0xff] %v3934_v15 }
 0x2ec   :  { %1577 = vrot.lane.b32.xlu1 %v3932_v10, %s2930_s13  ;;  %v3938_v30 = vpop.permute.xlu1 %1939  ;;  %v3945_v35 = vpop.permute.xlu0 %1779 }
 0x2ed   :  { %5709 = vst [vmem:[#allocation25_spill] sm:$0xff] %v3938_v30  ;;  %5710 = vst [vmem:[#allocation26_spill] sm:$0xff] %v3945_v35 }
 0x2f0   :  { %1612 = vrot.lane.b32.xlu1 %v3941_v31, %s2930_s13  ;;  %v3949_v40 = vpop.permute.xlu1 %751  ;;  %v3963_v6 = vpop.permute.xlu0 %2281 }
 0x2f1   :  { %5711 = vst [vmem:[#allocation27_spill] sm:$0xff] %v3949_v40  ;;  %5713 = vst [vmem:[#allocation29_spill] sm:$0xff] %v3963_v6 }
 0x2f4   :  { %1954 = vrot.lane.b32.xlu1 %v3952_v25, %s2930_s13  ;;  %v3958_v61 = vpop.permute.xlu1 %1093  ;;  %v3974_v44 = vpop.permute.xlu0 %2623 }
 0x2f5   :  { %5712 = vst [vmem:[#allocation28_spill] sm:$0xff] %v3958_v61  ;;  %5715 = vst [vmem:[#allocation31_spill] sm:$0xff] %v3974_v44 }
 0x2f8   :  { %2296 = vrot.lane.b32.xlu1 %v3961_v43, %s2930_s13  ;;  %v3969_v21 = vpop.permute.xlu1 %1435  ;;  %v3990_v42 = vpop.permute.xlu0 %2121 }
 0x2f9   :  { %5714 = vst [vmem:[#allocation30_spill] sm:$0xff] %v3969_v21  ;;  %5718 = vst [vmem:[#allocation34_spill] sm:$0xff] %v3990_v42 }
 0x2fc   :  { %2638 = vrot.lane.b32.xlu1 %v3972_v39, %s2930_s13  ;;  %v3978_v9 = vpop.permute.xlu1 %1777 }
 0x2fd   :  { %5716 = vst [vmem:[#allocation32_spill] sm:$0xff] %v3978_v9  ;;  %v3997_v9 = vpop.permute.xlu0 %410 }
 0x2fe   :  { %5719 = vst [vmem:[#allocation35_spill] sm:$0xff] %v3997_v9 }
 0x300   :  { %1919 = vrot.lane.b32.xlu1 %v3981_v49, %s2930_s13  ;;  %v3985_v58 = vpop.permute.xlu1 %2119 }
 0x301   :  { %5717 = vst [vmem:[#allocation33_spill] sm:$0xff] %v3985_v58 }
 0x304   :  { %2261 = vrot.lane.b32.xlu1 %v3988_v1, %s2930_s13  ;;  %v197_v35 = vpop.permute.xlu1 %196 }
 0x305   :  { %v4002_v24 = vadd.f32 %v197_v35, %v3763_v45 }
 0x308   :  { %2603 = vrot.lane.b32.xlu1 %v3995_v17, %s2930_s13  ;;  %v232_v47 = vpop.permute.xlu1 %231 }
 0x309   :  { %v4010_v58 = vmax.f32 %v3768_v38, %v232_v47 }
 0x30b   :  { %v554_v50 = vpop.permute.xlu0 %553 }
 0x30c   :  { %207 = vrot.lane.b32.xlu1 %v4002_v24, %s2931_s14  ;;  %v4007_v2 = vadd.f32 %v554_v50, %v3773_v52 }
 0x30e   :  { %564 = vrot.lane.b32.xlu0 %v4007_v2, %s2931_s14 }
 0x30f   :  { %v589_v59 = vpop.permute.xlu0 %588 }
 0x310   :  { %242 = vrot.lane.b32.xlu1 %v4010_v58, %s2931_s14  ;;  %v4017_v45 = vmax.f32 %v3780_v41, %v589_v59 }
 0x312   :  { %599 = vrot.lane.b32.xlu0 %v4017_v45, %s2931_s14 }
 0x313   :  { %v931_v11 = vpop.permute.xlu0 %930  ;;  %v896_v42 = vpop.permute.xlu1 %895 }
 0x314   :  { %v4022_v52 = vmax.f32 %v3788_v22, %v931_v11  ;;  %v4025_v38 = vadd.f32 %v896_v42, %v3785_v3 }
 0x316   :  { %941 = vrot.lane.b32.xlu0 %v4022_v52, %s2931_s14  ;;  %906 = vrot.lane.b32.xlu1 %v4025_v38, %s2931_s14 }
 0x325   :  { %v1238_v9 = vpop.permute.xlu0 %1237 }
 0x326   :  { %v4032_v41 = vadd.f32 %v1238_v9, %v3799_v12 }
 0x328   :  { %1248 = vrot.lane.b32.xlu0 %v4032_v41, %s2931_s14 }
 0x329   :  { %v1273_v21 = vpop.permute.xlu0 %1272 }
 0x32a   :  { %v4037_v22 = vmax.f32 %v3806_v36, %v1273_v21 }
 0x32c   :  { %1283 = vrot.lane.b32.xlu0 %v4037_v22, %s2931_s14 }
 0x32d   :  { %v1580_v3 = vpop.permute.xlu0 %1579 }
 0x32e   :  { %v4042_v15 = vadd.f32 %v1580_v3, %v3811_v18 }
 0x330   :  { %1590 = vrot.lane.b32.xlu0 %v4042_v15, %s2931_s14 }
 0x331   :  { %v1615_v61 = vpop.permute.xlu0 %1614 }
 0x332   :  { %v4047_v12 = vmax.f32 %v3820_v60, %v1615_v61 }
 0x334   :  { %1625 = vrot.lane.b32.xlu0 %v4047_v12, %s2931_s14 }
 0x335   :  { %v4051_v34 = vpop.permute.xlu0 %1956 }
 0x336   :  { %v4064_v60 = vmax.f32 %v3830_v55, %v4051_v34 }
 0x339   :  { %v4053_v36 = vpop.permute.xlu0 %2298 }
 0x33a   :  { %v4077_v54 = vmax.f32 %v3840_v37, %v4053_v36 }
 0x33d   :  { %v4055_v6 = vpop.permute.xlu0 %2640 }
 0x33e   :  { %v552_v30 = vpop.permute.xlu1 %551  ;;  %v4090_v29 = vmax.f32 %v3848_v13, %v4055_v6 }
 0x33f   :  { %v555_v0 = vsel %vm5694_vm7, %v552_v30, %v554_v50 }
 0x340   :  { %v4093_v37 = vadd.f32 %v555_v0, %v3852_v48 }
 0x341   :  { %v1922_v40 = vpop.permute.xlu0 %1921 }
 0x342   :  { %v4058_v18 = vadd.f32 %v1922_v40, %v3864_v51 }
 0x344   :  { %1932 = vrot.lane.b32.xlu0 %v4058_v18, %s2931_s14 }
 0x345   :  { %v2264_v53 = vpop.permute.xlu0 %2263 }
 0x346   :  { %v4067_v44 = vadd.f32 %v2264_v53, %v3875_v7  ;;  %v587_v7 = vpop.permute.xlu1 %586 }
 0x348   :  { %5720 = vst [vmem:[#allocation36_spill] sm:$0xff] %v4067_v44  ;;  %1967 = vrot.lane.b32.xlu0 %v4064_v60, %s2931_s14  ;;  %2274 = vrot.lane.b32.xlu1 %v4067_v44, %s2931_s14 }
 0x349   :  { %v4073_v51 = vpop.permute.xlu0 %2605 }
 0x34a   :  { %v4081_v55 = vadd.f32 %v4073_v51, %v3885_v16  ;;  %v590_v16 = vsel %vm5694_vm7, %v587_v7, %v589_v59 }
 0x34b   :  { %v4102_v50 = vmax.f32 %v3867_v46, %v590_v16 }
 0x34c   :  { %2309 = vrot.lane.b32.xlu0 %v4077_v54, %s2931_s14  ;;  %2616 = vrot.lane.b32.xlu1 %v4081_v55, %s2931_s14 }
 0x34d   :  { %v195_v63 = vpop.permute.xlu0 %194 }
 0x34e   :  { %v198_v44 = vsel %vm5694_vm7, %v195_v63, %v197_v35 }
 0x34f   :  { %v4105_v13 = vadd.f32 %v198_v44, %v3893_v62 }
 0x350   :  { %2651 = vrot.lane.b32.xlu0 %v4090_v29, %s2931_s14  ;;  %562 = vrot.lane.b32.xlu1 %v4093_v37, %s2931_s14 }
 0x351   :  { %v230_v30 = vpop.permute.xlu0 %229 }
 0x352   :  { %v929_v28 = vpop.permute.xlu1 %928  ;;  %v233_v48 = vsel %vm5694_vm7, %v230_v30, %v232_v47 }
 0x353   :  { %v932_v0 = vsel %vm5694_vm7, %v929_v28, %v931_v11  ;;  %v4114_v35 = vmax.f32 %v3898_v19, %v233_v48 }
 0x354   :  { %205 = vrot.lane.b32.xlu0 %v4105_v13, %s2931_s14  ;;  %597 = vrot.lane.b32.xlu1 %v4102_v50, %s2931_s14  ;;  %v4117_v46 = vmax.f32 %v3902_v56, %v932_v0 }
 0x355   :  { %v894_v63 = vpop.permute.xlu0 %893 }
 0x356   :  { %v1236_v62 = vpop.permute.xlu1 %1235  ;;  %v897_v44 = vsel %vm5694_vm7, %v894_v63, %v896_v42 }
 0x357   :  { %v1239_v47 = vsel %vm5694_vm7, %v1236_v62, %v1238_v9  ;;  %v4126_v11 = vadd.f32 %v897_v44, %v3912_v14 }
 0x358   :  { %240 = vrot.lane.b32.xlu0 %v4114_v35, %s2931_s14  ;;  %939 = vrot.lane.b32.xlu1 %v4117_v46, %s2931_s14  ;;  %v4129_v28 = vadd.f32 %v1239_v47, %v3915_v8 }
 0x35a   :  { %v1271_v19 = vpop.permute.xlu1 %1270 }
 0x35b   :  { %v1274_v56 = vsel %vm5694_vm7, %v1271_v19, %v1273_v21 }
 0x35c   :  { %904 = vrot.lane.b32.xlu0 %v4126_v11, %s2931_s14  ;;  %1246 = vrot.lane.b32.xlu1 %v4129_v28, %s2931_s14  ;;  %v4137_v42 = vmax.f32 %v3924_v23, %v1274_v56 }
 0x35e   :  { %v1578_v9 = vpop.permute.xlu1 %1577 }
 0x35f   :  { %v1581_v59 = vsel %vm5694_vm7, %v1578_v9, %v1580_v3 }
 0x360   :  { %1281 = vrot.lane.b32.xlu1 %v4137_v42, %s2931_s14  ;;  %v4143_v14 = vadd.f32 %v1581_v59, %v3932_v10 }
 0x362   :  { %v1613_v8 = vpop.permute.xlu1 %1612 }
 0x363   :  { %v1616_v21 = vsel %vm5694_vm7, %v1613_v8, %v1615_v61 }
 0x364   :  { %1588 = vrot.lane.b32.xlu1 %v4143_v14, %s2931_s14  ;;  %v4149_v7 = vmax.f32 %v3941_v31, %v1616_v21 }
 0x366   :  { %v1955_v23 = vpop.permute.xlu1 %1954 }
 0x367   :  { %v1958_v61 = vsel %vm5694_vm7, %v1955_v23, %v4051_v34 }
 0x368   :  { %1623 = vrot.lane.b32.xlu1 %v4149_v7, %s2931_s14  ;;  %v4163_v63 = vmax.f32 %v3952_v25, %v1958_v61 }
 0x36a   :  { %v2297_v3 = vpop.permute.xlu1 %2296 }
 0x36e   :  { %v2639_v16 = vpop.permute.xlu1 %2638 }
 0x372   :  { %v1920_v30 = vpop.permute.xlu1 %1919 }
 0x373   :  { %v1923_v48 = vsel %vm5694_vm7, %v1920_v30, %v1922_v40  ;;  %v2300_v40 = vsel %vm5694_vm7, %v2297_v3, %v4053_v36 }
 0x374   :  { %v4155_v10 = vadd.f32 %v1923_v48, %v3981_v49 }
 0x376   :  { %1930 = vrot.lane.b32.xlu1 %v4155_v10, %s2931_s14  ;;  %v2262_v31 = vpop.permute.xlu1 %2261 }
 0x377   :  { %v2265_v0 = vsel %vm5694_vm7, %v2262_v31, %v2264_v53  ;;  %v4177_v53 = vmax.f32 %v3961_v43, %v2300_v40 }
 0x378   :  { %v4166_v62 = vadd.f32 %v2265_v0, %v3988_v1  ;;  %v2642_v1 = vsel %vm5694_vm7, %v2639_v16, %v4055_v6 }
 0x379   :  { %v4191_v44 = vmax.f32 %v3972_v39, %v2642_v1 }
 0x37a   :  { %1965 = vrot.lane.b32.xlu1 %v4163_v63, %s2931_s14  ;;  %2272 = vrot.lane.b32.xlu0 %v4166_v62, %s2931_s14  ;;  %v2604_v49 = vpop.permute.xlu1 %2603 }
 0x37b   :  { %v2607_v34 = vsel %vm5694_vm7, %v2604_v49, %v4073_v51 }
 0x37c   :  { %v4180_v25 = vadd.f32 %v2607_v34, %v3995_v17 }
 0x37e   :  { %2307 = vrot.lane.b32.xlu1 %v4177_v53, %s2931_s14  ;;  %2614 = vrot.lane.b32.xlu0 %v4180_v25, %s2931_s14  ;;  %v4188_v36 = vpop.permute.xlu1 %207 }
 0x380   :  { %v4193_v51 = vpop.permute.xlu0 %564 }
 0x382   :  { %2649 = vrot.lane.b32.xlu1 %v4191_v44, %s2931_s14  ;;  %v243_v17 = vpop.permute.xlu1 %242 }
 0x383   :  { %v4198_v43 = vmax.f32 %v4010_v58, %v243_v17 }
 0x384   :  { %v600_v6 = vpop.permute.xlu0 %599 }
 0x385   :  { %5721 = vst [vmem:[#allocation37_spill] sm:$0xff] %v4198_v43  ;;  %v4201_v47 = vmax.f32 %v4017_v45, %v600_v6 }
 0x386   :  { %253 = vrot.lane.b32.xlu1 %v4198_v43, %s2928_s11 }
 0x387   :  { %610 = vrot.lane.b32.xlu0 %v4201_v47, %s2928_s11 }
 0x388   :  { %v942_v39 = vpop.permute.xlu0 %941 }
 0x389   :  { %v4208_v19 = vmax.f32 %v4022_v52, %v942_v39  ;;  %v4226_v52 = vpop.permute.xlu1 %906 }
 0x38b   :  { %952 = vrot.lane.b32.xlu0 %v4208_v19, %s2928_s11 }
 0x39a   :  { %v4212_v56 = vpop.permute.xlu0 %1248 }
 0x39e   :  { %v1284_v58 = vpop.permute.xlu0 %1283 }
 0x39f   :  { %v4215_v9 = vmax.f32 %v4037_v22, %v1284_v58 }
 0x3a1   :  { %1294 = vrot.lane.b32.xlu0 %v4215_v9, %s2928_s11 }
 0x3a2   :  { %v4219_v45 = vpop.permute.xlu0 %1590 }
 0x3a6   :  { %v1626_v59 = vpop.permute.xlu0 %1625 }
 0x3a7   :  { %v4222_v8 = vmax.f32 %v4047_v12, %v1626_v59 }
 0x3a9   :  { %1636 = vrot.lane.b32.xlu0 %v4222_v8, %s2928_s11 }
 0x3b6   :  { %v4228_v21 = vpop.permute.xlu0 %1932 }
 0x3ba   :  { %v1968_v23 = vpop.permute.xlu0 %1967  ;;  %v4230_v3 = vpop.permute.xlu1 %2274 }
 0x3bb   :  { %v4233_v22 = vmax.f32 %v4064_v60, %v1968_v23 }
 0x3bd   :  { %1978 = vrot.lane.b32.xlu0 %v4233_v22, %s2928_s11 }
 0x3be   :  { %v2310_v16 = vpop.permute.xlu0 %2309  ;;  %v4237_v30 = vpop.permute.xlu1 %2616 }
 0x3bf   :  { %v4240_v12 = vmax.f32 %v4077_v54, %v2310_v16 }
 0x3c1   :  { %2320 = vrot.lane.b32.xlu1 %v4240_v12, %s2928_s11 }
 0x3c2   :  { %v2652_v48 = vpop.permute.xlu0 %2651  ;;  %v563_v61 = vpop.permute.xlu1 %562 }
 0x3c3   :  { %v4245_v31 = vmax.f32 %v4090_v29, %v2652_v48 }
 0x3c5   :  { %5722 = vst [vmem:[#allocation38_spill] sm:$0xff] %v4245_v31  ;;  %2662 = vrot.lane.b32.xlu1 %v4245_v31, %s2928_s11 }
 0x3c6   :  { %v4249_v60 = vpop.permute.xlu0 %205  ;;  %v598_v0 = vpop.permute.xlu1 %597 }
 0x3c7   :  { %v601_v40 = vsel %vm163_vm8, %v598_v0, %v600_v6 }
 0x3c8   :  { %v4253_v49 = vmax.f32 %v4102_v50, %v601_v40 }
 0x3ca   :  { %v241_v54 = vpop.permute.xlu0 %240  ;;  %608 = vrot.lane.b32.xlu1 %v4253_v49, %s2928_s11  ;;  %v940_v34 = vpop.permute.xlu1 %939 }
 0x3cb   :  { %v244_v1 = vsel %vm163_vm8, %v241_v54, %v243_v17  ;;  %v943_v29 = vsel %vm163_vm8, %v940_v34, %v942_v39 }
 0x3cc   :  { %v4260_v43 = vmax.f32 %v4114_v35, %v244_v1  ;;  %v4263_v31 = vmax.f32 %v4117_v46, %v943_v29  ;;  %v570_v1 = vadd.f32 %v4193_v51, %v4007_v2  ;;  %v2622_v2 = vadd.f32 %v4237_v30, %v4081_v55 }
 0x3cd   :  { %v912_v55 = vadd.f32 %v4226_v52, %v4025_v38 }
 0x3ce   :  { %251 = vrot.lane.b32.xlu0 %v4260_v43, %s2928_s11  ;;  %950 = vrot.lane.b32.xlu1 %v4263_v31, %s2928_s11  ;;  %v4269_v50 = vpop.permute.xlu1 %1246 }
 0x3d2   :  { %v1282_v6 = vpop.permute.xlu1 %1281 }
 0x3d3   :  { %v1285_v0 = vsel %vm163_vm8, %v1282_v6, %v1284_v58  ;;  %v213_v58 = vadd.f32 %v4188_v36, %v4002_v24  ;;  %v579_v6 = vadd.f32 %v3794_v57, %v570_v1 }
 0x3d4   :  { %v4273_v17 = vmax.f32 %v4137_v42, %v1285_v0 }
 0x3d5   :  { %v222_v42 = vadd.f32 %v3777_v26, %v213_v58  ;;  %v581_v58 = vmul.f32 0.11111111, %v579_v6 }
 0x3d6   :  { %1292 = vrot.lane.b32.xlu1 %v4273_v17, %s2928_s11  ;;  %v4277_v35 = vpop.permute.xlu1 %1588 }
 0x3d7   :  { %v224_v34 = vmul.f32 0.11111111, %v222_v42 }
 0x3d9   :  { %v263_v0 = vrot.slane %v224_v34, 4 }
 0x3da   :  { %v1624_v46 = vpop.permute.xlu1 %1623 }
 0x3db   :  { %v1627_v39 = vsel %vm163_vm8, %v1624_v46, %v1626_v59 }
 0x3dc   :  { %v4281_v40 = vmax.f32 %v4149_v7, %v1627_v39 }
 0x3de   :  { %1634 = vrot.lane.b32.xlu1 %v4281_v40, %s2928_s11 }
 0x3e8   :  { %v4288_v54 = vpop.permute.xlu1 %1930 }
 0x3ec   :  { %v1966_v29 = vpop.permute.xlu1 %1965 }
 0x3ed   :  { %v1969_v59 = vsel %vm163_vm8, %v1966_v29, %v1968_v23  ;;  %v268_v23 = vsel %vm266_vm10, %v224_v34, %v263_v0 }
 0x3ee   :  { %v4294_v7 = vmax.f32 %v4163_v63, %v1969_v59  ;;  %v566_v59 = vsel %vm163_vm8, %v563_v61, %v4193_v51  ;;  %v1254_v51 = vadd.f32 %v4212_v56, %v4032_v41 }
 0x3ef   :  { %v569_v38 = vadd.f32 %v566_v59, %v4093_v37 }
 0x3f0   :  { %1976 = vrot.lane.b32.xlu1 %v4294_v7, %s2928_s11  ;;  %v2308_v24 = vpop.permute.xlu1 %2307 }
 0x3f1   :  { %v2311_v46 = vsel %vm163_vm8, %v2308_v24, %v2310_v16  ;;  %v620_v16 = vrot.slane %v581_v58, 4  ;;  %v575_v24 = vsel %vm173_vm9, %v3860_v32, %v3794_v57 }
 0x3f2   :  { %v4301_v39 = vmax.f32 %v4177_v53, %v2311_v46  ;;  %v2631_v53 = vadd.f32 %v3826_v4, %v2622_v2  ;;  %v578_v46 = vadd.f32 %v575_v24, %v569_v38  ;;  %v1263_v2 = vadd.f32 %v3803_v5, %v1254_v51  ;;  %v5726_v24 = vld [vmem:[#allocation36_spill] sm:$0xff] }
 0x3f3   :  { %v624_v29 = vsel %vm266_vm10, %v581_v58, %v620_v16  ;;  %v5727_v51 = vld [vmem:[#allocation16_spill] sm:$0xff] }
 0x3f4   :  { %5723 = vst [vmem:[#allocation39_spill] sm:$0xff] %v4301_v39  ;;  %288 = vrot.lane.b32.xlu1 %v268_v23, %s2931_s14  ;;  %2318 = vrot.lane.b32.xlu0 %v4301_v39, %s2928_s11  ;;  %v2650_v63 = vpop.permute.xlu1 %2649  ;;  %v2633_v34 = vmul.f32 0.11111111, %v2631_v53  ;;  %v580_v37 = vmul.f32 0.11111111, %v578_v46  ;;  %v905_v53 = vpop.permute.xlu0 %904  ;;  %v2280_v46 = vadd.f32 %v4230_v3, %v5726_v24 }
 0x3f5   :  { %v2653_v42 = vsel %vm163_vm8, %v2650_v63, %v2652_v48  ;;  %v1265_v57 = vmul.f32 0.11111111, %v1263_v2  ;;  %v1596_v63 = vadd.f32 %v4219_v45, %v4042_v15 }
 0x3f6   :  { %v4311_v1 = vmax.f32 %v4191_v44, %v2653_v42  ;;  %v921_v44 = vadd.f32 %v3796_v20, %v912_v55  ;;  %v2672_v48 = vrot.slane %v2633_v34, 4  ;;  %v908_v55 = vsel %vm163_vm8, %v905_v53, %v4226_v52 }
 0x3f7   :  { %v1304_v41 = vrot.slane %v1265_v57, 4  ;;  %v1605_v16 = vadd.f32 %v3844_v33, %v1596_v63  ;;  %v911_v15 = vadd.f32 %v908_v55, %v4126_v11  ;;  %v1938_v52 = vadd.f32 %v4228_v21, %v4058_v18 }
 0x3f8   :  { %5724 = vst [vmem:[#allocation40_spill] sm:$0xff] %v4311_v1  ;;  %305 = vrot.lane.b32.xlu1 %v268_v23, %s2932_s15  ;;  %2660 = vrot.lane.b32.xlu0 %v4311_v1, %s2928_s11  ;;  %v923_v6 = vmul.f32 0.11111111, %v921_v44  ;;  %v2676_v0 = vsel %vm266_vm10, %v2633_v34, %v2672_v48  ;;  %v4404_v2 = vpop.permute.xlu1 %253 }
 0x3f9   :  { %v1308_v42 = vsel %vm266_vm10, %v1265_v57, %v1304_v41  ;;  %v1607_v34 = vmul.f32 0.11111111, %v1605_v16  ;;  %v209_v16 = vsel %vm163_vm8, %v4249_v60, %v4188_v36  ;;  %v5730_v36 = vld [vmem:[#allocation19_spill] sm:$0xff] }
 0x3fa   :  { %v962_v58 = vrot.slane %v923_v6, 4  ;;  %v218_v60 = vsel %vm173_vm9, %v5730_v36, %v3777_v26 }
 0x3fb   :  { %v1646_v48 = vrot.slane %v1607_v34, 4 }
 0x3fc   :  { %323 = vrot.lane.b32.xlu1 %v268_v23, %s2930_s13  ;;  %643 = vrot.lane.b32.xlu0 %v624_v29, %s2931_s14  ;;  %v966_v61 = vsel %vm266_vm10, %v923_v6, %v962_v58 }
 0x3fd   :  { %v1650_v59 = vsel %vm266_vm10, %v1607_v34, %v1646_v48  ;;  %v212_v34 = vadd.f32 %v209_v16, %v4105_v13 }
 0x400   :  { %340 = vrot.lane.b32.xlu1 %v268_v23, %s2928_s11  ;;  %659 = vrot.lane.b32.xlu0 %v624_v29, %s2932_s15  ;;  %v619_v23 = vrot.slane %v580_v37, 4 }
 0x402   :  { %v4345_v32 = vsel %vm266_vm10, %v580_v37, %v619_v23  ;;  %v2289_v37 = vadd.f32 %v5727_v51, %v2280_v46  ;;  %v4409_v23 = vpop.permute.xlu0 %2272 }
 0x404   :  { %2695 = vrot.lane.b32.xlu1 %v2676_v0, %s2931_s14  ;;  %675 = vrot.lane.b32.xlu0 %v624_v29, %s2930_s13  ;;  %v2291_v57 = vmul.f32 0.11111111, %v2289_v37  ;;  %v1592_v37 = vsel %vm163_vm8, %v4277_v35, %v4219_v45  ;;  %v5731_v45 = vld [vmem:[#allocation23_spill] sm:$0xff] }
 0x405   :  { %v1601_v35 = vsel %vm173_vm9, %v5731_v45, %v3844_v33 }
 0x406   :  { %v2330_v53 = vrot.slane %v2291_v57, 4  ;;  %v2615_v55 = vpop.permute.xlu0 %2614 }
 0x408   :  { %2711 = vrot.lane.b32.xlu1 %v2676_v0, %s2932_s15  ;;  %691 = vrot.lane.b32.xlu0 %v624_v29, %s2928_s11  ;;  %v917_v29 = vsel %vm173_vm9, %v3907_v27, %v3796_v20  ;;  %v5725_v20 = vld [vmem:[#allocation18_spill] sm:$0xff] }
 0x409   :  { %v920_v44 = vadd.f32 %v917_v29, %v911_v15  ;;  %v1947_v27 = vadd.f32 %v5725_v20, %v1938_v52  ;;  %v2334_v29 = vsel %vm266_vm10, %v2291_v57, %v2330_v53  ;;  %v2618_v53 = vsel %vm163_vm8, %v2615_v55, %v4237_v30  ;;  %v5734_v30 = vld [vmem:[#allocation31_spill] sm:$0xff] }
 0x40a   :  { %v2621_v33 = vadd.f32 %v2618_v53, %v4180_v25  ;;  %v2627_v55 = vsel %vm173_vm9, %v5734_v30, %v3826_v4 }
 0x40b   :  { %v922_v11 = vmul.f32 0.11111111, %v920_v44  ;;  %v1949_v38 = vmul.f32 0.11111111, %v1947_v27  ;;  %v221_v44 = vadd.f32 %v218_v60, %v212_v34 }
 0x40c   :  { %2727 = vrot.lane.b32.xlu1 %v2676_v0, %s2930_s13  ;;  %985 = vrot.lane.b32.xlu0 %v966_v61, %s2931_s14  ;;  %v2630_v60 = vadd.f32 %v2627_v55, %v2621_v33 }
 0x40d   :  { %v961_v6 = vrot.slane %v922_v11, 4 }
 0x40f   :  { %v4386_v18 = vsel %vm266_vm10, %v922_v11, %v961_v6  ;;  %v223_v11 = vmul.f32 0.11111111, %v221_v44 }
 0x410   :  { %2743 = vrot.lane.b32.xlu1 %v2676_v0, %s2928_s11  ;;  %1001 = vrot.lane.b32.xlu0 %v966_v61, %s2932_s15  ;;  %v1988_v0 = vrot.slane %v1949_v38, 4 }
 0x411   :  { %v262_v6 = vrot.slane %v223_v11, 4 }
 0x412   :  { %v1992_v58 = vsel %vm266_vm10, %v1949_v38, %v1988_v0 }
 0x413   :  { %v4463_v24 = vsel %vm266_vm10, %v223_v11, %v262_v6  ;;  %v2632_v11 = vmul.f32 0.11111111, %v2630_v60 }
 0x414   :  { %641 = vrot.lane.b32.xlu1 %v4345_v32, %s2931_s14  ;;  %1017 = vrot.lane.b32.xlu0 %v966_v61, %s2930_s13 }
 0x418   :  { %657 = vrot.lane.b32.xlu1 %v4345_v32, %s2932_s15  ;;  %1033 = vrot.lane.b32.xlu0 %v966_v61, %s2928_s11  ;;  %v1250_v61 = vsel %vm163_vm8, %v4269_v50, %v4212_v56  ;;  %v5729_v56 = vld [vmem:[#allocation20_spill] sm:$0xff] }
 0x419   :  { %v1253_v41 = vadd.f32 %v1250_v61, %v4129_v28  ;;  %v1259_v50 = vsel %vm173_vm9, %v5729_v56, %v3803_v5  ;;  %v4430_v5 = vpop.permute.xlu0 %610 }
 0x41c   :  { %673 = vrot.lane.b32.xlu1 %v4345_v32, %s2930_s13  ;;  %1327 = vrot.lane.b32.xlu0 %v1308_v42, %s2931_s14 }
 0x41d   :  { %v4443_v13 = vpop.permute.xlu0 %952 }
 0x41e   :  { %v958_v1 = vmax.f32 %v4208_v19, %v4443_v13 }
 0x420   :  { %689 = vrot.lane.b32.xlu1 %v4345_v32, %s2928_s11  ;;  %1343 = vrot.lane.b32.xlu0 %v1308_v42, %s2932_s15 }
 0x421   :  { %v4451_v26 = vpop.permute.xlu0 %1294 }
 0x424   :  { %709 = vrot.lane.b32.xlu1 %v4345_v32, %s2926_s10  ;;  %1359 = vrot.lane.b32.xlu0 %v1308_v42, %s2930_s13 }
 0x425   :  { %v4458_v38 = vpop.permute.xlu0 %1636 }
 0x428   :  { %719 = vrot.lane.b32.xlu1 %v4345_v32, %s2927_s2  ;;  %1375 = vrot.lane.b32.xlu0 %v1308_v42, %s2928_s11  ;;  %v1262_v42 = vadd.f32 %v1259_v50, %v1253_v41  ;;  %v1595_v41 = vadd.f32 %v1592_v37, %v4143_v14  ;;  %v2671_v37 = vrot.slane %v2632_v11, 4 }
 0x42a   :  { %v1264_v15 = vmul.f32 0.11111111, %v1262_v42  ;;  %v1604_v42 = vadd.f32 %v1601_v35, %v1595_v41  ;;  %v4540_v35 = vsel %vm266_vm10, %v2632_v11, %v2671_v37 }
 0x42c   :  { %729 = vrot.lane.b32.xlu1 %v4345_v32, %s2933_s16  ;;  %1669 = vrot.lane.b32.xlu0 %v1650_v59, %s2931_s14  ;;  %v1303_v48 = vrot.slane %v1264_v15, 4  ;;  %v1606_v34 = vmul.f32 0.11111111, %v1604_v42 }
 0x42e   :  { %v1645_v36 = vrot.slane %v1606_v34, 4 }
 0x42f   :  { %v4469_v46 = vpop.permute.xlu0 %1978 }
 0x430   :  { %739 = vrot.lane.b32.xlu1 %v4345_v32, %s2925_s9  ;;  %1685 = vrot.lane.b32.xlu0 %v1650_v59, %s2932_s15 }
 0x433   :  { %v4412_v63 = vpop.permute.xlu1 %2320 }
 0x434   :  { %983 = vrot.lane.b32.xlu1 %v4386_v18, %s2931_s14  ;;  %1701 = vrot.lane.b32.xlu0 %v1650_v59, %s2930_s13  ;;  %5728 = vst [vmem:[#allocation18_spill] sm:$0xff] %v4412_v63 }
 0x437   :  { %v4426_v28 = vpop.permute.xlu1 %2662 }
 0x438   :  { %999 = vrot.lane.b32.xlu1 %v4386_v18, %s2932_s15  ;;  %1717 = vrot.lane.b32.xlu0 %v1650_v59, %s2928_s11  ;;  %v4446_v59 = vsel %vm266_vm10, %v1264_v15, %v1303_v48  ;;  %v4525_v48 = vsel %vm266_vm10, %v1606_v34, %v1645_v36  ;;  %v1934_v34 = vsel %vm163_vm8, %v4288_v54, %v4228_v21  ;;  %v5737_v21 = vld [vmem:[#allocation25_spill] sm:$0xff] }
 0x439   :  { %v1937_v55 = vadd.f32 %v1934_v34, %v4155_v10  ;;  %v616_v36 = vmax.f32 %v4201_v47, %v4430_v5  ;;  %v1943_v54 = vsel %vm173_vm9, %v5737_v21, %v5725_v20 }
 0x43b   :  { %v1946_v37 = vadd.f32 %v1943_v54, %v1937_v55  ;;  %v628_v39 = vrot.slane %v616_v36, 4  ;;  %v4588_v54 = vld [vmem:[#allocation3] sm:$0xff] }
 0x43c   :  { %1015 = vrot.lane.b32.xlu1 %v4386_v18, %s2930_s13  ;;  %2011 = vrot.lane.b32.xlu0 %v1992_v58, %s2931_s14  ;;  %v4438_v52 = vpop.permute.xlu1 %608  ;;  %vm5695_vm12 = vcmp.eq.s32.totalorder %v4588_v54, 0  ;;  %vm5682_vm14 = vcmp.eq.s32.totalorder %v4588_v54, 1  ;;  %vm5681_vm15 = vcmp.eq.s32.totalorder %v4588_v54, 2  ;;  %vm5683_vm3 = vcmp.eq.s32.totalorder %v4588_v54, 3 }
 0x43d   :  { %v1948_v34 = vmul.f32 0.11111111, %v1946_v37  ;;  %vm5686_vm4 = vcmp.eq.s32.totalorder %v4588_v54, 4 }
 0x43f   :  { %v1987_v21 = vrot.slane %v1948_v34, 4 }
 0x440   :  { %1031 = vrot.lane.b32.xlu1 %v4386_v18, %s2928_s11  ;;  %2027 = vrot.lane.b32.xlu0 %v1992_v58, %s2932_s15  ;;  %v4453_v27 = vpop.permute.xlu1 %950  ;;  %v4480_v61 = vpop.permute.xlu0 %251 }
 0x444   :  { %1051 = vrot.lane.b32.xlu1 %v4386_v18, %s2926_s10  ;;  %2043 = vrot.lane.b32.xlu0 %v1992_v58, %s2930_s13 }
 0x448   :  { %1061 = vrot.lane.b32.xlu1 %v4386_v18, %s2927_s2  ;;  %2059 = vrot.lane.b32.xlu0 %v1992_v58, %s2928_s11  ;;  %v4460_v0 = vpop.permute.xlu1 %1292 }
 0x44c   :  { %1071 = vrot.lane.b32.xlu1 %v4386_v18, %s2933_s16  ;;  %2353 = vrot.lane.b32.xlu0 %v2334_v29, %s2931_s14 }
 0x450   :  { %1081 = vrot.lane.b32.xlu1 %v4386_v18, %s2925_s9  ;;  %2369 = vrot.lane.b32.xlu0 %v2334_v29, %s2932_s15  ;;  %v4471_v58 = vpop.permute.xlu1 %1634 }
 0x454   :  { %1325 = vrot.lane.b32.xlu1 %v4446_v59, %s2931_s14  ;;  %2385 = vrot.lane.b32.xlu0 %v2334_v29, %s2930_s13 }
 0x458   :  { %1341 = vrot.lane.b32.xlu1 %v4446_v59, %s2932_s15  ;;  %2401 = vrot.lane.b32.xlu0 %v2334_v29, %s2928_s11 }
 0x45c   :  { %1357 = vrot.lane.b32.xlu1 %v4446_v59, %s2930_s13  ;;  %286 = vrot.lane.b32.xlu0 %v4463_v24, %s2931_s14 }
 0x460   :  { %1373 = vrot.lane.b32.xlu1 %v4446_v59, %s2928_s11  ;;  %303 = vrot.lane.b32.xlu0 %v4463_v24, %s2932_s15 }
 0x462   :  { %v4482_v57 = vpop.permute.xlu1 %1976 }
 0x464   :  { %1393 = vrot.lane.b32.xlu1 %v4446_v59, %s2926_s10  ;;  %321 = vrot.lane.b32.xlu0 %v4463_v24, %s2930_s13 }
 0x466   :  { %v4492_v56 = vpop.permute.xlu0 %2318  ;;  %v4494_v50 = vpop.permute.xlu1 %288 }
 0x467   :  { %5732 = vst [vmem:[#allocation36_spill] sm:$0xff] %v4492_v56  ;;  %v632_v56 = vsel %vm266_vm10, %v616_v36, %v628_v39  ;;  %v4593_v36 = vsel %vm266_vm10, %v1948_v34, %v1987_v21 }
 0x468   :  { %1403 = vrot.lane.b32.xlu1 %v4446_v59, %s2927_s2  ;;  %338 = vrot.lane.b32.xlu0 %v4463_v24, %s2928_s11 }
 0x46a   :  { %v4502_v14 = vpop.permute.xlu0 %2660  ;;  %v4504_v16 = vpop.permute.xlu1 %305 }
 0x46b   :  { %5733 = vst [vmem:[#allocation16_spill] sm:$0xff] %v4502_v14 }
 0x46c   :  { %1413 = vrot.lane.b32.xlu1 %v4446_v59, %s2933_s16  ;;  %361 = vrot.lane.b32.xlu0 %v4463_v24, %s2926_s10 }
 0x46e   :  { %v4514_v15 = vpop.permute.xlu0 %643  ;;  %v4516_v29 = vpop.permute.xlu1 %323 }
 0x470   :  { %1423 = vrot.lane.b32.xlu1 %v4446_v59, %s2925_s9  ;;  %373 = vrot.lane.b32.xlu0 %v4463_v24, %s2927_s2 }
 0x472   :  { %v660_v25 = vpop.permute.xlu0 %659  ;;  %v4522_v44 = vpop.permute.xlu1 %340 }
 0x474   :  { %1667 = vrot.lane.b32.xlu1 %v4525_v48, %s2931_s14  ;;  %385 = vrot.lane.b32.xlu0 %v4463_v24, %s2933_s16 }
 0x476   :  { %v676_v4 = vpop.permute.xlu0 %675  ;;  %v4531_v6 = vpop.permute.xlu1 %2695 }
 0x477   :  { %5735 = vst [vmem:[#allocation20_spill] sm:$0xff] %v4531_v6 }
 0x478   :  { %1683 = vrot.lane.b32.xlu1 %v4525_v48, %s2932_s15  ;;  %397 = vrot.lane.b32.xlu0 %v4463_v24, %s2925_s9 }
 0x47a   :  { %v692_v41 = vpop.permute.xlu0 %691  ;;  %v4537_v45 = vpop.permute.xlu1 %2711 }
 0x47c   :  { %1699 = vrot.lane.b32.xlu1 %v4525_v48, %s2930_s13  ;;  %2693 = vrot.lane.b32.xlu0 %v4540_v35, %s2931_s14 }
 0x47e   :  { %v4546_v42 = vpop.permute.xlu0 %985  ;;  %v4548_v53 = vpop.permute.xlu1 %2727 }
 0x480   :  { %1715 = vrot.lane.b32.xlu1 %v4525_v48, %s2928_s11  ;;  %2709 = vrot.lane.b32.xlu0 %v4540_v35, %s2932_s15 }
 0x482   :  { %v4557_v33 = vpop.permute.xlu0 %1001  ;;  %v4559_v30 = vpop.permute.xlu1 %2743 }
 0x483   :  { %5736 = vst [vmem:[#allocation19_spill] sm:$0xff] %v4559_v30 }
 0x484   :  { %1735 = vrot.lane.b32.xlu1 %v4525_v48, %s2926_s10  ;;  %2725 = vrot.lane.b32.xlu0 %v4540_v35, %s2930_s13 }
 0x486   :  { %v4571_v60 = vpop.permute.xlu0 %1017  ;;  %v642_v11 = vpop.permute.xlu1 %641 }
 0x487   :  { %v645_v6 = vsel %vm163_vm8, %v642_v11, %v4514_v15 }
 0x488   :  { %1745 = vrot.lane.b32.xlu1 %v4525_v48, %s2927_s2  ;;  %2741 = vrot.lane.b32.xlu0 %v4540_v35, %s2928_s11  ;;  %v647_v21 = vsel %vm5695_vm12, %v645_v6, 0.0 }
 0x48a   :  { %v4577_v10 = vpop.permute.xlu0 %1033  ;;  %v658_v47 = vpop.permute.xlu1 %657 }
 0x48b   :  { %v661_v14 = vsel %vm307_vm11, %v658_v47, %v660_v25  ;;  %v970_v47 = vrot.slane %v958_v1, 4 }
 0x48c   :  { %1755 = vrot.lane.b32.xlu1 %v4525_v48, %s2933_s16  ;;  %652 = vrot.lane.b32.xlu0 %v632_v56, %s2931_s14  ;;  %v663_v19 = vsel %vm5688_vm0, 0.0, %v661_v14 }
 0x48d   :  { %v664_v14 = vsel %vm5682_vm14, %v663_v19, %v647_v21  ;;  %vm360_vm14 = vcmp.eq.s32.totalorder %v4588_v54, 5  ;;  %v2276_v21 = vsel %vm163_vm8, %v4409_v23, %v4230_v3 }
 0x48e   :  { %v4583_v20 = vpop.permute.xlu0 %1327  ;;  %v674_v55 = vpop.permute.xlu1 %673  ;;  %v2279_v23 = vadd.f32 %v2276_v21, %v4166_v62 }
 0x48f   :  { %v677_v30 = vsel %vm5694_vm7, %v674_v55, %v676_v4 }
 0x490   :  { %1765 = vrot.lane.b32.xlu1 %v4525_v48, %s2925_s9  ;;  %667 = vrot.lane.b32.xlu0 %v632_v56, %s2932_s15  ;;  %v679_v55 = vsel %vm5689_vm1, 0.0, %v677_v30 }
 0x492   :  { %v4590_v37 = vpop.permute.xlu0 %1343  ;;  %v690_v39 = vpop.permute.xlu1 %689 }
 0x493   :  { %v693_v34 = vsel %vm5687_vm6, %v690_v39, %v692_v41  ;;  %v680_v41 = vsel %vm5681_vm15, %v679_v55, %v664_v14  ;;  %v705_v39 = vsel %vm5684_vm2, 0.0, %v4345_v32  ;;  %vm388_vm15 = vcmask 56320  }
 0x494   :  { %683 = vrot.lane.b32.xlu0 %v632_v56, %s2930_s13  ;;  %2009 = vrot.lane.b32.xlu1 %v4593_v36, %s2931_s14  ;;  %v695_v15 = vsel %vm5680_vm13, 0.0, %v693_v34  ;;  %vm376_vm13 = vcmask 48128   ;;  %vm384_vm2 = vcmp.eq.s32.totalorder %v4588_v54, 7 }
 0x495   :  { %v696_v6 = vsel %vm5683_vm3, %v695_v15, %v680_v41  ;;  %vm372_vm3 = vcmp.eq.s32.totalorder %v4588_v54, 6  ;;  %v1300_v41 = vmax.f32 %v4215_v9, %v4451_v26  ;;  %v5741_v9 = vld [vmem:[#allocation29_spill] sm:$0xff] }
 0x496   :  { %v4608_v25 = vpop.permute.xlu0 %1359  ;;  %v710_v4 = vpop.permute.xlu1 %709  ;;  %v706_v34 = vsel %vm5686_vm4, %v705_v39, %v696_v6  ;;  %vm5693_vm4 = vcmp.eq.s32.totalorder %v4588_v54, 8  ;;  %v5738_v39 = vld [vmem:[#allocation21_spill] sm:$0xff] }
 0x497   :  { %v712_v19 = vsel %vm5685_vm5, 0.0, %v710_v4  ;;  %vm400_vm5 = vcmask 64512  }
 0x498   :  { %699 = vrot.lane.b32.xlu0 %v632_v56, %s2928_s11  ;;  %2025 = vrot.lane.b32.xlu1 %v4593_v36, %s2932_s15  ;;  %v974_v56 = vsel %vm266_vm10, %v958_v1, %v970_v47  ;;  %v713_v4 = vsel %vm360_vm14, %v712_v19, %v706_v34  ;;  %v5739_v34 = vld [vmem:[#allocation27_spill] sm:$0xff] }
 0x499   :  { %v4666_v19 = vsel %vm163_vm8, %v5739_v34, %v5738_v39 }
 0x49a   :  { %v4623_v11 = vpop.permute.xlu0 %1375  ;;  %v720_v30 = vpop.permute.xlu1 %719  ;;  %5740 = vst [vmem:[#allocation23_spill] sm:$0xff] %v4666_v19 }
 0x49b   :  { %v722_v47 = vsel %vm376_vm13, 0.0, %v720_v30 }
 0x49c   :  { %994 = vrot.lane.b32.xlu0 %v974_v56, %s2931_s14  ;;  %2041 = vrot.lane.b32.xlu1 %v4593_v36, %s2930_s13  ;;  %v723_v15 = vsel %vm372_vm3, %v722_v47, %v713_v4  ;;  %v2285_v47 = vsel %vm173_vm9, %v5741_v9, %v5727_v51  ;;  %vm5742_vm9 = vcmask 23552  }
 0x49d   :  { %v2288_v4 = vadd.f32 %v2285_v47, %v2279_v23 }
 0x49e   :  { %v4638_v55 = vpop.permute.xlu0 %1669  ;;  %v730_v1 = vpop.permute.xlu1 %729 }
 0x49f   :  { %v732_v32 = vsel %vm388_vm15, 0.0, %v730_v1 }
 0x4a0   :  { %1009 = vrot.lane.b32.xlu0 %v974_v56, %s2932_s15  ;;  %2057 = vrot.lane.b32.xlu1 %v4593_v36, %s2928_s11  ;;  %v733_v30 = vsel %vm384_vm2, %v732_v32, %v723_v15  ;;  %v1312_v15 = vrot.slane %v1300_v41, 4 }
 0x4a2   :  { %v4655_v14 = vpop.permute.xlu0 %1685  ;;  %v740_v3 = vpop.permute.xlu1 %739  ;;  %v1316_v39 = vsel %vm266_vm10, %v1300_v41, %v1312_v15  ;;  %v1642_v41 = vmax.f32 %v4222_v8, %v4458_v38 }
 0x4a3   :  { %v742_v6 = vsel %vm400_vm5, 0.0, %v740_v3 }
 0x4a4   :  { %v743_v1 = vsel %vm5693_vm4, %v742_v6, %v733_v30  ;;  %1025 = vrot.lane.b32.xlu0 %v974_v56, %s2930_s13  ;;  %2077 = vrot.lane.b32.xlu1 %v4593_v36, %s2926_s10  ;;  %v2290_v6 = vmul.f32 0.11111111, %v2288_v4 }
 0x4a5   :  { %v757_v62 = vadd.f32 %v4666_v19, %v743_v1 }
 0x4a6   :  { %v4677_v21 = vpop.permute.xlu0 %1701  ;;  %v984_v32 = vpop.permute.xlu1 %983  ;;  %v2329_v34 = vrot.slane %v2290_v6, 4 }
 0x4a7   :  { %759 = vst [vmem:[#allocation8 + $0x10] sm:$0xff] %v757_v62  ;;  %v987_v4 = vsel %vm163_vm8, %v984_v32, %v4546_v42 }
 0x4a8   :  { %1041 = vrot.lane.b32.xlu0 %v974_v56, %s2928_s11  ;;  %2087 = vrot.lane.b32.xlu1 %v4593_v36, %s2927_s2  ;;  %v4696_v62 = vsel %vm266_vm10, %v2290_v6, %v2329_v34 }
 0x4aa   :  { %v4682_v3 = vpop.permute.xlu0 %1717  ;;  %v1000_v30 = vpop.permute.xlu1 %999 }
 0x4ab   :  { %v1003_v9 = vsel %vm307_vm11, %v1000_v30, %v4557_v33  ;;  %v1654_v33 = vrot.slane %v1642_v41, 4 }
 0x4ac   :  { %1336 = vrot.lane.b32.xlu0 %v1316_v39, %s2931_s14  ;;  %2097 = vrot.lane.b32.xlu1 %v4593_v36, %s2933_s16  ;;  %v1005_v6 = vsel %vm5688_vm0, 0.0, %v1003_v9  ;;  %vm5744_vm0 = vcmp.eq.s32.totalorder %v4588_v54, 2 }
 0x4ae   :  { %v4688_v51 = vpop.permute.xlu0 %2011  ;;  %v1016_v23 = vpop.permute.xlu1 %1015 }
 0x4af   :  { %v1019_v47 = vsel %vm5694_vm7, %v1016_v23, %v4571_v60  ;;  %v989_v60 = vsel %vm5695_vm12, %v987_v4, 0.0 }
 0x4b0   :  { %1351 = vrot.lane.b32.xlu0 %v1316_v39, %s2932_s15  ;;  %2107 = vrot.lane.b32.xlu1 %v4593_v36, %s2925_s9  ;;  %v1021_v30 = vsel %vm5689_vm1, 0.0, %v1019_v47  ;;  %vm5745_vm1 = vcmp.eq.s32.totalorder %v4588_v54, 3  ;;  %v1658_v47 = vsel %vm266_vm10, %v1642_v41, %v1654_v33 }
 0x4b2   :  { %v4693_v56 = vpop.permute.xlu0 %2027  ;;  %v1032_v1 = vpop.permute.xlu1 %1031 }
 0x4b3   :  { %v1035_v15 = vsel %vm5687_vm6, %v1032_v1, %v4577_v10  ;;  %vm5743_vm6 = vcmp.eq.s32.totalorder %v4588_v54, 1 }
 0x4b4   :  { %1367 = vrot.lane.b32.xlu0 %v1316_v39, %s2930_s13  ;;  %2351 = vrot.lane.b32.xlu1 %v4696_v62, %s2931_s14  ;;  %v1037_v23 = vsel %vm5742_vm9, 0.0, %v1035_v15  ;;  %v1006_v42 = vsel %vm5743_vm6, %v1005_v6, %v989_v60  ;;  %vm5746_vm9 = vcmask 31744   ;;  %vm5747_vm6 = vcmp.eq.s32.totalorder %v4588_v54, 4 }
 0x4b5   :  { %v1022_v10 = vsel %vm5744_vm0, %v1021_v30, %v1006_v42  ;;  %vm5748_vm0 = vcmask 39936   ;;  %v1984_v42 = vmax.f32 %v4233_v22, %v4469_v46 }
 0x4b6   :  { %v4712_v8 = vpop.permute.xlu0 %2043  ;;  %v1052_v34 = vpop.permute.xlu1 %1051  ;;  %v1038_v9 = vsel %vm5745_vm1, %v1037_v23, %v1022_v10  ;;  %vm5752_vm1 = vcmask 1039360  }
 0x4b7   :  { %v1054_v15 = vsel %vm5748_vm0, 0.0, %v1052_v34  ;;  %vm5755_vm0 = vcmask 23552  }
 0x4b8   :  { %1383 = vrot.lane.b32.xlu0 %v1316_v39, %s2928_s11  ;;  %2367 = vrot.lane.b32.xlu1 %v4696_v62, %s2932_s15  ;;  %v1047_v39 = vsel %vm5746_vm9, 0.0, %v4386_v18  ;;  %vm5753_vm9 = vcmask 7168  }
 0x4b9   :  { %v1048_v4 = vsel %vm5747_vm6, %v1047_v39, %v1038_v9  ;;  %v5749_v9 = vld [vmem:[#allocation22_spill] sm:$0xff]  ;;  %v5750_v39 = vld [vmem:[#allocation28_spill] sm:$0xff]  ;;  %vm5754_vm6 = vcmask 15360  }
 0x4ba   :  { %v4725_v32 = vpop.permute.xlu0 %2059  ;;  %v1062_v1 = vpop.permute.xlu1 %1061  ;;  %v1055_v18 = vsel %vm360_vm14, %v1054_v15, %v1048_v4 }
 0x4bb   :  { %v1064_v60 = vsel %vm376_vm13, 0.0, %v1062_v1 }
 0x4bc   :  { %1678 = vrot.lane.b32.xlu0 %v1658_v47, %s2931_s14  ;;  %2383 = vrot.lane.b32.xlu1 %v4696_v62, %s2930_s13  ;;  %v1065_v33 = vsel %vm372_vm3, %v1064_v60, %v1055_v18 }
 0x4be   :  { %v4738_v6 = vpop.permute.xlu0 %2353  ;;  %v1072_v30 = vpop.permute.xlu1 %1071 }
 0x4bf   :  { %v1074_v41 = vsel %vm388_vm15, 0.0, %v1072_v30  ;;  %v4759_v30 = vsel %vm163_vm8, %v5750_v39, %v5749_v9  ;;  %v2326_v39 = vmax.f32 %v4240_v12, %v4412_v63 }
 0x4c0   :  { %1693 = vrot.lane.b32.xlu0 %v1658_v47, %s2932_s15  ;;  %2399 = vrot.lane.b32.xlu1 %v4696_v62, %s2928_s11  ;;  %v1075_v10 = vsel %vm384_vm2, %v1074_v41, %v1065_v33  ;;  %5751 = vst [vmem:[#allocation31_spill] sm:$0xff] %v4759_v30  ;;  %v1996_v41 = vrot.slane %v1984_v42, 4 }
 0x4c1   :  { %v2338_v63 = vrot.slane %v2326_v39, 4 }
 0x4c2   :  { %v4749_v23 = vpop.permute.xlu0 %2369  ;;  %v1082_v34 = vpop.permute.xlu1 %1081 }
 0x4c3   :  { %v1084_v1 = vsel %vm400_vm5, 0.0, %v1082_v34  ;;  %v2000_v34 = vsel %vm266_vm10, %v1984_v42, %v1996_v41 }
 0x4c4   :  { %v1085_v4 = vsel %vm5693_vm4, %v1084_v1, %v1075_v10  ;;  %1709 = vrot.lane.b32.xlu0 %v1658_v47, %s2930_s13  ;;  %2419 = vrot.lane.b32.xlu1 %v4696_v62, %s2926_s10  ;;  %vm5756_vm4 = vcmp.eq.s32.totalorder %v4588_v54, 1 }
 0x4c5   :  { %v1099_v22 = vadd.f32 %v4759_v30, %v1085_v4 }
 0x4c6   :  { %v4767_v15 = vpop.permute.xlu0 %2385  ;;  %v1326_v60 = vpop.permute.xlu1 %1325 }
 0x4c7   :  { %1101 = vst [vmem:[#allocation8 + $0x20] sm:$0xff] %v1099_v22  ;;  %v1329_v22 = vsel %vm163_vm8, %v1326_v60, %v4583_v20 }
 0x4c8   :  { %1725 = vrot.lane.b32.xlu0 %v1658_v47, %s2928_s11  ;;  %2761 = vrot.lane.b32.xlu1 %v4540_v35, %s2926_s10 }
 0x4ca   :  { %v4772_v18 = vpop.permute.xlu0 %2401  ;;  %v1342_v33 = vpop.permute.xlu1 %1341 }
 0x4cb   :  { %v1345_v42 = vsel %vm307_vm11, %v1342_v33, %v4590_v37 }
 0x4cc   :  { %2020 = vrot.lane.b32.xlu0 %v2000_v34, %s2931_s14  ;;  %2429 = vrot.lane.b32.xlu1 %v4696_v62, %s2927_s2  ;;  %v1347_v30 = vsel %vm5753_vm9, 0.0, %v1345_v42  ;;  %vm5759_vm9 = vcmp.eq.s32.totalorder %v4588_v54, 3 }
 0x4ce   :  { %v287_v10 = vpop.permute.xlu0 %286  ;;  %v1358_v1 = vpop.permute.xlu1 %1357 }
 0x4cf   :  { %v1361_v4 = vsel %vm5694_vm7, %v1358_v1, %v4608_v25  ;;  %v1331_v25 = vsel %vm5695_vm12, %v1329_v22, 0.0  ;;  %v2342_v22 = vsel %vm266_vm10, %v2326_v39, %v2338_v63 }
 0x4d0   :  { %2035 = vrot.lane.b32.xlu0 %v2000_v34, %s2932_s15  ;;  %2771 = vrot.lane.b32.xlu1 %v4540_v35, %s2927_s2  ;;  %v1363_v37 = vsel %vm5754_vm6, 0.0, %v1361_v4  ;;  %v1348_v20 = vsel %vm5756_vm4, %v1347_v30, %v1331_v25  ;;  %v290_v30 = vsel %vm163_vm8, %v287_v10, %v4494_v50  ;;  %vm5760_vm4 = vcmask 31744  }
 0x4d1   :  { %vm5761_vm6 = vcmask 1039360  }
 0x4d2   :  { %v304_v47 = vpop.permute.xlu0 %303  ;;  %v1374_v9 = vpop.permute.xlu1 %1373 }
 0x4d3   :  { %v1377_v41 = vsel %vm5752_vm1, %v1374_v9, %v4623_v11  ;;  %v5757_v11 = vld [vmem:[#allocation37_spill] sm:$0xff]  ;;  %vm5758_vm1 = vcmp.eq.s32.totalorder %v4588_v54, 2  ;;  %v308_v4 = vsel %vm307_vm11, %v304_v47, %v4504_v16 }
 0x4d4   :  { %2051 = vrot.lane.b32.xlu0 %v2000_v34, %s2930_s13  ;;  %2439 = vrot.lane.b32.xlu1 %v4696_v62, %s2933_s16  ;;  %v1379_v33 = vsel %vm5755_vm0, 0.0, %v1377_v41  ;;  %v259_v60 = vmax.f32 %v5757_v11, %v4404_v2  ;;  %v1364_v1 = vsel %vm5758_vm1, %v1363_v37, %v1348_v20  ;;  %v1389_v37 = vsel %vm5760_vm4, 0.0, %v4446_v59  ;;  %vm5766_vm4 = vmmov %vm5761_vm6 }
 0x4d5   :  { %vm5762_vm0 = vcmask 7168   ;;  %vm5763_vm1 = vcmp.eq.s32.totalorder %v4588_v54, 4  ;;  %v255_v59 = vsel %vm5766_vm4, %v4480_v61, %v4404_v2  ;;  %vm5774_vm4 = vcmask 31744  }
 0x4d6   :  { %v322_v12 = vpop.permute.xlu0 %321  ;;  %v1394_v19 = vpop.permute.xlu1 %1393  ;;  %v272_v47 = vrot.slane %v259_v60, 4  ;;  %v310_v63 = vsel %vm5762_vm0, 0.0, %v308_v4  ;;  %vm5769_vm0 = vcmp.eq.s32.totalorder %v4588_v54, 2  ;;  %v258_v4 = vmax.f32 %v4260_v43, %v255_v59 }
 0x4d7   :  { %v325_v41 = vsel %vm5694_vm7, %v322_v12, %v4516_v29  ;;  %vm5765_vm7 = vcmask 15360   ;;  %v356_v43 = vsel %vm5774_vm4, 0.0, %v4463_v24 }
 0x4d8   :  { %2067 = vrot.lane.b32.xlu0 %v2000_v34, %s2928_s11  ;;  %2781 = vrot.lane.b32.xlu1 %v4540_v35, %s2933_s16  ;;  %v1380_v34 = vsel %vm5759_vm9, %v1379_v33, %v1364_v1  ;;  %vm5764_vm9 = vcmask 39936   ;;  %v327_v33 = vsel %vm5765_vm7, 0.0, %v325_v41  ;;  %vm5768_vm7 = vcmp.eq.s32.totalorder %v4588_v54, 1 }
 0x4d9   :  { %v1390_v29 = vsel %vm5763_vm1, %v1389_v37, %v1380_v34  ;;  %v1396_v39 = vsel %vm5764_vm9, 0.0, %v1394_v19  ;;  %vm5770_vm1 = vcmp.eq.s32.totalorder %v4588_v54, 3  ;;  %v5771_v37 = vld [vmem:[#allocation24_spill] sm:$0xff]  ;;  %vm5773_vm9 = vcmp.eq.s32.totalorder %v4588_v54, 8 }
 0x4da   :  { %v339_v9 = vpop.permute.xlu0 %338  ;;  %v1404_v42 = vpop.permute.xlu1 %1403  ;;  %v1397_v11 = vsel %vm360_vm14, %v1396_v39, %v1390_v29 }
 0x4db   :  { %v342_v16 = vsel %vm5761_vm6, %v339_v9, %v4522_v44  ;;  %v1406_v50 = vsel %vm376_vm13, 0.0, %v1404_v42  ;;  %v292_v44 = vsel %vm5695_vm12, %v290_v30, 0.0  ;;  %vm5767_vm6 = vcmask 23552  }
 0x4dc   :  { %2362 = vrot.lane.b32.xlu0 %v2342_v22, %s2931_s14  ;;  %2449 = vrot.lane.b32.xlu1 %v4696_v62, %s2925_s9  ;;  %v345_v10 = vsel %vm5767_vm6, 0.0, %v342_v16  ;;  %v311_v19 = vsel %vm5768_vm7, %v310_v63, %v292_v44  ;;  %v1407_v61 = vsel %vm372_vm3, %v1406_v50, %v1397_v11  ;;  %v276_v42 = vsel %vm266_vm10, %v259_v60, %v272_v47  ;;  %v5772_v16 = vld [vmem:[#allocation30_spill] sm:$0xff] }
 0x4dd   :  { %v328_v2 = vsel %vm5769_vm0, %v327_v33, %v311_v19  ;;  %v4858_v63 = vsel %vm163_vm8, %v5772_v16, %v5771_v37  ;;  %vm5775_vm6 = vcmp.eq.s32.totalorder %v4588_v54, 4  ;;  %vm5776_vm7 = vcmask 39936   ;;  %v5777_v19 = vld [vmem:[#allocation38_spill] sm:$0xff]  ;;  %vm5780_vm0 = vmmov %vm5773_vm9 }
 0x4de   :  { %v362_v12 = vpop.permute.xlu0 %361  ;;  %v1414_v25 = vpop.permute.xlu1 %1413  ;;  %v346_v34 = vsel %vm5770_vm1, %v345_v10, %v328_v2  ;;  %v271_v50 = vrot.slane %v258_v4, 4  ;;  %v2668_v11 = vmax.f32 %v5777_v19, %v4426_v28  ;;  %vm5781_vm1 = vcmask 1039360  }
 0x4df   :  { %v1416_v20 = vsel %vm388_vm15, 0.0, %v1414_v25  ;;  %v357_v47 = vsel %vm5775_vm6, %v356_v43, %v346_v34  ;;  %v365_v39 = vsel %vm5776_vm7, 0.0, %v362_v12  ;;  %vm5783_vm4 = vmmov %vm5781_vm1  ;;  %vm5784_vm6 = vcmask 7168  }
 0x4e0   :  { %2377 = vrot.lane.b32.xlu0 %v2342_v22, %s2932_s15  ;;  %2791 = vrot.lane.b32.xlu1 %v4540_v35, %s2925_s9  ;;  %v1417_v41 = vsel %vm384_vm2, %v1416_v20, %v1407_v61  ;;  %v366_v24 = vsel %vm360_vm14, %v365_v39, %v357_v47  ;;  %v4881_v2 = vsel %vm266_vm10, %v258_v4, %v271_v50  ;;  %v2680_v16 = vrot.slane %v2668_v11, 4 }
 0x4e1   :  { %vm5785_vm7 = vcmask 15360  }
 0x4e2   :  { %v374_v1 = vpop.permute.xlu0 %373  ;;  %v1424_v9 = vpop.permute.xlu1 %1423 }
 0x4e3   :  { %v1426_v30 = vsel %vm400_vm5, 0.0, %v1424_v9  ;;  %v377_v59 = vsel %vm376_vm13, 0.0, %v374_v1  ;;  %v5778_v1 = vld [vmem:[#allocation17_spill] sm:$0xff]  ;;  %v5779_v9 = vld [vmem:[#allocation35_spill] sm:$0xff] }
 0x4e4   :  { %v1427_v29 = vsel %vm5773_vm9, %v1426_v30, %v1417_v41  ;;  %2393 = vrot.lane.b32.xlu0 %v2342_v22, %s2930_s13  ;;  %297 = vrot.lane.b32.xlu1 %v276_v42, %s2931_s14  ;;  %v378_v10 = vsel %vm372_vm3, %v377_v59, %v366_v24  ;;  %v4889_v34 = vsel %vm163_vm8, %v5779_v9, %v5778_v1  ;;  %vm5782_vm9 = vcmask 1031168  }
 0x4e5   :  { %v1441_v60 = vadd.f32 %v4858_v63, %v1427_v29  ;;  %v612_v29 = vsel %vm5781_vm1, %v4438_v52, %v4430_v5  ;;  %vm5787_vm1 = vcmp.eq.s32.totalorder %v4588_v54, 1 }
 0x4e6   :  { %v386_v25 = vpop.permute.xlu0 %385  ;;  %v1668_v33 = vpop.permute.xlu1 %1667  ;;  %v615_v47 = vmax.f32 %v4253_v49, %v612_v29 }
 0x4e7   :  { %1443 = vst [vmem:[#allocation8 + $0x30] sm:$0xff] %v1441_v60  ;;  %v389_v44 = vsel %vm388_vm15, 0.0, %v386_v25  ;;  %v2684_v25 = vsel %vm266_vm10, %v2668_v11, %v2680_v16  ;;  %v1671_v5 = vsel %vm163_vm8, %v1668_v33, %v4638_v55 }
 0x4e8   :  { %2409 = vrot.lane.b32.xlu0 %v2342_v22, %s2928_s11  ;;  %314 = vrot.lane.b32.xlu1 %v276_v42, %s2932_s15  ;;  %v390_v61 = vsel %vm384_vm2, %v389_v44, %v378_v10  ;;  %v627_v59 = vrot.slane %v615_v47, 4 }
 0x4ea   :  { %v398_v20 = vpop.permute.xlu0 %397  ;;  %v1684_v12 = vpop.permute.xlu1 %1683 }
 0x4eb   :  { %v401_v22 = vsel %vm400_vm5, 0.0, %v398_v20  ;;  %v1687_v39 = vsel %vm307_vm11, %v1684_v12, %v4655_v14  ;;  %v4937_v20 = vsel %vm266_vm10, %v615_v47, %v627_v59  ;;  %v5794_v47 = vld [vmem:[#allocation26_spill] sm:$0xff] }
 0x4ec   :  { %v402_v41 = vsel %vm5780_vm0, %v401_v22, %v390_v61  ;;  %295 = vrot.lane.b32.xlu0 %v4881_v2, %s2931_s14  ;;  %331 = vrot.lane.b32.xlu1 %v276_v42, %s2930_s13  ;;  %v1689_v49 = vsel %vm5784_vm6, 0.0, %v1687_v39  ;;  %vm5786_vm0 = vcmask 23552   ;;  %vm5790_vm6 = vcmask 31744   ;;  %v5795_v39 = vld [vmem:[#allocation32_spill] sm:$0xff] }
 0x4ed   :  { %v416_v4 = vadd.f32 %v4889_v34, %v402_v41  ;;  %v1731_v19 = vsel %vm5790_vm6, 0.0, %v4525_v48  ;;  %vm5798_vm6 = vcmask 1031168  }
 0x4ee   :  { %v4897_v30 = vpop.permute.xlu0 %2693  ;;  %v1700_v37 = vpop.permute.xlu1 %1699 }
 0x4ef   :  { %417 = vst [vmem:[#allocation8] sm:$0xff] %v416_v4  ;;  %v1703_v50 = vsel %vm5782_vm9, %v1700_v37, %v4677_v21  ;;  %v1673_v21 = vsel %vm5695_vm12, %v1671_v5, 0.0  ;;  %vm5788_vm9 = vcmp.eq.s32.totalorder %v4588_v54, 2 }
 0x4f0   :  { %312 = vrot.lane.b32.xlu0 %v4881_v2, %s2932_s15  ;;  %349 = vrot.lane.b32.xlu1 %v276_v42, %s2928_s11  ;;  %v1705_v44 = vsel %vm5785_vm7, 0.0, %v1703_v50  ;;  %v1690_v55 = vsel %vm5787_vm1, %v1689_v49, %v1673_v21  ;;  %vm5791_vm7 = vcmp.eq.s32.totalorder %v4588_v54, 4  ;;  %vm5793_vm1 = vcmask 1039360  }
 0x4f1   :  { %v954_v41 = vsel %vm5793_vm1, %v4453_v27, %v4443_v13 }
 0x4f2   :  { %v4905_v43 = vpop.permute.xlu0 %2709  ;;  %v1716_v60 = vpop.permute.xlu1 %1715 }
 0x4f3   :  { %v1719_v52 = vsel %vm5783_vm4, %v1716_v60, %v4682_v3  ;;  %v1706_v3 = vsel %vm5788_vm9, %v1705_v44, %v1690_v55  ;;  %vm5789_vm4 = vcmp.eq.s32.totalorder %v4588_v54, 3  ;;  %v957_v60 = vmax.f32 %v4263_v31, %v954_v41 }
 0x4f4   :  { %329 = vrot.lane.b32.xlu0 %v4881_v2, %s2930_s13  ;;  %2704 = vrot.lane.b32.xlu1 %v2684_v25, %s2931_s14  ;;  %v1721_v24 = vsel %vm5786_vm0, 0.0, %v1719_v52  ;;  %vm5792_vm0 = vcmask 39936   ;;  %vm5796_vm9 = vcmp.eq.s32.totalorder %v4588_v54, 8 }
 0x4f5   :  { %v1722_v12 = vsel %vm5789_vm4, %v1721_v24, %v1706_v3  ;;  %v969_v49 = vrot.slane %v957_v60, 4  ;;  %vm5797_vm4 = vmmov %vm5793_vm1 }
 0x4f6   :  { %v4921_v42 = vpop.permute.xlu0 %2725  ;;  %v1736_v14 = vpop.permute.xlu1 %1735  ;;  %v1732_v11 = vsel %vm5791_vm7, %v1731_v19, %v1722_v12  ;;  %v1296_v55 = vsel %vm5797_vm4, %v4460_v0, %v4451_v26  ;;  %vm5799_vm7 = vmmov %vm5793_vm1  ;;  %vm5801_vm1 = vcmask 15360   ;;  %vm5803_vm4 = vcmp.eq.s32.totalorder %v4588_v54, 1 }
 0x4f7   :  { %v1738_v61 = vsel %vm5792_vm0, 0.0, %v1736_v14  ;;  %v4990_v44 = vsel %vm266_vm10, %v957_v60, %v969_v49  ;;  %v1299_v12 = vmax.f32 %v4273_v17, %v1296_v55  ;;  %vm5800_vm0 = vcmask 7168  }
 0x4f8   :  { %347 = vrot.lane.b32.xlu0 %v4881_v2, %s2928_s11  ;;  %2719 = vrot.lane.b32.xlu1 %v2684_v25, %s2932_s15  ;;  %v1739_v48 = vsel %vm360_vm14, %v1738_v61, %v1732_v11 }
 0x4fa   :  { %v4934_v33 = vpop.permute.xlu0 %2741  ;;  %v1746_v10 = vpop.permute.xlu1 %1745 }
 0x4fb   :  { %v1748_v9 = vsel %vm376_vm13, 0.0, %v1746_v10 }
 0x4fc   :  { %714 = vrot.lane.b32.xlu0 %v4937_v20, %s2926_s10  ;;  %2735 = vrot.lane.b32.xlu1 %v2684_v25, %s2930_s13  ;;  %v1749_v37 = vsel %vm372_vm3, %v1748_v9, %v1739_v48 }
 0x4fe   :  { %v4949_v22 = vpop.permute.xlu0 %652  ;;  %v1756_v1 = vpop.permute.xlu1 %1755 }
 0x4ff   :  { %v1758_v4 = vsel %vm388_vm15, 0.0, %v1756_v1  ;;  %v1311_v1 = vrot.slane %v1299_v12, 4 }
 0x500   :  { %724 = vrot.lane.b32.xlu0 %v4937_v20, %s2927_s2  ;;  %2751 = vrot.lane.b32.xlu1 %v2684_v25, %s2928_s11  ;;  %v1759_v13 = vsel %vm384_vm2, %v1758_v4, %v1749_v37  ;;  %v4972_v25 = vsel %vm163_vm8, %v5795_v39, %v5794_v47 }
 0x501   :  { %v5038_v37 = vsel %vm266_vm10, %v1299_v12, %v1311_v1  ;;  %v5811_v12 = vld [vmem:[#allocation33_spill] sm:$0xff] }
 0x502   :  { %v4963_v16 = vpop.permute.xlu0 %667  ;;  %v1766_v29 = vpop.permute.xlu1 %1765 }
 0x503   :  { %v1768_v27 = vsel %vm400_vm5, 0.0, %v1766_v29 }
 0x504   :  { %v1769_v50 = vsel %vm5796_vm9, %v1768_v27, %v1759_v13  ;;  %734 = vrot.lane.b32.xlu0 %v4937_v20, %s2933_s16  ;;  %367 = vrot.lane.b32.xlu1 %v4881_v2, %s2926_s10  ;;  %vm5802_vm9 = vcmask 23552  }
 0x505   :  { %v1783_v31 = vadd.f32 %v4972_v25, %v1769_v50 }
 0x506   :  { %v4981_v5 = vpop.permute.xlu0 %683  ;;  %v2010_v52 = vpop.permute.xlu1 %2009 }
 0x507   :  { %1785 = vst [vmem:[#allocation8 + $0x40] sm:$0xff] %v1783_v31  ;;  %v2013_v26 = vsel %vm163_vm8, %v2010_v52, %v4688_v51 }
 0x508   :  { %744 = vrot.lane.b32.xlu0 %v4937_v20, %s2925_s9  ;;  %379 = vrot.lane.b32.xlu1 %v4881_v2, %s2927_s2  ;;  %v2015_v9 = vsel %vm5695_vm12, %v2013_v26, 0.0 }
 0x50a   :  { %v4987_v14 = vpop.permute.xlu0 %699  ;;  %v2026_v59 = vpop.permute.xlu1 %2025 }
 0x50b   :  { %v2029_v19 = vsel %vm307_vm11, %v2026_v59, %v4693_v56 }
 0x50c   :  { %1056 = vrot.lane.b32.xlu0 %v4990_v44, %s2926_s10  ;;  %391 = vrot.lane.b32.xlu1 %v4881_v2, %s2933_s16  ;;  %v2031_v17 = vsel %vm5800_vm0, 0.0, %v2029_v19  ;;  %vm5806_vm0 = vcmask 31744  }
 0x50d   :  { %v2032_v51 = vsel %vm5803_vm4, %v2031_v17, %v2015_v9  ;;  %v2073_v60 = vsel %vm5806_vm0, 0.0, %v4593_v36  ;;  %vm5809_vm4 = vcmask 1039360   ;;  %vm5814_vm0 = vcmask 1031168  }
 0x50e   :  { %v4996_v21 = vpop.permute.xlu0 %994  ;;  %v2042_v24 = vpop.permute.xlu1 %2041  ;;  %v1638_v31 = vsel %vm5809_vm4, %v4471_v58, %v4458_v38 }
 0x50f   :  { %v2045_v11 = vsel %vm5798_vm6, %v2042_v24, %v4712_v8  ;;  %vm5804_vm6 = vcmp.eq.s32.totalorder %v4588_v54, 2  ;;  %v1641_v55 = vmax.f32 %v4281_v40, %v1638_v31 }
 0x510   :  { %1066 = vrot.lane.b32.xlu0 %v4990_v44, %s2927_s2  ;;  %403 = vrot.lane.b32.xlu1 %v4881_v2, %s2925_s9  ;;  %v2047_v8 = vsel %vm5801_vm1, 0.0, %v2045_v11  ;;  %vm5807_vm1 = vcmp.eq.s32.totalorder %v4588_v54, 4 }
 0x511   :  { %v1653_v17 = vrot.slane %v1641_v55, 4 }
 0x512   :  { %v5005_v3 = vpop.permute.xlu0 %1009  ;;  %v2058_v10 = vpop.permute.xlu1 %2057 }
 0x513   :  { %v2061_v0 = vsel %vm5799_vm7, %v2058_v10, %v4725_v32  ;;  %v2048_v32 = vsel %vm5804_vm6, %v2047_v8, %v2032_v51  ;;  %vm5805_vm7 = vcmp.eq.s32.totalorder %v4588_v54, 3  ;;  %v5810_v10 = vld [vmem:[#allocation34_spill] sm:$0xff]  ;;  %vm5812_vm6 = vcmp.eq.s32.totalorder %v4588_v54, 8 }
 0x514   :  { %1076 = vrot.lane.b32.xlu0 %v4990_v44, %s2933_s16  ;;  %650 = vrot.lane.b32.xlu1 %v4937_v20, %s2931_s14  ;;  %v2063_v41 = vsel %vm5802_vm9, 0.0, %v2061_v0  ;;  %vm5808_vm9 = vcmask 39936   ;;  %v5075_v19 = vsel %vm163_vm8, %v5811_v12, %v5810_v10  ;;  %v5093_v8 = vsel %vm266_vm10, %v1641_v55, %v1653_v17 }
 0x515   :  { %v2064_v29 = vsel %vm5805_vm7, %v2063_v41, %v2048_v32  ;;  %vm5813_vm7 = vcmask 7168  }
 0x516   :  { %v5021_v61 = vpop.permute.xlu0 %1025  ;;  %v2078_v56 = vpop.permute.xlu1 %2077  ;;  %v2074_v13 = vsel %vm5807_vm1, %v2073_v60, %v2064_v29  ;;  %vm5815_vm1 = vmmov %vm5809_vm4  ;;  %vm5817_vm4 = vcmask 15360  }
 0x517   :  { %v2080_v27 = vsel %vm5808_vm9, 0.0, %v2078_v56  ;;  %vm5816_vm9 = vcmp.eq.s32.totalorder %v4588_v54, 1 }
 0x518   :  { %1086 = vrot.lane.b32.xlu0 %v4990_v44, %s2925_s9  ;;  %665 = vrot.lane.b32.xlu1 %v4937_v20, %s2932_s15  ;;  %v2081_v36 = vsel %vm360_vm14, %v2080_v27, %v2074_v13 }
 0x51a   :  { %v5035_v4 = vpop.permute.xlu0 %1041  ;;  %v2088_v48 = vpop.permute.xlu1 %2087 }
 0x51b   :  { %v2090_v50 = vsel %vm376_vm13, 0.0, %v2088_v48 }
 0x51c   :  { %1398 = vrot.lane.b32.xlu0 %v5038_v37, %s2926_s10  ;;  %681 = vrot.lane.b32.xlu1 %v4937_v20, %s2930_s13  ;;  %v2091_v49 = vsel %vm372_vm3, %v2090_v50, %v2081_v36 }
 0x51e   :  { %v5051_v47 = vpop.permute.xlu0 %1336  ;;  %v2098_v39 = vpop.permute.xlu1 %2097 }
 0x51f   :  { %v2100_v52 = vsel %vm388_vm15, 0.0, %v2098_v39 }
 0x520   :  { %1408 = vrot.lane.b32.xlu0 %v5038_v37, %s2927_s2  ;;  %697 = vrot.lane.b32.xlu1 %v4937_v20, %s2928_s11  ;;  %v2101_v38 = vsel %vm384_vm2, %v2100_v52, %v2091_v49 }
 0x522   :  { %v5066_v59 = vpop.permute.xlu0 %1351  ;;  %v2108_v24 = vpop.permute.xlu1 %2107 }
 0x523   :  { %v2110_v58 = vsel %vm400_vm5, 0.0, %v2108_v24  ;;  %v2713_v24 = vsel %vm307_vm11, %v4905_v43, %v4537_v45  ;;  %v5827_v45 = vld [vmem:[#allocation19_spill] sm:$0xff] }
 0x524   :  { %v2111_v11 = vsel %vm5812_vm6, %v2110_v58, %v2101_v38  ;;  %1418 = vrot.lane.b32.xlu0 %v5038_v37, %s2933_s16  ;;  %992 = vrot.lane.b32.xlu1 %v4990_v44, %s2931_s14  ;;  %vm5818_vm6 = vcmp.eq.s32.totalorder %v4588_v54, 2  ;;  %v5826_v58 = vld [vmem:[#allocation20_spill] sm:$0xff] }
 0x525   :  { %v2125_v40 = vadd.f32 %v5075_v19, %v2111_v11  ;;  %v2697_v10 = vsel %vm163_vm8, %v4897_v30, %v5826_v58 }
 0x526   :  { %v5084_v26 = vpop.permute.xlu0 %1367  ;;  %v2352_v0 = vpop.permute.xlu1 %2351 }
 0x527   :  { %2127 = vst [vmem:[#allocation8 + $0x50] sm:$0xff] %v2125_v40  ;;  %v2355_v41 = vsel %vm163_vm8, %v2352_v0, %v4738_v6  ;;  %v1980_v6 = vsel %vm5815_vm1, %v4482_v57, %v4469_v46  ;;  %v2699_v0 = vsel %vm5695_vm12, %v2697_v10, 0.0 }
 0x528   :  { %1428 = vrot.lane.b32.xlu0 %v5038_v37, %s2925_s9  ;;  %1007 = vrot.lane.b32.xlu1 %v4990_v44, %s2932_s15  ;;  %v2357_v29 = vsel %vm5695_vm12, %v2355_v41, 0.0  ;;  %v1983_v50 = vmax.f32 %v4294_v7, %v1980_v6 }
 0x52a   :  { %v5090_v56 = vpop.permute.xlu0 %1383  ;;  %v2368_v1 = vpop.permute.xlu1 %2367  ;;  %v1995_v49 = vrot.slane %v1983_v50, 4 }
 0x52b   :  { %v2371_v9 = vsel %vm307_vm11, %v2368_v1, %v4749_v23 }
 0x52c   :  { %1740 = vrot.lane.b32.xlu0 %v5093_v8, %s2926_s10  ;;  %1023 = vrot.lane.b32.xlu1 %v4990_v44, %s2930_s13  ;;  %v2373_v51 = vsel %vm5813_vm7, 0.0, %v2371_v9  ;;  %vm5819_vm7 = vmmov %vm5815_vm1  ;;  %vm5821_vm1 = vcmp.eq.s32.totalorder %v4588_v54, 3  ;;  %v5163_v11 = vsel %vm266_vm10, %v1983_v50, %v1995_v49  ;;  %v5838_v50 = vld [vmem:[#allocation16_spill] sm:$0xff] }
 0x52d   :  { %v2374_v60 = vsel %vm5816_vm9, %v2373_v51, %v2357_v29  ;;  %vm5822_vm9 = vcmask 31744   ;;  %v5841_v49 = vld [vmem:[#allocation12_spill] sm:$0xff] }
 0x52e   :  { %v5104_v32 = vpop.permute.xlu0 %1678  ;;  %v2384_v48 = vpop.permute.xlu1 %2383  ;;  %v2415_v52 = vsel %vm5822_vm9, 0.0, %v4696_v62  ;;  %vm5830_vm9 = vcmask 15360  }
 0x52f   :  { %v2387_v23 = vsel %vm5814_vm0, %v2384_v48, %v4767_v15  ;;  %vm5820_vm0 = vcmask 23552  }
 0x530   :  { %v2389_v13 = vsel %vm5817_vm4, 0.0, %v2387_v23  ;;  %1750 = vrot.lane.b32.xlu0 %v5093_v8, %s2927_s2  ;;  %1039 = vrot.lane.b32.xlu1 %v4990_v44, %s2928_s11  ;;  %vm5823_vm4 = vcmp.eq.s32.totalorder %v4588_v54, 4 }
 0x531   :  { %v2390_v27 = vsel %vm5818_vm6, %v2389_v13, %v2374_v60  ;;  %vm5824_vm6 = vcmask 39936  }
 0x532   :  { %v5122_v39 = vpop.permute.xlu0 %1693  ;;  %v2400_v15 = vpop.permute.xlu1 %2399 }
 0x533   :  { %v2403_v46 = vsel %vm5819_vm7, %v2400_v15, %v4772_v18  ;;  %vm5825_vm7 = vcmask 1031168  }
 0x534   :  { %v2405_v57 = vsel %vm5820_vm0, 0.0, %v2403_v46  ;;  %1760 = vrot.lane.b32.xlu0 %v5093_v8, %s2933_s16  ;;  %1334 = vrot.lane.b32.xlu1 %v5038_v37, %s2931_s14  ;;  %v2729_v38 = vsel %vm5825_vm7, %v4921_v42, %v4548_v53  ;;  %vm5828_vm0 = vcmask 1039360   ;;  %vm5833_vm7 = vcmp.eq.s32.totalorder %v4588_v54, 2 }
 0x535   :  { %v2406_v31 = vsel %vm5821_vm1, %v2405_v57, %v2390_v27  ;;  %v2745_v43 = vsel %vm5828_vm0, %v4934_v33, %v5827_v45  ;;  %vm5829_vm1 = vcmask 7168   ;;  %v2731_v40 = vsel %vm5830_vm9, 0.0, %v2729_v38 }
 0x536   :  { %v5136_v36 = vpop.permute.xlu0 %1709  ;;  %v2416_v7 = vsel %vm5823_vm4, %v2415_v52, %v2406_v31  ;;  %v2420_v18 = vpop.permute.xlu1 %2419  ;;  %v2715_v12 = vsel %vm5829_vm1, 0.0, %v2713_v24  ;;  %vm5831_vm4 = vcmask 23552   ;;  %vm5834_vm0 = vcmp.eq.s32.totalorder %v4588_v54, 3  ;;  %v5840_v52 = vld [vmem:[#allocation40_spill] sm:$0xff] }
 0x537   :  { %v2422_v55 = vsel %vm5824_vm6, 0.0, %v2420_v18  ;;  %v2747_v17 = vsel %vm5831_vm4, 0.0, %v2745_v43  ;;  %vm5832_vm6 = vcmp.eq.s32.totalorder %v4588_v54, 1  ;;  %vm5835_vm1 = vcmask 39936  }
 0x538   :  { %v2423_v62 = vsel %vm360_vm14, %v2422_v55, %v2416_v7  ;;  %1770 = vrot.lane.b32.xlu0 %v5093_v8, %s2925_s9  ;;  %1349 = vrot.lane.b32.xlu1 %v5038_v37, %s2932_s15  ;;  %v2716_v30 = vsel %vm5832_vm6, %v2715_v12, %v2699_v0  ;;  %vm5836_vm9 = vcmask 31744   ;;  %vm5837_vm4 = vcmp.eq.s32.totalorder %v4588_v54, 4 }
 0x539   :  { %v2732_v33 = vsel %vm5833_vm7, %v2731_v40, %v2716_v30  ;;  %v2757_v23 = vsel %vm5836_vm9, 0.0, %v4540_v35  ;;  %vm5839_vm6 = vcmask 1039360   ;;  %v2344_v24 = vrot.slane %v5841_v49, 4 }
 0x53a   :  { %v5160_v53 = vpop.permute.xlu0 %1725  ;;  %v2762_v42 = vpop.permute.xlu1 %2761  ;;  %v2748_v41 = vsel %vm5834_vm0, %v2747_v17, %v2732_v33  ;;  %v2664_v46 = vsel %vm5839_vm6, %v5838_v50, %v4426_v28  ;;  %vm5842_vm7 = vcmp.eq.s32.totalorder %v4588_v54, 8  ;;  %vm5845_vm0 = vmmov %vm5839_vm6  ;;  %vm5850_vm9 = vcmask 1031168  }
 0x53b   :  { %v2764_v48 = vsel %vm5835_vm1, 0.0, %v2762_v42  ;;  %v2758_v6 = vsel %vm5837_vm4, %v2757_v23, %v2748_v41  ;;  %v2667_v7 = vmax.f32 %v5840_v52, %v2664_v46  ;;  %v2348_v10 = vsel %vm266_vm10, %v5841_v49, %v2344_v24  ;;  %v5844_v41 = vld [vmem:[#allocation36_spill] sm:$0xff]  ;;  %vm5846_vm1 = vmmov %vm5842_vm7 }
 0x53c   :  { %2082 = vrot.lane.b32.xlu0 %v5163_v11, %s2926_s10  ;;  %1365 = vrot.lane.b32.xlu1 %v5038_v37, %s2930_s13  ;;  %v2765_v27 = vsel %vm360_vm14, %v2764_v48, %v2758_v6  ;;  %v5847_v6 = vld [vmem:[#allocation39_spill] sm:$0xff]  ;;  %vm5851_vm4 = vmmov %vm5845_vm0  ;;  %vm5852_vm6 = vcmask 7168  }
 0x53e   :  { %v5177_v1 = vpop.permute.xlu0 %2020  ;;  %v2430_v9 = vpop.permute.xlu1 %2429 }
 0x53f   :  { %v2432_v51 = vsel %vm376_vm13, 0.0, %v2430_v9  ;;  %v5843_v9 = vld [vmem:[#allocation18_spill] sm:$0xff] }
 0x540   :  { %v2433_v29 = vsel %vm372_vm3, %v2432_v51, %v2423_v62  ;;  %2092 = vrot.lane.b32.xlu0 %v5163_v11, %s2927_s2  ;;  %1381 = vrot.lane.b32.xlu1 %v5038_v37, %s2928_s11  ;;  %v2679_v62 = vrot.slane %v2667_v7, 4  ;;  %v2322_v51 = vsel %vm5845_vm0, %v5844_v41, %v5843_v9  ;;  %vm5854_vm0 = vcmask 23552  }
 0x542   :  { %v5193_v60 = vpop.permute.xlu0 %2035  ;;  %v2772_v13 = vpop.permute.xlu1 %2771  ;;  %v5231_v42 = vsel %vm266_vm10, %v2667_v7, %v2679_v62 }
 0x543   :  { %v2774_v15 = vsel %vm376_vm13, 0.0, %v2772_v13  ;;  %v2325_v13 = vmax.f32 %v5847_v6, %v2322_v51 }
 0x544   :  { %v2775_v57 = vsel %vm372_vm3, %v2774_v15, %v2765_v27  ;;  %2102 = vrot.lane.b32.xlu0 %v5163_v11, %s2933_s16  ;;  %1676 = vrot.lane.b32.xlu1 %v5093_v8, %s2931_s14 }
 0x545   :  { %v2337_v50 = vrot.slane %v2325_v13, 4 }
 0x546   :  { %v5207_v35 = vpop.permute.xlu0 %2051  ;;  %v2440_v31 = vpop.permute.xlu1 %2439 }
 0x547   :  { %v2442_v18 = vsel %vm388_vm15, 0.0, %v2440_v31  ;;  %v5270_v31 = vsel %vm266_vm10, %v2325_v13, %v2337_v50 }
 0x548   :  { %v2443_v28 = vsel %vm384_vm2, %v2442_v18, %v2433_v29  ;;  %2112 = vrot.lane.b32.xlu0 %v5163_v11, %s2925_s9  ;;  %1691 = vrot.lane.b32.xlu1 %v5093_v8, %s2932_s15 }
 0x54a   :  { %v5218_v55 = vpop.permute.xlu0 %2067  ;;  %v2782_v38 = vpop.permute.xlu1 %2781 }
 0x54b   :  { %v2784_v58 = vsel %vm388_vm15, 0.0, %v2782_v38 }
 0x54c   :  { %v2785_v45 = vsel %vm384_vm2, %v2784_v58, %v2775_v57  ;;  %2463 = vrot.lane.b32.xlu0 %v2348_v10, %s2931_s14  ;;  %1707 = vrot.lane.b32.xlu1 %v5093_v8, %s2930_s13  ;;  %v5848_v58 = vld [vmem:[#allocation14_spill] sm:$0xff] }
 0x54d   :  { %v2343_v10 = vrot.slane %v5848_v58, 4 }
 0x54e   :  { %v5228_v43 = vpop.permute.xlu0 %2362  ;;  %v2450_v12 = vpop.permute.xlu1 %2449 }
 0x54f   :  { %v2452_v40 = vsel %vm400_vm5, 0.0, %v2450_v12 }
 0x550   :  { %v5236_v0 = vsel %vm5842_vm7, %v2452_v40, %v2443_v28  ;;  %2702 = vrot.lane.b32.xlu0 %v5231_v42, %s2931_s14  ;;  %1723 = vrot.lane.b32.xlu1 %v5093_v8, %s2928_s11  ;;  %v2347_v40 = vsel %vm266_vm10, %v5848_v58, %v2343_v10  ;;  %vm5853_vm7 = vcmask 15360  }
 0x552   :  { %v5242_v17 = vpop.permute.xlu0 %2377  ;;  %v2792_v30 = vpop.permute.xlu1 %2791 }
 0x553   :  { %v2794_v33 = vsel %vm400_vm5, 0.0, %v2792_v30  ;;  %v5849_v30 = vld [vmem:[#allocation15_spill] sm:$0xff] }
 0x554   :  { %v5250_v48 = vsel %vm5846_vm1, %v2794_v33, %v2785_v45  ;;  %2717 = vrot.lane.b32.xlu0 %v5231_v42, %s2932_s15  ;;  %2018 = vrot.lane.b32.xlu1 %v5163_v11, %s2931_s14  ;;  %v2685_v33 = vrot.slane %v5849_v30, 4  ;;  %vm5855_vm1 = vcmp.eq.s32.totalorder %v4588_v54, 1 }
 0x556   :  { %v5256_v29 = vpop.permute.xlu0 %2393  ;;  %v298_v23 = vpop.permute.xlu1 %297  ;;  %v2689_v58 = vsel %vm266_vm10, %v5849_v30, %v2685_v33 }
 0x558   :  { %2733 = vrot.lane.b32.xlu0 %v5231_v42, %s2930_s13  ;;  %2033 = vrot.lane.b32.xlu1 %v5163_v11, %s2932_s15 }
 0x55a   :  { %v5263_v27 = vpop.permute.xlu0 %2409  ;;  %v315_v15 = vpop.permute.xlu1 %314 }
 0x55c   :  { %2749 = vrot.lane.b32.xlu0 %v5231_v42, %s2928_s11  ;;  %2049 = vrot.lane.b32.xlu1 %v5163_v11, %s2930_s13 }
 0x55e   :  { %v296_v46 = vpop.permute.xlu0 %295  ;;  %v332_v57 = vpop.permute.xlu1 %331 }
 0x55f   :  { %v299_v13 = vsel %vm163_vm8, %v296_v46, %v298_v23 }
 0x560   :  { %2424 = vrot.lane.b32.xlu0 %v5270_v31, %s2926_s10  ;;  %2065 = vrot.lane.b32.xlu1 %v5163_v11, %s2928_s11 }
 0x562   :  { %v313_v52 = vpop.permute.xlu0 %312  ;;  %v350_v7 = vpop.permute.xlu1 %349 }
 0x563   :  { %v316_v9 = vsel %vm307_vm11, %v313_v52, %v315_v15 }
 0x564   :  { %2766 = vrot.lane.b32.xlu0 %v5231_v42, %s2926_s10  ;;  %2360 = vrot.lane.b32.xlu1 %v5270_v31, %s2931_s14  ;;  %v318_v10 = vsel %vm5852_vm6, 0.0, %v316_v9  ;;  %vm5859_vm6 = vcmask 39936  }
 0x566   :  { %v330_v18 = vpop.permute.xlu0 %329  ;;  %v5280_v49 = vpop.permute.xlu1 %2704 }
 0x567   :  { %v333_v41 = vsel %vm5850_vm9, %v330_v18, %v332_v57  ;;  %v301_v57 = vsel %vm5695_vm12, %v299_v13, 0.0  ;;  %v5856_v18 = vld [vmem:[#allocation13_spill] sm:$0xff]  ;;  %vm5857_vm9 = vcmp.eq.s32.totalorder %v4588_v54, 2 }
 0x568   :  { %2434 = vrot.lane.b32.xlu0 %v5270_v31, %s2927_s2  ;;  %2375 = vrot.lane.b32.xlu1 %v5270_v31, %s2932_s15  ;;  %v335_v15 = vsel %vm5853_vm7, 0.0, %v333_v41  ;;  %vm5860_vm7 = vcmask 31744  }
 0x569   :  { %v358_v13 = vsel %vm5860_vm7, 0.0, %v4881_v2  ;;  %vm5867_vm7 = vcmask 1039360  }
 0x56a   :  { %v348_v24 = vpop.permute.xlu0 %347  ;;  %v5286_v28 = vpop.permute.xlu1 %2719 }
 0x56b   :  { %v351_v50 = vsel %vm5851_vm4, %v348_v24, %v350_v7  ;;  %v319_v7 = vsel %vm5855_vm1, %v318_v10, %v301_v57  ;;  %v2686_v24 = vrot.slane %v5856_v18, 4  ;;  %vm5858_vm4 = vcmp.eq.s32.totalorder %v4588_v54, 3 }
 0x56c   :  { %2776 = vrot.lane.b32.xlu0 %v5231_v42, %s2927_s2  ;;  %2391 = vrot.lane.b32.xlu1 %v5270_v31, %s2930_s13  ;;  %v353_v52 = vsel %vm5854_vm0, 0.0, %v351_v50  ;;  %vm5861_vm0 = vcmp.eq.s32.totalorder %v4588_v54, 4  ;;  %vm5863_vm1 = vcmask 1031168  }
 0x56e   :  { %v5292_v38 = vpop.permute.xlu0 %714  ;;  %v5294_v62 = vpop.permute.xlu1 %2735 }
 0x570   :  { %2444 = vrot.lane.b32.xlu0 %v5270_v31, %s2933_s16  ;;  %2407 = vrot.lane.b32.xlu1 %v5270_v31, %s2928_s11 }
 0x572   :  { %v5301_v45 = vpop.permute.xlu0 %724  ;;  %v5303_v12 = vpop.permute.xlu1 %2751 }
 0x574   :  { %2786 = vrot.lane.b32.xlu0 %v5231_v42, %s2933_s16  ;;  %2461 = vrot.lane.b32.xlu1 %v2347_v40, %s2931_s14  ;;  %v336_v40 = vsel %vm5857_vm9, %v335_v15, %v319_v7  ;;  %vm5864_vm9 = vcmask 7168  }
 0x575   :  { %v354_v30 = vsel %vm5858_vm4, %v353_v52, %v336_v40  ;;  %vm5865_vm4 = vcmask 15360  }
 0x576   :  { %v5313_v51 = vpop.permute.xlu0 %734  ;;  %v368_v6 = vpop.permute.xlu1 %367  ;;  %v359_v10 = vsel %vm5861_vm0, %v358_v13, %v354_v30  ;;  %vm5868_vm0 = vcmp.eq.s32.totalorder %v4588_v54, 2 }
 0x577   :  { %v370_v33 = vsel %vm5859_vm6, 0.0, %v368_v6  ;;  %vm5866_vm6 = vcmp.eq.s32.totalorder %v4588_v54, 1 }
 0x578   :  { %2454 = vrot.lane.b32.xlu0 %v5270_v31, %s2925_s9  ;;  %2803 = vrot.lane.b32.xlu1 %v2689_v58, %s2931_s14  ;;  %v2690_v58 = vsel %vm266_vm10, %v5856_v18, %v2686_v24  ;;  %v371_v6 = vsel %vm360_vm14, %v370_v33, %v359_v10  ;;  %vm5862_vm10 = vcmp.eq.s32.totalorder %v4588_v54, 8 }
 0x57a   :  { %v745_v23 = vpop.permute.xlu0 %744  ;;  %v380_v46 = vpop.permute.xlu1 %379 }
 0x57b   :  { %v382_v50 = vsel %vm376_vm13, 0.0, %v380_v46 }
 0x57c   :  { %2796 = vrot.lane.b32.xlu0 %v5231_v42, %s2925_s9  ;;  %v383_v57 = vsel %vm372_vm3, %v382_v50, %v371_v6 }
 0x57e   :  { %v5337_v9 = vpop.permute.xlu0 %1056  ;;  %v392_v41 = vpop.permute.xlu1 %391 }
 0x57f   :  { %v394_v15 = vsel %vm388_vm15, 0.0, %v392_v41 }
 0x580   :  { %2805 = vrot.lane.b32.xlu0 %v2690_v58, %s2931_s14  ;;  %v395_v46 = vsel %vm384_vm2, %v394_v15, %v383_v57 }
 0x582   :  { %v1067_v52 = vpop.permute.xlu0 %1066  ;;  %v404_v2 = vpop.permute.xlu1 %403 }
 0x583   :  { %v406_v7 = vsel %vm400_vm5, 0.0, %v404_v2 }
 0x584   :  { %v407_v18 = vsel %vm5862_vm10, %v406_v7, %v395_v46  ;;  %vm5869_vm10 = vcmask 23552  }
 0x585   :  { %v418_v24 = vadd.f32 %v4889_v34, %v407_v18 }
 0x586   :  { %v1077_v40 = vpop.permute.xlu0 %1076  ;;  %v651_v30 = vpop.permute.xlu1 %650 }
 0x587   :  { %419 = vst [vmem:[#allocation8 + $0x8] sm:$0xff] %v418_v24  ;;  %v654_v10 = vsel %vm163_vm8, %v651_v30, %v4949_v22 }
 0x588   :  { %v656_v57 = vsel %vm5695_vm12, %v654_v10, 0.0  ;;  %vm5873_vm12 = vcmp.eq.s32.totalorder %v4588_v54, 4 }
 0x58a   :  { %v1087_v41 = vpop.permute.xlu0 %1086  ;;  %v666_v33 = vpop.permute.xlu1 %665 }
 0x58b   :  { %v669_v13 = vsel %vm307_vm11, %v666_v33, %v4963_v16 }
 0x58c   :  { %v671_v6 = vsel %vm5864_vm9, 0.0, %v669_v13  ;;  %vm5871_vm9 = vcmp.eq.s32.totalorder %v4588_v54, 3 }
 0x58d   :  { %v672_v16 = vsel %vm5866_vm6, %v671_v6, %v656_v57  ;;  %vm5876_vm6 = vcmask 1031168  }
 0x58e   :  { %v5360_v50 = vpop.permute.xlu0 %1398  ;;  %v682_v58 = vpop.permute.xlu1 %681 }
 0x58f   :  { %v685_v15 = vsel %vm5863_vm1, %v682_v58, %v4981_v5  ;;  %vm5870_vm1 = vcmask 31744   ;;  %v727_v58 = vsel %vm376_vm13, 0.0, %v5301_v45  ;;  %v5875_v45 = vld [vmem:[#allocation23_spill] sm:$0xff] }
 0x590   :  { %v687_v34 = vsel %vm5865_vm4, 0.0, %v685_v15  ;;  %v707_v18 = vsel %vm5870_vm1, 0.0, %v4937_v20  ;;  %vm5872_vm4 = vcmask 39936   ;;  %v737_v20 = vsel %vm388_vm15, 0.0, %v5313_v51 }
 0x591   :  { %v688_v22 = vsel %vm5868_vm0, %v687_v34, %v672_v16  ;;  %v717_v30 = vsel %vm5872_vm4, 0.0, %v5292_v38  ;;  %v747_v38 = vsel %vm400_vm5, 0.0, %v745_v23  ;;  %vm5878_vm0 = vcmask 15360  }
 0x592   :  { %v5370_v2 = vpop.permute.xlu0 %1408  ;;  %v698_v46 = vpop.permute.xlu1 %697  ;;  %vm5880_vm1 = vcmp.eq.s32.totalorder %v4588_v54, 1  ;;  %vm5882_vm4 = vcmp.eq.s32.totalorder %v4588_v54, 2 }
 0x593   :  { %v701_v7 = vsel %vm5867_vm7, %v698_v46, %v4987_v14  ;;  %vm5877_vm7 = vcmask 7168  }
 0x594   :  { %v703_v5 = vsel %vm5869_vm10, 0.0, %v701_v7  ;;  %vm5879_vm10 = vcmp.eq.s32.totalorder %v4588_v54, 0 }
 0x595   :  { %v704_v24 = vsel %vm5871_vm9, %v703_v5, %v688_v22  ;;  %vm5881_vm9 = vcmask 1039360  }
 0x596   :  { %v708_v33 = vsel %vm5873_vm12, %v707_v18, %v704_v24  ;;  %v5387_v13 = vpop.permute.xlu0 %1418  ;;  %v993_v14 = vpop.permute.xlu1 %992  ;;  %vm5874_vm12 = vcmp.eq.s32.totalorder %v4588_v54, 8 }
 0x597   :  { %v718_v10 = vsel %vm360_vm14, %v717_v30, %v708_v33  ;;  %v996_v23 = vsel %vm163_vm8, %v993_v14, %v4996_v21 }
 0x598   :  { %v728_v15 = vsel %vm372_vm3, %v727_v58, %v718_v10  ;;  %v998_v30 = vsel %vm5879_vm10, %v996_v23, 0.0  ;;  %vm5887_vm10 = vcmp.eq.s32.totalorder %v4588_v54, 4 }
 0x599   :  { %v738_v6 = vsel %vm384_vm2, %v737_v20, %v728_v15 }
 0x59a   :  { %v748_v34 = vsel %vm5874_vm12, %v747_v38, %v738_v6  ;;  %v1429_v57 = vpop.permute.xlu0 %1428  ;;  %v1008_v46 = vpop.permute.xlu1 %1007  ;;  %vm5883_vm12 = vcmask 23552  }
 0x59b   :  { %v760_v16 = vadd.f32 %v5875_v45, %v748_v34  ;;  %v1011_v7 = vsel %vm307_vm11, %v1008_v46, %v5005_v3  ;;  %v1069_v34 = vsel %vm376_vm13, 0.0, %v1067_v52  ;;  %v1079_v45 = vsel %vm388_vm15, 0.0, %v1077_v40 }
 0x59c   :  { %v1013_v18 = vsel %vm5877_vm7, 0.0, %v1011_v7  ;;  %vm5885_vm7 = vcmp.eq.s32.totalorder %v4588_v54, 3 }
 0x59d   :  { %761 = vst [vmem:[#allocation8 + $0x18] sm:$0xff] %v760_v16  ;;  %v1014_v3 = vsel %vm5880_vm1, %v1013_v18, %v998_v30  ;;  %v1089_v16 = vsel %vm400_vm5, 0.0, %v1087_v41  ;;  %vm5888_vm1 = vcmp.eq.s32.totalorder %v4588_v54, 8 }
 0x59e   :  { %v5405_v51 = vpop.permute.xlu0 %1740  ;;  %v1024_v22 = vpop.permute.xlu1 %1023 }
 0x59f   :  { %v1027_v5 = vsel %vm5876_vm6, %v1024_v22, %v5021_v61  ;;  %vm5884_vm6 = vcmask 31744  }
 0x5a0   :  { %v1029_v24 = vsel %vm5878_vm0, 0.0, %v1027_v5  ;;  %v1049_v14 = vsel %vm5884_vm6, 0.0, %v4990_v44  ;;  %vm5886_vm0 = vcmask 39936   ;;  %v5889_v5 = vld [vmem:[#allocation31_spill] sm:$0xff]  ;;  %vm5893_vm6 = vcmp.eq.s32.totalorder %v4588_v54, 0 }
 0x5a1   :  { %v1030_v21 = vsel %vm5882_vm4, %v1029_v24, %v1014_v3  ;;  %v1059_v15 = vsel %vm5886_vm0, 0.0, %v5337_v9  ;;  %vm5891_vm4 = vcmask 7168   ;;  %vm5895_vm0 = vcmask 1039360  }
 0x5a2   :  { %v5415_v33 = vpop.permute.xlu0 %1750  ;;  %v1040_v58 = vpop.permute.xlu1 %1039 }
 0x5a3   :  { %v1043_v10 = vsel %vm5881_vm9, %v1040_v58, %v5035_v4  ;;  %vm5890_vm9 = vcmask 1031168  }
 0x5a4   :  { %v1045_v61 = vsel %vm5883_vm12, 0.0, %v1043_v10  ;;  %vm5892_vm12 = vcmask 15360  }
 0x5a5   :  { %v1046_v20 = vsel %vm5885_vm7, %v1045_v61, %v1030_v21  ;;  %vm5894_vm7 = vcmp.eq.s32.totalorder %v4588_v54, 1 }
 0x5a6   :  { %v1050_v38 = vsel %vm5887_vm10, %v1049_v14, %v1046_v20  ;;  %v5432_v6 = vpop.permute.xlu0 %1760  ;;  %v1335_v4 = vpop.permute.xlu1 %1334  ;;  %vm5896_vm10 = vcmp.eq.s32.totalorder %v4588_v54, 2 }
 0x5a7   :  { %v1060_v46 = vsel %vm360_vm14, %v1059_v15, %v1050_v38  ;;  %v1338_v41 = vsel %vm163_vm8, %v1335_v4, %v5051_v47 }
 0x5a8   :  { %v1070_v44 = vsel %vm372_vm3, %v1069_v34, %v1060_v46  ;;  %v1340_v10 = vsel %vm5893_vm6, %v1338_v41, 0.0  ;;  %vm5901_vm6 = vcmp.eq.s32.totalorder %v4588_v54, 4  ;;  %v1411_v46 = vsel %vm376_vm13, 0.0, %v5370_v2 }
 0x5a9   :  { %v1080_v9 = vsel %vm384_vm2, %v1079_v45, %v1070_v44 }
 0x5aa   :  { %v1090_v7 = vsel %vm5888_vm1, %v1089_v16, %v1080_v9  ;;  %v1771_v22 = vpop.permute.xlu0 %1770  ;;  %v1350_v23 = vpop.permute.xlu1 %1349  ;;  %vm5897_vm1 = vcmask 23552  }
 0x5ab   :  { %v1102_v52 = vadd.f32 %v5889_v5, %v1090_v7  ;;  %v1353_v18 = vsel %vm307_vm11, %v1350_v23, %v5066_v59 }
 0x5ac   :  { %v1355_v58 = vsel %vm5891_vm4, 0.0, %v1353_v18  ;;  %vm5899_vm4 = vcmp.eq.s32.totalorder %v4588_v54, 3 }
 0x5ad   :  { %1103 = vst [vmem:[#allocation8 + $0x28] sm:$0xff] %v1102_v52  ;;  %v1356_v59 = vsel %vm5894_vm7, %v1355_v58, %v1340_v10  ;;  %vm5902_vm7 = vcmp.eq.s32.totalorder %v4588_v54, 8 }
 0x5ae   :  { %v5448_v40 = vpop.permute.xlu0 %2082  ;;  %v1366_v24 = vpop.permute.xlu1 %1365 }
 0x5af   :  { %v1369_v30 = vsel %vm5890_vm9, %v1366_v24, %v5084_v26  ;;  %vm5898_vm9 = vcmask 31744  }
 0x5b0   :  { %v1371_v3 = vsel %vm5892_vm12, 0.0, %v1369_v30  ;;  %v1391_v20 = vsel %vm5898_vm9, 0.0, %v5038_v37  ;;  %vm5900_vm12 = vcmask 39936   ;;  %v1421_v37 = vsel %vm388_vm15, 0.0, %v5387_v13 }
 0x5b1   :  { %v1372_v47 = vsel %vm5896_vm10, %v1371_v3, %v1356_v59  ;;  %v1401_v38 = vsel %vm5900_vm12, 0.0, %v5360_v50  ;;  %v1431_v50 = vsel %vm400_vm5, 0.0, %v1429_v57  ;;  %vm5904_vm10 = vcmask 7168  }
 0x5b2   :  { %v5458_v21 = vpop.permute.xlu0 %2092  ;;  %v1382_v61 = vpop.permute.xlu1 %1381  ;;  %vm5906_vm9 = vcmp.eq.s32.totalorder %v4588_v54, 0  ;;  %vm5908_vm12 = vcmask 1039360  }
 0x5b3   :  { %v1385_v14 = vsel %vm5895_vm0, %v1382_v61, %v5090_v56  ;;  %vm5903_vm0 = vcmask 1031168  }
 0x5b4   :  { %v1387_v26 = vsel %vm5897_vm1, 0.0, %v1385_v14  ;;  %vm5905_vm1 = vcmask 15360  }
 0x5b5   :  { %v1388_v15 = vsel %vm5899_vm4, %v1387_v26, %v1372_v47  ;;  %vm5907_vm4 = vcmp.eq.s32.totalorder %v4588_v54, 1 }
 0x5b6   :  { %v1392_v4 = vsel %vm5901_vm6, %v1391_v20, %v1388_v15  ;;  %v5475_v34 = vpop.permute.xlu0 %2102  ;;  %v1677_v56 = vpop.permute.xlu1 %1676  ;;  %vm5909_vm6 = vcmp.eq.s32.totalorder %v4588_v54, 2 }
 0x5b7   :  { %v1402_v45 = vsel %vm360_vm14, %v1401_v38, %v1392_v4  ;;  %v1680_v57 = vsel %vm163_vm8, %v1677_v56, %v5104_v32  ;;  %v1773_v38 = vsel %vm400_vm5, 0.0, %v1771_v22 }
 0x5b8   :  { %v1412_v44 = vsel %vm372_vm3, %v1411_v46, %v1402_v45 }
 0x5b9   :  { %v1422_v16 = vsel %vm384_vm2, %v1421_v37, %v1412_v44 }
 0x5ba   :  { %v1432_v9 = vsel %vm5902_vm7, %v1431_v50, %v1422_v16  ;;  %v2113_v7 = vpop.permute.xlu0 %2112  ;;  %v1692_v23 = vpop.permute.xlu1 %1691  ;;  %vm5910_vm7 = vcmask 23552  }
 0x5bb   :  { %v1444_v2 = vadd.f32 %v4858_v63, %v1432_v9  ;;  %v1695_v5 = vsel %vm307_vm11, %v1692_v23, %v5122_v39  ;;  %v1682_v63 = vsel %vm5906_vm9, %v1680_v57, 0.0  ;;  %vm5914_vm9 = vcmp.eq.s32.totalorder %v4588_v54, 4 }
 0x5bc   :  { %v1697_v24 = vsel %vm5904_vm10, 0.0, %v1695_v5  ;;  %vm5912_vm10 = vcmp.eq.s32.totalorder %v4588_v54, 3 }
 0x5bd   :  { %1445 = vst [vmem:[#allocation8 + $0x38] sm:$0xff] %v1444_v2  ;;  %v1698_v39 = vsel %vm5907_vm4, %v1697_v24, %v1682_v63  ;;  %vm5915_vm4 = vcmp.eq.s32.totalorder %v4588_v54, 8 }
 0x5be   :  { %v5493_v13 = vpop.permute.xlu0 %2463  ;;  %v1708_v52 = vpop.permute.xlu1 %1707 }
 0x5bf   :  { %v1711_v18 = vsel %vm5903_vm0, %v1708_v52, %v5136_v36  ;;  %vm5911_vm0 = vcmask 31744  }
 0x5c0   :  { %v1713_v41 = vsel %vm5905_vm1, 0.0, %v1711_v18  ;;  %v1733_v10 = vsel %vm5911_vm0, 0.0, %v5093_v8  ;;  %vm5913_vm1 = vcmask 39936   ;;  %v1763_v8 = vsel %vm388_vm15, 0.0, %v5432_v6 }
 0x5c1   :  { %v1714_v32 = vsel %vm5909_vm6, %v1713_v41, %v1698_v39  ;;  %v1743_v59 = vsel %vm5913_vm1, 0.0, %v5405_v51  ;;  %vm5917_vm6 = vcmask 7168   ;;  %vm5919_vm0 = vcmp.eq.s32.totalorder %v4588_v54, 0 }
 0x5c2   :  { %v5503_v30 = vpop.permute.xlu0 %2702  ;;  %v1724_v58 = vpop.permute.xlu1 %1723  ;;  %vm5921_vm1 = vcmask 1039360   ;;  %v2115_v39 = vsel %vm400_vm5, 0.0, %v2113_v7 }
 0x5c3   :  { %v1727_v3 = vsel %vm5908_vm12, %v1724_v58, %v5160_v53  ;;  %v1753_v53 = vsel %vm376_vm13, 0.0, %v5415_v33  ;;  %vm5916_vm12 = vcmask 1031168  }
 0x5c4   :  { %v1729_v36 = vsel %vm5910_vm7, 0.0, %v1727_v3  ;;  %vm5918_vm7 = vcmask 15360  }
 0x5c5   :  { %v1730_v61 = vsel %vm5912_vm10, %v1729_v36, %v1714_v32  ;;  %vm5920_vm10 = vcmp.eq.s32.totalorder %v4588_v54, 1 }
 0x5c6   :  { %v1734_v14 = vsel %vm5914_vm9, %v1733_v10, %v1730_v61  ;;  %v2718_v47 = vpop.permute.xlu0 %2717  ;;  %v2019_v26 = vpop.permute.xlu1 %2018  ;;  %vm5922_vm9 = vcmp.eq.s32.totalorder %v4588_v54, 2 }
 0x5c7   :  { %v1744_v20 = vsel %vm360_vm14, %v1743_v59, %v1734_v14  ;;  %v2022_v44 = vsel %vm163_vm8, %v2019_v26, %v5177_v1 }
 0x5c8   :  { %v1754_v15 = vsel %vm372_vm3, %v1753_v53, %v1744_v20  ;;  %v2024_v9 = vsel %vm5919_vm0, %v2022_v44, 0.0  ;;  %vm5927_vm0 = vcmp.eq.s32.totalorder %v4588_v54, 4 }
 0x5c9   :  { %v1764_v51 = vsel %vm384_vm2, %v1763_v8, %v1754_v15 }
 0x5ca   :  { %v1774_v4 = vsel %vm5915_vm4, %v1773_v38, %v1764_v51  ;;  %v2734_v56 = vpop.permute.xlu0 %2733  ;;  %v2034_v46 = vpop.permute.xlu1 %2033  ;;  %vm5923_vm4 = vcmask 23552  }
 0x5cb   :  { %v1786_v33 = vadd.f32 %v4972_v25, %v1774_v4  ;;  %v2037_v45 = vsel %vm307_vm11, %v2034_v46, %v5193_v60 }
 0x5cc   :  { %v2039_v50 = vsel %vm5917_vm6, 0.0, %v2037_v45  ;;  %vm5925_vm6 = vcmp.eq.s32.totalorder %v4588_v54, 3 }
 0x5cd   :  { %1787 = vst [vmem:[#allocation8 + $0x48] sm:$0xff] %v1786_v33  ;;  %v2040_v60 = vsel %vm5920_vm10, %v2039_v50, %v2024_v9  ;;  %vm5928_vm10 = vcmp.eq.s32.totalorder %v4588_v54, 8 }
 0x5ce   :  { %v2750_v6 = vpop.permute.xlu0 %2749  ;;  %v2050_v37 = vpop.permute.xlu1 %2049 }
 0x5cf   :  { %v2053_v22 = vsel %vm5916_vm12, %v2050_v37, %v5207_v35  ;;  %vm5924_vm12 = vcmask 31744  }
 0x5d0   :  { %v2055_v16 = vsel %vm5918_vm7, 0.0, %v2053_v22  ;;  %v2075_v5 = vsel %vm5924_vm12, 0.0, %v5163_v11  ;;  %vm5926_vm7 = vcmask 39936   ;;  %v2105_v11 = vsel %vm388_vm15, 0.0, %v5475_v34 }
 0x5d1   :  { %v2056_v1 = vsel %vm5922_vm9, %v2055_v16, %v2040_v60  ;;  %v2085_v57 = vsel %vm5926_vm7, 0.0, %v5448_v40  ;;  %vm5930_vm9 = vcmask 7168   ;;  %vm5932_vm12 = vcmp.eq.s32.totalorder %v4588_v54, 0 }
 0x5d2   :  { %v2425_v25 = vpop.permute.xlu0 %2424  ;;  %v2066_v23 = vpop.permute.xlu1 %2065  ;;  %vm5934_vm7 = vcmask 1039360  }
 0x5d3   :  { %v2069_v2 = vsel %vm5921_vm1, %v2066_v23, %v5218_v55  ;;  %v2095_v55 = vsel %vm376_vm13, 0.0, %v5458_v21  ;;  %vm5929_vm1 = vcmask 1031168  }
 0x5d4   :  { %v2071_v35 = vsel %vm5923_vm4, 0.0, %v2069_v2  ;;  %vm5931_vm4 = vcmask 15360   ;;  %v2737_v38 = vsel %vm5929_vm1, %v2734_v56, %v5294_v62 }
 0x5d5   :  { %v2072_v52 = vsel %vm5925_vm6, %v2071_v35, %v2056_v1  ;;  %vm5933_vm6 = vcmp.eq.s32.totalorder %v4588_v54, 1 }
 0x5d6   :  { %v2076_v18 = vsel %vm5927_vm0, %v2075_v5, %v2072_v52  ;;  %v2767_v24 = vpop.permute.xlu0 %2766  ;;  %v2361_v41 = vpop.permute.xlu1 %2360  ;;  %vm5935_vm0 = vcmp.eq.s32.totalorder %v4588_v54, 2 }
 0x5d7   :  { %v2086_v63 = vsel %vm360_vm14, %v2085_v57, %v2076_v18  ;;  %v2364_v59 = vsel %vm163_vm8, %v2361_v41, %v5228_v43  ;;  %v2721_v43 = vsel %vm307_vm11, %v2718_v47, %v5286_v28 }
 0x5d8   :  { %v2096_v58 = vsel %vm372_vm3, %v2095_v55, %v2086_v63  ;;  %v2366_v53 = vsel %vm5932_vm12, %v2364_v59, 0.0  ;;  %vm5940_vm12 = vcmask 39936  }
 0x5d9   :  { %v2106_v40 = vsel %vm384_vm2, %v2105_v11, %v2096_v58  ;;  %v2427_v47 = vsel %vm5940_vm12, 0.0, %v2425_v25  ;;  %vm5949_vm12 = vcmp.eq.s32.totalorder %v4588_v54, 8 }
 0x5da   :  { %v2116_v3 = vsel %vm5928_vm10, %v2115_v39, %v2106_v40  ;;  %v2435_v32 = vpop.permute.xlu0 %2434  ;;  %v2376_v36 = vpop.permute.xlu1 %2375  ;;  %vm5936_vm10 = vcmask 23552  }
 0x5db   :  { %v2128_v21 = vadd.f32 %v5075_v19, %v2116_v3  ;;  %v2379_v10 = vsel %vm307_vm11, %v2376_v36, %v5242_v17  ;;  %vm5939_vm11 = vmmov %vm5934_vm7 }
 0x5dc   :  { %v2381_v14 = vsel %vm5930_vm9, 0.0, %v2379_v10  ;;  %vm5937_vm9 = vcmask 31744   ;;  %v2753_v28 = vsel %vm5939_vm11, %v2750_v6, %v5303_v12  ;;  %vm5948_vm11 = vcmp.eq.s32.totalorder %v4588_v54, 3 }
 0x5dd   :  { %2129 = vst [vmem:[#allocation8 + $0x58] sm:$0xff] %v2128_v21  ;;  %v2382_v17 = vsel %vm5933_vm6, %v2381_v14, %v2366_v53  ;;  %v2417_v51 = vsel %vm5937_vm9, 0.0, %v5270_v31  ;;  %vm5941_vm6 = vcmp.eq.s32.totalorder %v4588_v54, 4  ;;  %v2437_v31 = vsel %vm376_vm13, 0.0, %v2435_v32 }
 0x5de   :  { %v2777_v34 = vpop.permute.xlu0 %2776  ;;  %v2392_v61 = vpop.permute.xlu1 %2391  ;;  %vm5946_vm9 = vcmp.eq.s32.totalorder %v4588_v54, 1 }
 0x5df   :  { %v2395_v7 = vsel %vm5929_vm1, %v2392_v61, %v5256_v29  ;;  %vm5945_vm1 = vcmask 23552   ;;  %v2779_v35 = vsel %vm376_vm13, 0.0, %v2777_v34  ;;  %vm5953_vm13 = vmmov %vm5949_vm12 }
 0x5e0   :  { %v2397_v26 = vsel %vm5931_vm4, 0.0, %v2395_v7  ;;  %vm5938_vm4 = vcmp.eq.s32.totalorder %v4588_v54, 3  ;;  %v2755_v44 = vsel %vm5945_vm1, 0.0, %v2753_v28 }
 0x5e1   :  { %v2398_v29 = vsel %vm5935_vm0, %v2397_v26, %v2382_v17  ;;  %vm5943_vm0 = vcmask 15360  }
 0x5e2   :  { %v2445_v19 = vpop.permute.xlu0 %2444  ;;  %v2408_v20 = vpop.permute.xlu1 %2407 }
 0x5e3   :  { %v2411_v8 = vsel %vm5934_vm7, %v2408_v20, %v5263_v27  ;;  %v2706_v27 = vsel %vm163_vm8, %v5503_v30, %v5280_v49  ;;  %vm5942_vm7 = vcmask 7168   ;;  %v2739_v30 = vsel %vm5943_vm0, 0.0, %v2737_v38 }
 0x5e4   :  { %v2413_v15 = vsel %vm5936_vm10, 0.0, %v2411_v8  ;;  %v2723_v56 = vsel %vm5942_vm7, 0.0, %v2721_v43  ;;  %vm5944_vm10 = vcmp.eq.s32.totalorder %v4588_v54, 0  ;;  %vm5951_vm7 = vcmask 31744  }
 0x5e5   :  { %v2414_v4 = vsel %vm5938_vm4, %v2413_v15, %v2398_v29  ;;  %v2708_v37 = vsel %vm5944_vm10, %v2706_v27, 0.0  ;;  %vm5947_vm4 = vcmp.eq.s32.totalorder %v4588_v54, 2  ;;  %v2759_v1 = vsel %vm5951_vm7, 0.0, %v5231_v42 }
 0x5e6   :  { %v2418_v46 = vsel %vm5941_vm6, %v2417_v51, %v2414_v4  ;;  %v2787_v33 = vpop.permute.xlu0 %2786  ;;  %v2462_v62 = vpop.permute.xlu1 %2461  ;;  %v2724_v22 = vsel %vm5946_vm9, %v2723_v56, %v2708_v37  ;;  %vm5950_vm6 = vcmask 39936   ;;  %vm5952_vm0 = vcmp.eq.s32.totalorder %v4588_v54, 4 }
 0x5e7   :  { %v2465_v45 = vsel %vm163_vm8, %v2462_v62, %v5493_v13  ;;  %v2428_v49 = vsel %vm360_vm14, %v2427_v47, %v2418_v46  ;;  %v2447_v13 = vsel %vm388_vm15, 0.0, %v2445_v19  ;;  %v2740_v16 = vsel %vm5947_vm4, %v2739_v30, %v2724_v22 }
 0x5e8   :  { %v2467_v12 = vadd.f32 %v2465_v45, %v5236_v0  ;;  %v2438_v6 = vsel %vm372_vm3, %v2437_v31, %v2428_v49  ;;  %v2756_v25 = vsel %vm5948_vm11, %v2755_v44, %v2740_v16  ;;  %v2769_v60 = vsel %vm5950_vm6, 0.0, %v2767_v24 }
 0x5e9   :  { %v2448_v0 = vsel %vm384_vm2, %v2447_v13, %v2438_v6  ;;  %v2760_v52 = vsel %vm5952_vm0, %v2759_v1, %v2756_v25  ;;  %v2789_v57 = vsel %vm388_vm15, 0.0, %v2787_v33 }
 0x5ea   :  { %2469 = vst [vmem:[#allocation8 + $0x60] sm:$0xff] %v2467_v12  ;;  %v2455_v50 = vpop.permute.xlu0 %2454  ;;  %v2770_v18 = vsel %vm360_vm14, %v2769_v60, %v2760_v52  ;;  %v2804_v55 = vpop.permute.xlu1 %2803 }
 0x5eb   :  { %v2457_v9 = vsel %vm400_vm5, 0.0, %v2455_v50  ;;  %v2780_v24 = vsel %vm372_vm3, %v2779_v35, %v2770_v18 }
 0x5ec   :  { %v2458_v23 = vsel %vm5949_vm12, %v2457_v9, %v2448_v0  ;;  %v2790_v42 = vsel %vm384_vm2, %v2789_v57, %v2780_v24 }
 0x5ed   :  { %v2470_v2 = vadd.f32 %v2465_v45, %v2458_v23 }
 0x5ee   :  { %v2797_v5 = vpop.permute.xlu0 %2796 }
 0x5ef   :  { %2471 = vst [vmem:[#allocation8 + $0x68] sm:$0xff] %v2470_v2  ;;  %v2799_v41 = vsel %vm400_vm5, 0.0, %v2797_v5 }
 0x5f0   :  { %v2800_v11 = vsel %vm5953_vm13, %v2799_v41, %v2790_v42 }
 0x5f2   :  { %v2806_v63 = vpop.permute.xlu0 %2805 }
 0x5f3   :  { %v2807_v58 = vsel %vm163_vm8, %v2804_v55, %v2806_v63 }
 0x5f4   :  { %v2809_v39 = vadd.f32 %v2807_v58, %v5250_v48  ;;  %v2812_v40 = vadd.f32 %v2807_v58, %v2800_v11 }
 0x5f6   :  { %2811 = vst [vmem:[#allocation8 + $0x70] sm:$0xff] %v2809_v39  ;;  %2813 = vst [vmem:[#allocation8 + $0x78] sm:$0xff] %v2812_v40 }
 0x5f7   :  { %2905 = shalt.err (!%p2902_p6)
}
 0x5f8   :  { %s2906_s22 = scalar_lea.hbm %s5664_s3, 2048 }
 0x5f9   :  { %p2907_p7 = scmp.ne.s32.totalorder %s5664_s3, %s2906_s22  ;;  %p2910_p8 = scmp.lt.u32.totalorder %s2906_s22, %s5664_s3 }
 0x5fb   :  { %p2912_p9 = pnand %p2910_p8, %p2907_p7 }
 0x5fd   :  { %2915 = shalt.err (!%p2912_p9)
}
 0x5fe   :  { %s2935_s26 = smov 128   ;;  %s2936_s27 = smov 8  }
 0x5ff   :  { %2825 = dma.vmem_to_hbm [thread:$0]  %s2820_s18, 2048, %s5664_s3, [#allocation5], %s2935_s26, %s2935_s26, %s2936_s27  }
 0x600   :  { %2920 = dma.done.wait [#allocation5], 2048  }
 0x601   :  { %2921 = vsyncadd [#allocation5], 4294965248 }
 0x602   :  { %2829 = vsyncpa [#allocation4], 1 }
 0x603   :  { %2830 = vsyncpa [#allocation7], 1 }
 0x604   :  { %2831 = vsyncpa [#allocation5], 1 }

</bundles_post_ra>
